<compile_context>
chip_gen: v7x
topology: tpu7x:2x2x1
jax: 0.10.0
libtpu: 0.0.40
codegen_flags: <defaults>
</compile_context>

<pallas_src>
import functools

import jax
import jax.numpy as jnp
from jax import lax
from jax.experimental import pallas as pl
from jax.experimental.pallas import tpu as pltpu
import numpy as np

LANE = 128


def _round_up(x, m):
    return ((x + m - 1) // m) * m


def lstm_tagger_kernel(sent_ref,      # SMEM (B, T) int32     (scalar prefetch)
                       chars_ref,     # VMEM (T, Bc, 64)      per grid step
                       emb_ref,       # VMEM (vocab, 1, E)    resident
                       wih_ref,       # VMEM (D, 4*GW)        resident
                       whh_ref,       # VMEM (H, 4*GW)        resident
                       b_ref,         # VMEM (1, 4*GW)        resident
                       wout_ref,      # VMEM (H, PADT)        resident
                       bout_ref,      # VMEM (1, PADT)        resident
                       out_ref,       # VMEM (T, Bc, PADT)
                       x_s,           # VMEM scratch (T*Bc, D)
                       xg_s,          # VMEM scratch (T*Bc, 4*GW)
                       h_s,           # VMEM scratch (T*Bc, H)
                       *, hidden_dim, embed_dim, seq_len, block_b, gate_w):
    H = hidden_dim
    E = embed_dim
    T = seq_len
    Bc = block_b
    GW = gate_w                     # per-gate lane-group width (>= 128)

    bi = pl.program_id(0)           # batch-chunk index

    # ---- assemble x = [embeds | chars] in VMEM scratch, time-major rows ----
    x_s[:, E:] = chars_ref[...].reshape(T * Bc, 64)
    for t in range(T):
        for b in range(Bc):
            tok = sent_ref[bi * Bc + b, t]          # SMEM scalar read
            x_s[pl.ds(t * Bc + b, 1), 0:E] = emb_ref[tok]   # (1, E) row gather

    # ---- input-side gate projections for all (t, b) rows in one MXU call ----
    # (T*Bc, D) @ (D, 4*GW) + fused bias (b_ih + b_hh); gate groups [i|f|o|g],
    # each padded to its own GW-lane group -> no lane rotates per step.
    xg_s[...] = jnp.dot(x_s[...], wih_ref[...],
                        preferred_element_type=jnp.float32) + b_ref[...]

    def cell(gates, c_prev):
        sg = jax.nn.sigmoid(gates[:, :3 * GW])      # i | f | o  (vreg-aligned)
        g_g = jnp.tanh(gates[:, 3 * GW:])           # g
        i_g = sg[:, :GW]
        f_g = sg[:, GW:2 * GW]
        o_g = sg[:, 2 * GW:3 * GW]
        c_new = f_g * c_prev + i_g * g_g
        h_new = o_g * jnp.tanh(c_new)
        return h_new, c_new

    # t = 0: h0 == c0 == 0 (nn.LSTM default) -> gates == xg[0] and the f*c
    # term vanishes, so the recurrent matmul is skipped for the first step.
    # (If an initial hidden state is ever threaded in, run the generic step.)
    g0 = xg_s[pl.ds(0, Bc), :]
    c = jax.nn.sigmoid(g0[:, :GW]) * jnp.tanh(g0[:, 3 * GW:])
    h = jax.nn.sigmoid(g0[:, 2 * GW:3 * GW]) * jnp.tanh(c)
    h_s[pl.ds(0, Bc), :] = h[:, :H]

    # Remaining steps, fully unrolled (T small & static). h/c stay in vregs;
    # xg comes from aligned VMEM loads, h_t is spilled to scratch off-chain.
    for t in range(1, T):
        g_x = xg_s[pl.ds(t * Bc, Bc), :]
        gates = g_x + jnp.dot(h[:, :H], whh_ref[...],
                              preferred_element_type=jnp.float32)
        h, c = cell(gates, c)
        h_s[pl.ds(t * Bc, Bc), :] = h[:, :H]

    # ---- hoisted epilogue: one tag projection + log_softmax, lane-dense store.
    # Pad lanes of bout are pre-set to -1e30, so no in-kernel mask is needed.
    h_all = h_s[...]                                        # (T*Bc, H)
    logits = jnp.dot(h_all, wout_ref[...],
                     preferred_element_type=jnp.float32) + bout_ref[...]
    m = jnp.max(logits, axis=-1, keepdims=True)
    z = logits - m
    lse = jnp.log(jnp.sum(jnp.exp(z), axis=-1, keepdims=True))
    out_ref[...] = (z - lse).reshape(T, Bc, logits.shape[-1])


def prepare_params(params):
    """One-time parameter preparation (hoisted out of the per-call path):
    permute fused gates [i,f,g,o] -> [i,f,o,g], pad each gate into its own
    128-lane group, pad the tag dim to a lane multiple, and bake the -1e30
    pad mask into the output bias."""
    emb = params["embedding"].astype(jnp.float32)
    wih_t = params["wih_t"].astype(jnp.float32)     # (D, 4H), gates [i,f,g,o]
    whh_t = params["whh_t"].astype(jnp.float32)     # (H, 4H)
    b = params["b"].astype(jnp.float32)             # (1, 4H) = b_ih + b_hh
    wout_t = params["wout_t"].astype(jnp.float32)   # (H, tag)
    bout = params["bout"].astype(jnp.float32)       # (1, tag)

    D = wih_t.shape[0]
    H = whh_t.shape[0]
    tag = wout_t.shape[1]
    GW = max(LANE, _round_up(H, LANE))              # per-gate lane-group width
    PADT = max(LANE, _round_up(tag, LANE))          # padded tag (lane-dense out)

    def pad_gates(w):                               # (rows, 4H) -> (rows, 4*GW)
        i_w, f_w, g_w, o_w = jnp.split(w, 4, axis=-1)
        out = jnp.zeros((w.shape[0], 4 * GW), jnp.float32)
        for k, gate in enumerate((i_w, f_w, o_w, g_w)):   # order [i, f, o, g]
            out = out.at[:, k * GW:k * GW + H].set(gate)
        return out

    return {
        "embedding": emb[:, None, :],               # (vocab, 1, E): row gather
        "wih_p": pad_gates(wih_t),                  # (D, 4*GW)
        "whh_p": pad_gates(whh_t),                  # (H, 4*GW)
        "b_p": pad_gates(b),                        # (1, 4*GW)
        "wout_p": jnp.zeros((H, PADT), jnp.float32).at[:, :tag].set(wout_t),
        "bout_p": jnp.full((1, PADT), -1e30, jnp.float32).at[:, :tag].set(bout),
        "hidden_dim": H, "embed_dim": emb.shape[1], "input_dim": D,
        "tagset_size": tag, "gate_w": GW, "pad_tag": PADT,
    }


def lstm_tagger_forward(sentences, chars, prepped, *, block_b=8):
    """Batched forward: each row of `sentences` is one independent sentence run
    through the module's forward.  sentences: (B, T) int32, chars: (B, T, 64).
    Returns (B, T, tagset) log-probabilities."""
    B, T = sentences.shape
    H = prepped["hidden_dim"]
    E = prepped["embed_dim"]
    D = prepped["input_dim"]
    GW = prepped["gate_w"]
    PADT = prepped["pad_tag"]
    tag = prepped["tagset_size"]
    vocab = prepped["embedding"].shape[0]
    Bc = block_b
    assert B % Bc == 0, "pad the batch to a multiple of block_b"

    chars_tm = jnp.transpose(chars.astype(jnp.float32), (1, 0, 2))  # (T, B, 64)

    kernel = functools.partial(
        lstm_tagger_kernel, hidden_dim=H, embed_dim=E, seq_len=T,
        block_b=Bc, gate_w=GW)

    grid_spec = pltpu.PrefetchScalarGridSpec(
        num_scalar_prefetch=1,
        grid=(B // Bc,),
        in_specs=[
            pl.BlockSpec((T, Bc, 64), lambda b, sent: (0, b, 0)),     # chars
            pl.BlockSpec((vocab, 1, E), lambda b, sent: (0, 0, 0)),   # emb tbl
            pl.BlockSpec((D, 4 * GW), lambda b, sent: (0, 0)),        # wih
            pl.BlockSpec((H, 4 * GW), lambda b, sent: (0, 0)),        # whh
            pl.BlockSpec((1, 4 * GW), lambda b, sent: (0, 0)),        # bias
            pl.BlockSpec((H, PADT), lambda b, sent: (0, 0)),          # wout
            pl.BlockSpec((1, PADT), lambda b, sent: (0, 0)),          # bout
        ],
        out_specs=pl.BlockSpec((T, Bc, PADT), lambda b, sent: (0, b, 0)),
        scratch_shapes=[
            pltpu.VMEM((T * Bc, D), jnp.float32),        # x  (embeds | chars)
            pltpu.VMEM((T * Bc, 4 * GW), jnp.float32),   # xg (input-side gates)
            pltpu.VMEM((T * Bc, H), jnp.float32),        # h_t for the epilogue
        ],
    )

    out = pl.pallas_call(
        kernel,
        out_shape=jax.ShapeDtypeStruct((T, B, PADT), jnp.float32),
        grid_spec=grid_spec,
        compiler_params=pltpu.CompilerParams(
            dimension_semantics=("parallel",)),          # 2nd TensorCore on v7x
    )(sentences.astype(jnp.int32), chars_tm,
      prepped["embedding"], prepped["wih_p"], prepped["whh_p"], prepped["b_p"],
      prepped["wout_p"], prepped["bout_p"])

    return jnp.transpose(out[:, :, :tag], (1, 0, 2))     # (B, T, tagset)


def ref_forward(sentences, chars, params):
    """Pure-JAX reference (PyTorch gate order, HIGHEST-precision matmuls)."""
    emb_table = params["embedding"]
    wih_t, whh_t, b = params["wih_t"], params["whh_t"], params["b"]
    wout_t, bout = params["wout_t"], params["bout"]
    H = whh_t.shape[0]
    hp = lax.Precision.HIGHEST

    def one(sentence, ch):
        x = jnp.concatenate([emb_table[sentence], ch], axis=1).astype(jnp.float32)
        T = x.shape[0]
        h = jnp.zeros((1, H), jnp.float32)
        c = jnp.zeros((1, H), jnp.float32)
        xg = jnp.dot(x, wih_t, precision=hp) + b
        outs = []
        for t in range(T):
            g = xg[t:t + 1] + jnp.dot(h, whh_t, precision=hp)
            i_g = jax.nn.sigmoid(g[:, 0:H])
            f_g = jax.nn.sigmoid(g[:, H:2 * H])
            g_g = jnp.tanh(g[:, 2 * H:3 * H])
            o_g = jax.nn.sigmoid(g[:, 3 * H:4 * H])
            c = f_g * c + i_g * g_g
            h = o_g * jnp.tanh(c)
            tags = jnp.dot(h, wout_t, precision=hp) + bout
            outs.append(jax.nn.log_softmax(tags, axis=-1))
        return jnp.concatenate(outs, axis=0)

    return jnp.stack([one(sentences[i], chars[i])
                      for i in range(sentences.shape[0])], axis=0)


def make_params(key, embedding_dim, hidden_dim, vocab_size, tagset_size):
    """Deterministic synthetic parameters matching the module's shapes.
    Weights are stored transposed (in, out); LSTM gates fused in PyTorch order
    [i, f, g, o]; bias is the fused b_ih + b_hh."""
    input_dim = embedding_dim + 64
    ks = jax.random.split(key, 7)
    s = 1.0 / np.sqrt(hidden_dim)
    return {
        "embedding": jax.random.normal(ks[0], (vocab_size, embedding_dim),
                                       jnp.float32),
        "wih_t": jax.random.uniform(ks[1], (input_dim, 4 * hidden_dim),
                                    jnp.float32, -s, s),
        "whh_t": jax.random.uniform(ks[2], (hidden_dim, 4 * hidden_dim),
                                    jnp.float32, -s, s),
        "b": (jax.random.uniform(ks[3], (1, 4 * hidden_dim), jnp.float32, -s, s)
              + jax.random.uniform(ks[4], (1, 4 * hidden_dim), jnp.float32,
                                   -s, s)),
        "wout_t": jax.random.uniform(ks[5], (hidden_dim, tagset_size),
                                     jnp.float32, -s, s),
        "bout": jax.random.uniform(ks[6], (1, tagset_size), jnp.float32, -s, s),
    }


if __name__ == "__main__":
    embedding_dim = 64
    hidden_dim = 32
    vocab_size = 50
    tagset_size = 8
    seq_len = 8
    batch = 16        # 2 grid steps of 8 sentences: exercises resident-weight
                      # index_maps and the parallel batch axis

    key = jax.random.PRNGKey(0)
    k_par, k_sent, k_char = jax.random.split(key, 3)

    params = make_params(k_par, embedding_dim, hidden_dim, vocab_size,
                         tagset_size)
    prepped = prepare_params(params)   # one-time, hoisted out of the call path

    sentences = jax.random.randint(k_sent, (batch, seq_len), 0, vocab_size,
                                   dtype=jnp.int32)
    chars = jax.random.normal(k_char, (batch, seq_len, 64), jnp.float32)

    out = lstm_tagger_forward(sentences, chars, prepped)
    out = jax.block_until_ready(out)

    ref = jax.block_until_ready(ref_forward(sentences, chars, params))
    np.testing.assert_allclose(np.asarray(out), np.asarray(ref),
                               rtol=1e-4, atol=1e-5)

    assert out.shape == (batch, seq_len, tagset_size)
    print("KERNEL_OK")
</pallas_src>

<mosaic_0001>
module attributes {stable_mosaic.version = 11 : i64} {
  func.func @lstm_tagger_kernel(%arg0: i32, %arg1: memref<16x8xi32, #tpu.memory_space<smem>>, %arg2: memref<8x8x64xf32, #tpu.memory_space<vmem>>, %arg3: memref<50x1x64xf32, #tpu.memory_space<vmem>>, %arg4: memref<128x512xf32, #tpu.memory_space<vmem>>, %arg5: memref<32x512xf32, #tpu.memory_space<vmem>>, %arg6: memref<1x512xf32, #tpu.memory_space<vmem>>, %arg7: memref<32x128xf32, #tpu.memory_space<vmem>>, %arg8: memref<1x128xf32, #tpu.memory_space<vmem>>, %arg9: memref<8x8x128xf32, #tpu.memory_space<vmem>>, %arg10: memref<64x128xf32, #tpu.memory_space<vmem>>, %arg11: memref<64x512xf32, #tpu.memory_space<vmem>>, %arg12: memref<64x32xf32, #tpu.memory_space<vmem>>) attributes {dimension_semantics = [#tpu.dimension_semantics<parallel>], iteration_bounds = array<i64: 2>, scalar_prefetch = 1 : i64, scratch_operands = 3 : i64, tpu.core_type = #tpu.core_type<tc>, window_params = [{transform_indices = @transform_0, window_bounds = array<i64: 8, 8, 64>}, {pipeline_mode = #tpu.pipeline_mode<synchronous>, transform_indices = @transform_1, window_bounds = array<i64: 50, 1, 64>}, {pipeline_mode = #tpu.pipeline_mode<synchronous>, transform_indices = @transform_2, window_bounds = array<i64: 128, 512>}, {pipeline_mode = #tpu.pipeline_mode<synchronous>, transform_indices = @transform_3, window_bounds = array<i64: 32, 512>}, {pipeline_mode = #tpu.pipeline_mode<synchronous>, transform_indices = @transform_4, window_bounds = array<i64: 1, 512>}, {pipeline_mode = #tpu.pipeline_mode<synchronous>, transform_indices = @transform_5, window_bounds = array<i64: 32, 128>}, {pipeline_mode = #tpu.pipeline_mode<synchronous>, transform_indices = @transform_6, window_bounds = array<i64: 1, 128>}, {transform_indices = @transform_7, window_bounds = array<i64: 8, 8, 128>}]} {
    %c0 = arith.constant 0 : index
    %c0_0 = arith.constant 0 : index
    %c0_1 = arith.constant 0 : index
    %0 = vector.load %arg2[%c0, %c0_0, %c0_1] : memref<8x8x64xf32, #tpu.memory_space<vmem>>, vector<8x8x64xf32>
    %1 = vector.shape_cast %0 : vector<8x8x64xf32> to vector<64x64xf32>
    %c0_2 = arith.constant 0 : index
    %c64 = arith.constant 64 : index
    %2 = vector.load %arg10[%c0_2, %c64] : memref<64x128xf32, #tpu.memory_space<vmem>>, vector<64x64xf32>
    tpu.vector_store %arg10[%c0_2, %c64], %1 {strides = array<i32>} : memref<64x128xf32, #tpu.memory_space<vmem>>, vector<64x64xf32>,
    %c8_i32 = arith.constant 8 : i32
    %3 = arith.muli %arg0, %c8_i32 : i32
    %c0_i32 = arith.constant 0 : i32
    %4 = arith.addi %3, %c0_i32 : i32
    %5 = arith.index_cast %4 : i32 to index
    %c0_3 = arith.constant 0 : index
    %6 = memref.load %arg1[%5, %c0_3] : memref<16x8xi32, #tpu.memory_space<smem>>
    %7 = arith.index_cast %6 : i32 to index
    %c0_4 = arith.constant 0 : index
    %c0_5 = arith.constant 0 : index
    %8 = vector.load %arg3[%7, %c0_4, %c0_5] : memref<50x1x64xf32, #tpu.memory_space<vmem>>, vector<1x1x64xf32>
    %9 = vector.shape_cast %8 : vector<1x1x64xf32> to vector<1x64xf32>
    %c0_6 = arith.constant 0 : index
    %c0_7 = arith.constant 0 : index
    %10 = vector.load %arg10[%c0_6, %c0_7] : memref<64x128xf32, #tpu.memory_space<vmem>>, vector<1x64xf32>
    tpu.vector_store %arg10[%c0_6, %c0_7], %9 {strides = array<i32>} : memref<64x128xf32, #tpu.memory_space<vmem>>, vector<1x64xf32>,
    %c8_i32_8 = arith.constant 8 : i32
    %11 = arith.muli %arg0, %c8_i32_8 : i32
    %c1_i32 = arith.constant 1 : i32
    %12 = arith.addi %11, %c1_i32 : i32
    %13 = arith.index_cast %12 : i32 to index
    %c0_9 = arith.constant 0 : index
    %14 = memref.load %arg1[%13, %c0_9] : memref<16x8xi32, #tpu.memory_space<smem>>
    %15 = arith.index_cast %14 : i32 to index
    %c0_10 = arith.constant 0 : index
    %c0_11 = arith.constant 0 : index
    %16 = vector.load %arg3[%15, %c0_10, %c0_11] : memref<50x1x64xf32, #tpu.memory_space<vmem>>, vector<1x1x64xf32>
    %17 = vector.shape_cast %16 : vector<1x1x64xf32> to vector<1x64xf32>
    %c1 = arith.constant 1 : index
    %c0_12 = arith.constant 0 : index
    %18 = vector.load %arg10[%c1, %c0_12] : memref<64x128xf32, #tpu.memory_space<vmem>>, vector<1x64xf32>
    tpu.vector_store %arg10[%c1, %c0_12], %17 {strides = array<i32>} : memref<64x128xf32, #tpu.memory_space<vmem>>, vector<1x64xf32>,
    %c8_i32_13 = arith.constant 8 : i32
    %19 = arith.muli %arg0, %c8_i32_13 : i32
    %c2_i32 = arith.constant 2 : i32
    %20 = arith.addi %19, %c2_i32 : i32
    %21 = arith.index_cast %20 : i32 to index
    %c0_14 = arith.constant 0 : index
    %22 = memref.load %arg1[%21, %c0_14] : memref<16x8xi32, #tpu.memory_space<smem>>
    %23 = arith.index_cast %22 : i32 to index
    %c0_15 = arith.constant 0 : index
    %c0_16 = arith.constant 0 : index
    %24 = vector.load %arg3[%23, %c0_15, %c0_16] : memref<50x1x64xf32, #tpu.memory_space<vmem>>, vector<1x1x64xf32>
    %25 = vector.shape_cast %24 : vector<1x1x64xf32> to vector<1x64xf32>
    %c2 = arith.constant 2 : index
    %c0_17 = arith.constant 0 : index
    %26 = vector.load %arg10[%c2, %c0_17] : memref<64x128xf32, #tpu.memory_space<vmem>>, vector<1x64xf32>
    tpu.vector_store %arg10[%c2, %c0_17], %25 {strides = array<i32>} : memref<64x128xf32, #tpu.memory_space<vmem>>, vector<1x64xf32>,
    %c8_i32_18 = arith.constant 8 : i32
    %27 = arith.muli %arg0, %c8_i32_18 : i32
    %c3_i32 = arith.constant 3 : i32
    %28 = arith.addi %27, %c3_i32 : i32
    %29 = arith.index_cast %28 : i32 to index
    %c0_19 = arith.constant 0 : index
    %30 = memref.load %arg1[%29, %c0_19] : memref<16x8xi32, #tpu.memory_space<smem>>
    %31 = arith.index_cast %30 : i32 to index
    %c0_20 = arith.constant 0 : index
    %c0_21 = arith.constant 0 : index
    %32 = vector.load %arg3[%31, %c0_20, %c0_21] : memref<50x1x64xf32, #tpu.memory_space<vmem>>, vector<1x1x64xf32>
    %33 = vector.shape_cast %32 : vector<1x1x64xf32> to vector<1x64xf32>
    %c3 = arith.constant 3 : index
    %c0_22 = arith.constant 0 : index
    %34 = vector.load %arg10[%c3, %c0_22] : memref<64x128xf32, #tpu.memory_space<vmem>>, vector<1x64xf32>
    tpu.vector_store %arg10[%c3, %c0_22], %33 {strides = array<i32>} : memref<64x128xf32, #tpu.memory_space<vmem>>, vector<1x64xf32>,
    %c8_i32_23 = arith.constant 8 : i32
    %35 = arith.muli %arg0, %c8_i32_23 : i32
    %c4_i32 = arith.constant 4 : i32
    %36 = arith.addi %35, %c4_i32 : i32
    %37 = arith.index_cast %36 : i32 to index
    %c0_24 = arith.constant 0 : index
    %38 = memref.load %arg1[%37, %c0_24] : memref<16x8xi32, #tpu.memory_space<smem>>
    %39 = arith.index_cast %38 : i32 to index
    %c0_25 = arith.constant 0 : index
    %c0_26 = arith.constant 0 : index
    %40 = vector.load %arg3[%39, %c0_25, %c0_26] : memref<50x1x64xf32, #tpu.memory_space<vmem>>, vector<1x1x64xf32>
    %41 = vector.shape_cast %40 : vector<1x1x64xf32> to vector<1x64xf32>
    %c4 = arith.constant 4 : index
    %c0_27 = arith.constant 0 : index
    %42 = vector.load %arg10[%c4, %c0_27] : memref<64x128xf32, #tpu.memory_space<vmem>>, vector<1x64xf32>
    tpu.vector_store %arg10[%c4, %c0_27], %41 {strides = array<i32>} : memref<64x128xf32, #tpu.memory_space<vmem>>, vector<1x64xf32>,
    %c8_i32_28 = arith.constant 8 : i32
    %43 = arith.muli %arg0, %c8_i32_28 : i32
    %c5_i32 = arith.constant 5 : i32
    %44 = arith.addi %43, %c5_i32 : i32
    %45 = arith.index_cast %44 : i32 to index
    %c0_29 = arith.constant 0 : index
    %46 = memref.load %arg1[%45, %c0_29] : memref<16x8xi32, #tpu.memory_space<smem>>
    %47 = arith.index_cast %46 : i32 to index
    %c0_30 = arith.constant 0 : index
    %c0_31 = arith.constant 0 : index
    %48 = vector.load %arg3[%47, %c0_30, %c0_31] : memref<50x1x64xf32, #tpu.memory_space<vmem>>, vector<1x1x64xf32>
    %49 = vector.shape_cast %48 : vector<1x1x64xf32> to vector<1x64xf32>
    %c5 = arith.constant 5 : index
    %c0_32 = arith.constant 0 : index
    %50 = vector.load %arg10[%c5, %c0_32] : memref<64x128xf32, #tpu.memory_space<vmem>>, vector<1x64xf32>
    tpu.vector_store %arg10[%c5, %c0_32], %49 {strides = array<i32>} : memref<64x128xf32, #tpu.memory_space<vmem>>, vector<1x64xf32>,
    %c8_i32_33 = arith.constant 8 : i32
    %51 = arith.muli %arg0, %c8_i32_33 : i32
    %c6_i32 = arith.constant 6 : i32
    %52 = arith.addi %51, %c6_i32 : i32
    %53 = arith.index_cast %52 : i32 to index
    %c0_34 = arith.constant 0 : index
    %54 = memref.load %arg1[%53, %c0_34] : memref<16x8xi32, #tpu.memory_space<smem>>
    %55 = arith.index_cast %54 : i32 to index
    %c0_35 = arith.constant 0 : index
    %c0_36 = arith.constant 0 : index
    %56 = vector.load %arg3[%55, %c0_35, %c0_36] : memref<50x1x64xf32, #tpu.memory_space<vmem>>, vector<1x1x64xf32>
    %57 = vector.shape_cast %56 : vector<1x1x64xf32> to vector<1x64xf32>
    %c6 = arith.constant 6 : index
    %c0_37 = arith.constant 0 : index
    %58 = vector.load %arg10[%c6, %c0_37] : memref<64x128xf32, #tpu.memory_space<vmem>>, vector<1x64xf32>
    tpu.vector_store %arg10[%c6, %c0_37], %57 {strides = array<i32>} : memref<64x128xf32, #tpu.memory_space<vmem>>, vector<1x64xf32>,
    %c8_i32_38 = arith.constant 8 : i32
    %59 = arith.muli %arg0, %c8_i32_38 : i32
    %c7_i32 = arith.constant 7 : i32
    %60 = arith.addi %59, %c7_i32 : i32
    %61 = arith.index_cast %60 : i32 to index
    %c0_39 = arith.constant 0 : index
    %62 = memref.load %arg1[%61, %c0_39] : memref<16x8xi32, #tpu.memory_space<smem>>
    %63 = arith.index_cast %62 : i32 to index
    %c0_40 = arith.constant 0 : index
    %c0_41 = arith.constant 0 : index
    %64 = vector.load %arg3[%63, %c0_40, %c0_41] : memref<50x1x64xf32, #tpu.memory_space<vmem>>, vector<1x1x64xf32>
    %65 = vector.shape_cast %64 : vector<1x1x64xf32> to vector<1x64xf32>
    %c7 = arith.constant 7 : index
    %c0_42 = arith.constant 0 : index
    %66 = vector.load %arg10[%c7, %c0_42] : memref<64x128xf32, #tpu.memory_space<vmem>>, vector<1x64xf32>
    tpu.vector_store %arg10[%c7, %c0_42], %65 {strides = array<i32>} : memref<64x128xf32, #tpu.memory_space<vmem>>, vector<1x64xf32>,
    %c8_i32_43 = arith.constant 8 : i32
    %67 = arith.muli %arg0, %c8_i32_43 : i32
    %c0_i32_44 = arith.constant 0 : i32
    %68 = arith.addi %67, %c0_i32_44 : i32
    %69 = arith.index_cast %68 : i32 to index
    %c1_45 = arith.constant 1 : index
    %70 = memref.load %arg1[%69, %c1_45] : memref<16x8xi32, #tpu.memory_space<smem>>
    %71 = arith.index_cast %70 : i32 to index
    %c0_46 = arith.constant 0 : index
    %c0_47 = arith.constant 0 : index
    %72 = vector.load %arg3[%71, %c0_46, %c0_47] : memref<50x1x64xf32, #tpu.memory_space<vmem>>, vector<1x1x64xf32>
    %73 = vector.shape_cast %72 : vector<1x1x64xf32> to vector<1x64xf32>
    %c8 = arith.constant 8 : index
    %c0_48 = arith.constant 0 : index
    %74 = vector.load %arg10[%c8, %c0_48] : memref<64x128xf32, #tpu.memory_space<vmem>>, vector<1x64xf32>
    tpu.vector_store %arg10[%c8, %c0_48], %73 {strides = array<i32>} : memref<64x128xf32, #tpu.memory_space<vmem>>, vector<1x64xf32>,
    %c8_i32_49 = arith.constant 8 : i32
    %75 = arith.muli %arg0, %c8_i32_49 : i32
    %c1_i32_50 = arith.constant 1 : i32
    %76 = arith.addi %75, %c1_i32_50 : i32
    %77 = arith.index_cast %76 : i32 to index
    %c1_51 = arith.constant 1 : index
    %78 = memref.load %arg1[%77, %c1_51] : memref<16x8xi32, #tpu.memory_space<smem>>
    %79 = arith.index_cast %78 : i32 to index
    %c0_52 = arith.constant 0 : index
    %c0_53 = arith.constant 0 : index
    %80 = vector.load %arg3[%79, %c0_52, %c0_53] : memref<50x1x64xf32, #tpu.memory_space<vmem>>, vector<1x1x64xf32>
    %81 = vector.shape_cast %80 : vector<1x1x64xf32> to vector<1x64xf32>
    %c9 = arith.constant 9 : index
    %c0_54 = arith.constant 0 : index
    %82 = vector.load %arg10[%c9, %c0_54] : memref<64x128xf32, #tpu.memory_space<vmem>>, vector<1x64xf32>
    tpu.vector_store %arg10[%c9, %c0_54], %81 {strides = array<i32>} : memref<64x128xf32, #tpu.memory_space<vmem>>, vector<1x64xf32>,
    %c8_i32_55 = arith.constant 8 : i32
    %83 = arith.muli %arg0, %c8_i32_55 : i32
    %c2_i32_56 = arith.constant 2 : i32
    %84 = arith.addi %83, %c2_i32_56 : i32
    %85 = arith.index_cast %84 : i32 to index
    %c1_57 = arith.constant 1 : index
    %86 = memref.load %arg1[%85, %c1_57] : memref<16x8xi32, #tpu.memory_space<smem>>
    %87 = arith.index_cast %86 : i32 to index
    %c0_58 = arith.constant 0 : index
    %c0_59 = arith.constant 0 : index
    %88 = vector.load %arg3[%87, %c0_58, %c0_59] : memref<50x1x64xf32, #tpu.memory_space<vmem>>, vector<1x1x64xf32>
    %89 = vector.shape_cast %88 : vector<1x1x64xf32> to vector<1x64xf32>
    %c10 = arith.constant 10 : index
    %c0_60 = arith.constant 0 : index
    %90 = vector.load %arg10[%c10, %c0_60] : memref<64x128xf32, #tpu.memory_space<vmem>>, vector<1x64xf32>
    tpu.vector_store %arg10[%c10, %c0_60], %89 {strides = array<i32>} : memref<64x128xf32, #tpu.memory_space<vmem>>, vector<1x64xf32>,
    %c8_i32_61 = arith.constant 8 : i32
    %91 = arith.muli %arg0, %c8_i32_61 : i32
    %c3_i32_62 = arith.constant 3 : i32
    %92 = arith.addi %91, %c3_i32_62 : i32
    %93 = arith.index_cast %92 : i32 to index
    %c1_63 = arith.constant 1 : index
    %94 = memref.load %arg1[%93, %c1_63] : memref<16x8xi32, #tpu.memory_space<smem>>
    %95 = arith.index_cast %94 : i32 to index
    %c0_64 = arith.constant 0 : index
    %c0_65 = arith.constant 0 : index
    %96 = vector.load %arg3[%95, %c0_64, %c0_65] : memref<50x1x64xf32, #tpu.memory_space<vmem>>, vector<1x1x64xf32>
    %97 = vector.shape_cast %96 : vector<1x1x64xf32> to vector<1x64xf32>
    %c11 = arith.constant 11 : index
    %c0_66 = arith.constant 0 : index
    %98 = vector.load %arg10[%c11, %c0_66] : memref<64x128xf32, #tpu.memory_space<vmem>>, vector<1x64xf32>
    tpu.vector_store %arg10[%c11, %c0_66], %97 {strides = array<i32>} : memref<64x128xf32, #tpu.memory_space<vmem>>, vector<1x64xf32>,
    %c8_i32_67 = arith.constant 8 : i32
    %99 = arith.muli %arg0, %c8_i32_67 : i32
    %c4_i32_68 = arith.constant 4 : i32
    %100 = arith.addi %99, %c4_i32_68 : i32
    %101 = arith.index_cast %100 : i32 to index
    %c1_69 = arith.constant 1 : index
    %102 = memref.load %arg1[%101, %c1_69] : memref<16x8xi32, #tpu.memory_space<smem>>
    %103 = arith.index_cast %102 : i32 to index
    %c0_70 = arith.constant 0 : index
    %c0_71 = arith.constant 0 : index
    %104 = vector.load %arg3[%103, %c0_70, %c0_71] : memref<50x1x64xf32, #tpu.memory_space<vmem>>, vector<1x1x64xf32>
    %105 = vector.shape_cast %104 : vector<1x1x64xf32> to vector<1x64xf32>
    %c12 = arith.constant 12 : index
    %c0_72 = arith.constant 0 : index
    %106 = vector.load %arg10[%c12, %c0_72] : memref<64x128xf32, #tpu.memory_space<vmem>>, vector<1x64xf32>
    tpu.vector_store %arg10[%c12, %c0_72], %105 {strides = array<i32>} : memref<64x128xf32, #tpu.memory_space<vmem>>, vector<1x64xf32>,
    %c8_i32_73 = arith.constant 8 : i32
    %107 = arith.muli %arg0, %c8_i32_73 : i32
    %c5_i32_74 = arith.constant 5 : i32
    %108 = arith.addi %107, %c5_i32_74 : i32
    %109 = arith.index_cast %108 : i32 to index
    %c1_75 = arith.constant 1 : index
    %110 = memref.load %arg1[%109, %c1_75] : memref<16x8xi32, #tpu.memory_space<smem>>
    %111 = arith.index_cast %110 : i32 to index
    %c0_76 = arith.constant 0 : index
    %c0_77 = arith.constant 0 : index
    %112 = vector.load %arg3[%111, %c0_76, %c0_77] : memref<50x1x64xf32, #tpu.memory_space<vmem>>, vector<1x1x64xf32>
    %113 = vector.shape_cast %112 : vector<1x1x64xf32> to vector<1x64xf32>
    %c13 = arith.constant 13 : index
    %c0_78 = arith.constant 0 : index
    %114 = vector.load %arg10[%c13, %c0_78] : memref<64x128xf32, #tpu.memory_space<vmem>>, vector<1x64xf32>
    tpu.vector_store %arg10[%c13, %c0_78], %113 {strides = array<i32>} : memref<64x128xf32, #tpu.memory_space<vmem>>, vector<1x64xf32>,
    %c8_i32_79 = arith.constant 8 : i32
    %115 = arith.muli %arg0, %c8_i32_79 : i32
    %c6_i32_80 = arith.constant 6 : i32
    %116 = arith.addi %115, %c6_i32_80 : i32
    %117 = arith.index_cast %116 : i32 to index
    %c1_81 = arith.constant 1 : index
    %118 = memref.load %arg1[%117, %c1_81] : memref<16x8xi32, #tpu.memory_space<smem>>
    %119 = arith.index_cast %118 : i32 to index
    %c0_82 = arith.constant 0 : index
    %c0_83 = arith.constant 0 : index
    %120 = vector.load %arg3[%119, %c0_82, %c0_83] : memref<50x1x64xf32, #tpu.memory_space<vmem>>, vector<1x1x64xf32>
    %121 = vector.shape_cast %120 : vector<1x1x64xf32> to vector<1x64xf32>
    %c14 = arith.constant 14 : index
    %c0_84 = arith.constant 0 : index
    %122 = vector.load %arg10[%c14, %c0_84] : memref<64x128xf32, #tpu.memory_space<vmem>>, vector<1x64xf32>
    tpu.vector_store %arg10[%c14, %c0_84], %121 {strides = array<i32>} : memref<64x128xf32, #tpu.memory_space<vmem>>, vector<1x64xf32>,
    %c8_i32_85 = arith.constant 8 : i32
    %123 = arith.muli %arg0, %c8_i32_85 : i32
    %c7_i32_86 = arith.constant 7 : i32
    %124 = arith.addi %123, %c7_i32_86 : i32
    %125 = arith.index_cast %124 : i32 to index
    %c1_87 = arith.constant 1 : index
    %126 = memref.load %arg1[%125, %c1_87] : memref<16x8xi32, #tpu.memory_space<smem>>
    %127 = arith.index_cast %126 : i32 to index
    %c0_88 = arith.constant 0 : index
    %c0_89 = arith.constant 0 : index
    %128 = vector.load %arg3[%127, %c0_88, %c0_89] : memref<50x1x64xf32, #tpu.memory_space<vmem>>, vector<1x1x64xf32>
    %129 = vector.shape_cast %128 : vector<1x1x64xf32> to vector<1x64xf32>
    %c15 = arith.constant 15 : index
    %c0_90 = arith.constant 0 : index
    %130 = vector.load %arg10[%c15, %c0_90] : memref<64x128xf32, #tpu.memory_space<vmem>>, vector<1x64xf32>
    tpu.vector_store %arg10[%c15, %c0_90], %129 {strides = array<i32>} : memref<64x128xf32, #tpu.memory_space<vmem>>, vector<1x64xf32>,
    %c8_i32_91 = arith.constant 8 : i32
    %131 = arith.muli %arg0, %c8_i32_91 : i32
    %c0_i32_92 = arith.constant 0 : i32
    %132 = arith.addi %131, %c0_i32_92 : i32
    %133 = arith.index_cast %132 : i32 to index
    %c2_93 = arith.constant 2 : index
    %134 = memref.load %arg1[%133, %c2_93] : memref<16x8xi32, #tpu.memory_space<smem>>
    %135 = arith.index_cast %134 : i32 to index
    %c0_94 = arith.constant 0 : index
    %c0_95 = arith.constant 0 : index
    %136 = vector.load %arg3[%135, %c0_94, %c0_95] : memref<50x1x64xf32, #tpu.memory_space<vmem>>, vector<1x1x64xf32>
    %137 = vector.shape_cast %136 : vector<1x1x64xf32> to vector<1x64xf32>
    %c16 = arith.constant 16 : index
    %c0_96 = arith.constant 0 : index
    %138 = vector.load %arg10[%c16, %c0_96] : memref<64x128xf32, #tpu.memory_space<vmem>>, vector<1x64xf32>
    tpu.vector_store %arg10[%c16, %c0_96], %137 {strides = array<i32>} : memref<64x128xf32, #tpu.memory_space<vmem>>, vector<1x64xf32>,
    %c8_i32_97 = arith.constant 8 : i32
    %139 = arith.muli %arg0, %c8_i32_97 : i32
    %c1_i32_98 = arith.constant 1 : i32
    %140 = arith.addi %139, %c1_i32_98 : i32
    %141 = arith.index_cast %140 : i32 to index
    %c2_99 = arith.constant 2 : index
    %142 = memref.load %arg1[%141, %c2_99] : memref<16x8xi32, #tpu.memory_space<smem>>
    %143 = arith.index_cast %142 : i32 to index
    %c0_100 = arith.constant 0 : index
    %c0_101 = arith.constant 0 : index
    %144 = vector.load %arg3[%143, %c0_100, %c0_101] : memref<50x1x64xf32, #tpu.memory_space<vmem>>, vector<1x1x64xf32>
    %145 = vector.shape_cast %144 : vector<1x1x64xf32> to vector<1x64xf32>
    %c17 = arith.constant 17 : index
    %c0_102 = arith.constant 0 : index
    %146 = vector.load %arg10[%c17, %c0_102] : memref<64x128xf32, #tpu.memory_space<vmem>>, vector<1x64xf32>
    tpu.vector_store %arg10[%c17, %c0_102], %145 {strides = array<i32>} : memref<64x128xf32, #tpu.memory_space<vmem>>, vector<1x64xf32>,
    %c8_i32_103 = arith.constant 8 : i32
    %147 = arith.muli %arg0, %c8_i32_103 : i32
    %c2_i32_104 = arith.constant 2 : i32
    %148 = arith.addi %147, %c2_i32_104 : i32
    %149 = arith.index_cast %148 : i32 to index
    %c2_105 = arith.constant 2 : index
    %150 = memref.load %arg1[%149, %c2_105] : memref<16x8xi32, #tpu.memory_space<smem>>
    %151 = arith.index_cast %150 : i32 to index
    %c0_106 = arith.constant 0 : index
    %c0_107 = arith.constant 0 : index
    %152 = vector.load %arg3[%151, %c0_106, %c0_107] : memref<50x1x64xf32, #tpu.memory_space<vmem>>, vector<1x1x64xf32>
    %153 = vector.shape_cast %152 : vector<1x1x64xf32> to vector<1x64xf32>
    %c18 = arith.constant 18 : index
    %c0_108 = arith.constant 0 : index
    %154 = vector.load %arg10[%c18, %c0_108] : memref<64x128xf32, #tpu.memory_space<vmem>>, vector<1x64xf32>
    tpu.vector_store %arg10[%c18, %c0_108], %153 {strides = array<i32>} : memref<64x128xf32, #tpu.memory_space<vmem>>, vector<1x64xf32>,
    %c8_i32_109 = arith.constant 8 : i32
    %155 = arith.muli %arg0, %c8_i32_109 : i32
    %c3_i32_110 = arith.constant 3 : i32
    %156 = arith.addi %155, %c3_i32_110 : i32
    %157 = arith.index_cast %156 : i32 to index
    %c2_111 = arith.constant 2 : index
    %158 = memref.load %arg1[%157, %c2_111] : memref<16x8xi32, #tpu.memory_space<smem>>
    %159 = arith.index_cast %158 : i32 to index
    %c0_112 = arith.constant 0 : index
    %c0_113 = arith.constant 0 : index
    %160 = vector.load %arg3[%159, %c0_112, %c0_113] : memref<50x1x64xf32, #tpu.memory_space<vmem>>, vector<1x1x64xf32>
    %161 = vector.shape_cast %160 : vector<1x1x64xf32> to vector<1x64xf32>
    %c19 = arith.constant 19 : index
    %c0_114 = arith.constant 0 : index
    %162 = vector.load %arg10[%c19, %c0_114] : memref<64x128xf32, #tpu.memory_space<vmem>>, vector<1x64xf32>
    tpu.vector_store %arg10[%c19, %c0_114], %161 {strides = array<i32>} : memref<64x128xf32, #tpu.memory_space<vmem>>, vector<1x64xf32>,
    %c8_i32_115 = arith.constant 8 : i32
    %163 = arith.muli %arg0, %c8_i32_115 : i32
    %c4_i32_116 = arith.constant 4 : i32
    %164 = arith.addi %163, %c4_i32_116 : i32
    %165 = arith.index_cast %164 : i32 to index
    %c2_117 = arith.constant 2 : index
    %166 = memref.load %arg1[%165, %c2_117] : memref<16x8xi32, #tpu.memory_space<smem>>
    %167 = arith.index_cast %166 : i32 to index
    %c0_118 = arith.constant 0 : index
    %c0_119 = arith.constant 0 : index
    %168 = vector.load %arg3[%167, %c0_118, %c0_119] : memref<50x1x64xf32, #tpu.memory_space<vmem>>, vector<1x1x64xf32>
    %169 = vector.shape_cast %168 : vector<1x1x64xf32> to vector<1x64xf32>
    %c20 = arith.constant 20 : index
    %c0_120 = arith.constant 0 : index
    %170 = vector.load %arg10[%c20, %c0_120] : memref<64x128xf32, #tpu.memory_space<vmem>>, vector<1x64xf32>
    tpu.vector_store %arg10[%c20, %c0_120], %169 {strides = array<i32>} : memref<64x128xf32, #tpu.memory_space<vmem>>, vector<1x64xf32>,
    %c8_i32_121 = arith.constant 8 : i32
    %171 = arith.muli %arg0, %c8_i32_121 : i32
    %c5_i32_122 = arith.constant 5 : i32
    %172 = arith.addi %171, %c5_i32_122 : i32
    %173 = arith.index_cast %172 : i32 to index
    %c2_123 = arith.constant 2 : index
    %174 = memref.load %arg1[%173, %c2_123] : memref<16x8xi32, #tpu.memory_space<smem>>
    %175 = arith.index_cast %174 : i32 to index
    %c0_124 = arith.constant 0 : index
    %c0_125 = arith.constant 0 : index
    %176 = vector.load %arg3[%175, %c0_124, %c0_125] : memref<50x1x64xf32, #tpu.memory_space<vmem>>, vector<1x1x64xf32>
    %177 = vector.shape_cast %176 : vector<1x1x64xf32> to vector<1x64xf32>
    %c21 = arith.constant 21 : index
    %c0_126 = arith.constant 0 : index
    %178 = vector.load %arg10[%c21, %c0_126] : memref<64x128xf32, #tpu.memory_space<vmem>>, vector<1x64xf32>
    tpu.vector_store %arg10[%c21, %c0_126], %177 {strides = array<i32>} : memref<64x128xf32, #tpu.memory_space<vmem>>, vector<1x64xf32>,
    %c8_i32_127 = arith.constant 8 : i32
    %179 = arith.muli %arg0, %c8_i32_127 : i32
    %c6_i32_128 = arith.constant 6 : i32
    %180 = arith.addi %179, %c6_i32_128 : i32
    %181 = arith.index_cast %180 : i32 to index
    %c2_129 = arith.constant 2 : index
    %182 = memref.load %arg1[%181, %c2_129] : memref<16x8xi32, #tpu.memory_space<smem>>
    %183 = arith.index_cast %182 : i32 to index
    %c0_130 = arith.constant 0 : index
    %c0_131 = arith.constant 0 : index
    %184 = vector.load %arg3[%183, %c0_130, %c0_131] : memref<50x1x64xf32, #tpu.memory_space<vmem>>, vector<1x1x64xf32>
    %185 = vector.shape_cast %184 : vector<1x1x64xf32> to vector<1x64xf32>
    %c22 = arith.constant 22 : index
    %c0_132 = arith.constant 0 : index
    %186 = vector.load %arg10[%c22, %c0_132] : memref<64x128xf32, #tpu.memory_space<vmem>>, vector<1x64xf32>
    tpu.vector_store %arg10[%c22, %c0_132], %185 {strides = array<i32>} : memref<64x128xf32, #tpu.memory_space<vmem>>, vector<1x64xf32>,
    %c8_i32_133 = arith.constant 8 : i32
    %187 = arith.muli %arg0, %c8_i32_133 : i32
    %c7_i32_134 = arith.constant 7 : i32
    %188 = arith.addi %187, %c7_i32_134 : i32
    %189 = arith.index_cast %188 : i32 to index
    %c2_135 = arith.constant 2 : index
    %190 = memref.load %arg1[%189, %c2_135] : memref<16x8xi32, #tpu.memory_space<smem>>
    %191 = arith.index_cast %190 : i32 to index
    %c0_136 = arith.constant 0 : index
    %c0_137 = arith.constant 0 : index
    %192 = vector.load %arg3[%191, %c0_136, %c0_137] : memref<50x1x64xf32, #tpu.memory_space<vmem>>, vector<1x1x64xf32>
    %193 = vector.shape_cast %192 : vector<1x1x64xf32> to vector<1x64xf32>
    %c23 = arith.constant 23 : index
    %c0_138 = arith.constant 0 : index
    %194 = vector.load %arg10[%c23, %c0_138] : memref<64x128xf32, #tpu.memory_space<vmem>>, vector<1x64xf32>
    tpu.vector_store %arg10[%c23, %c0_138], %193 {strides = array<i32>} : memref<64x128xf32, #tpu.memory_space<vmem>>, vector<1x64xf32>,
    %c8_i32_139 = arith.constant 8 : i32
    %195 = arith.muli %arg0, %c8_i32_139 : i32
    %c0_i32_140 = arith.constant 0 : i32
    %196 = arith.addi %195, %c0_i32_140 : i32
    %197 = arith.index_cast %196 : i32 to index
    %c3_141 = arith.constant 3 : index
    %198 = memref.load %arg1[%197, %c3_141] : memref<16x8xi32, #tpu.memory_space<smem>>
    %199 = arith.index_cast %198 : i32 to index
    %c0_142 = arith.constant 0 : index
    %c0_143 = arith.constant 0 : index
    %200 = vector.load %arg3[%199, %c0_142, %c0_143] : memref<50x1x64xf32, #tpu.memory_space<vmem>>, vector<1x1x64xf32>
    %201 = vector.shape_cast %200 : vector<1x1x64xf32> to vector<1x64xf32>
    %c24 = arith.constant 24 : index
    %c0_144 = arith.constant 0 : index
    %202 = vector.load %arg10[%c24, %c0_144] : memref<64x128xf32, #tpu.memory_space<vmem>>, vector<1x64xf32>
    tpu.vector_store %arg10[%c24, %c0_144], %201 {strides = array<i32>} : memref<64x128xf32, #tpu.memory_space<vmem>>, vector<1x64xf32>,
    %c8_i32_145 = arith.constant 8 : i32
    %203 = arith.muli %arg0, %c8_i32_145 : i32
    %c1_i32_146 = arith.constant 1 : i32
    %204 = arith.addi %203, %c1_i32_146 : i32
    %205 = arith.index_cast %204 : i32 to index
    %c3_147 = arith.constant 3 : index
    %206 = memref.load %arg1[%205, %c3_147] : memref<16x8xi32, #tpu.memory_space<smem>>
    %207 = arith.index_cast %206 : i32 to index
    %c0_148 = arith.constant 0 : index
    %c0_149 = arith.constant 0 : index
    %208 = vector.load %arg3[%207, %c0_148, %c0_149] : memref<50x1x64xf32, #tpu.memory_space<vmem>>, vector<1x1x64xf32>
    %209 = vector.shape_cast %208 : vector<1x1x64xf32> to vector<1x64xf32>
    %c25 = arith.constant 25 : index
    %c0_150 = arith.constant 0 : index
    %210 = vector.load %arg10[%c25, %c0_150] : memref<64x128xf32, #tpu.memory_space<vmem>>, vector<1x64xf32>
    tpu.vector_store %arg10[%c25, %c0_150], %209 {strides = array<i32>} : memref<64x128xf32, #tpu.memory_space<vmem>>, vector<1x64xf32>,
    %c8_i32_151 = arith.constant 8 : i32
    %211 = arith.muli %arg0, %c8_i32_151 : i32
    %c2_i32_152 = arith.constant 2 : i32
    %212 = arith.addi %211, %c2_i32_152 : i32
    %213 = arith.index_cast %212 : i32 to index
    %c3_153 = arith.constant 3 : index
    %214 = memref.load %arg1[%213, %c3_153] : memref<16x8xi32, #tpu.memory_space<smem>>
    %215 = arith.index_cast %214 : i32 to index
    %c0_154 = arith.constant 0 : index
    %c0_155 = arith.constant 0 : index
    %216 = vector.load %arg3[%215, %c0_154, %c0_155] : memref<50x1x64xf32, #tpu.memory_space<vmem>>, vector<1x1x64xf32>
    %217 = vector.shape_cast %216 : vector<1x1x64xf32> to vector<1x64xf32>
    %c26 = arith.constant 26 : index
    %c0_156 = arith.constant 0 : index
    %218 = vector.load %arg10[%c26, %c0_156] : memref<64x128xf32, #tpu.memory_space<vmem>>, vector<1x64xf32>
    tpu.vector_store %arg10[%c26, %c0_156], %217 {strides = array<i32>} : memref<64x128xf32, #tpu.memory_space<vmem>>, vector<1x64xf32>,
    %c8_i32_157 = arith.constant 8 : i32
    %219 = arith.muli %arg0, %c8_i32_157 : i32
    %c3_i32_158 = arith.constant 3 : i32
    %220 = arith.addi %219, %c3_i32_158 : i32
    %221 = arith.index_cast %220 : i32 to index
    %c3_159 = arith.constant 3 : index
    %222 = memref.load %arg1[%221, %c3_159] : memref<16x8xi32, #tpu.memory_space<smem>>
    %223 = arith.index_cast %222 : i32 to index
    %c0_160 = arith.constant 0 : index
    %c0_161 = arith.constant 0 : index
    %224 = vector.load %arg3[%223, %c0_160, %c0_161] : memref<50x1x64xf32, #tpu.memory_space<vmem>>, vector<1x1x64xf32>
    %225 = vector.shape_cast %224 : vector<1x1x64xf32> to vector<1x64xf32>
    %c27 = arith.constant 27 : index
    %c0_162 = arith.constant 0 : index
    %226 = vector.load %arg10[%c27, %c0_162] : memref<64x128xf32, #tpu.memory_space<vmem>>, vector<1x64xf32>
    tpu.vector_store %arg10[%c27, %c0_162], %225 {strides = array<i32>} : memref<64x128xf32, #tpu.memory_space<vmem>>, vector<1x64xf32>,
    %c8_i32_163 = arith.constant 8 : i32
    %227 = arith.muli %arg0, %c8_i32_163 : i32
    %c4_i32_164 = arith.constant 4 : i32
    %228 = arith.addi %227, %c4_i32_164 : i32
    %229 = arith.index_cast %228 : i32 to index
    %c3_165 = arith.constant 3 : index
    %230 = memref.load %arg1[%229, %c3_165] : memref<16x8xi32, #tpu.memory_space<smem>>
    %231 = arith.index_cast %230 : i32 to index
    %c0_166 = arith.constant 0 : index
    %c0_167 = arith.constant 0 : index
    %232 = vector.load %arg3[%231, %c0_166, %c0_167] : memref<50x1x64xf32, #tpu.memory_space<vmem>>, vector<1x1x64xf32>
    %233 = vector.shape_cast %232 : vector<1x1x64xf32> to vector<1x64xf32>
    %c28 = arith.constant 28 : index
    %c0_168 = arith.constant 0 : index
    %234 = vector.load %arg10[%c28, %c0_168] : memref<64x128xf32, #tpu.memory_space<vmem>>, vector<1x64xf32>
    tpu.vector_store %arg10[%c28, %c0_168], %233 {strides = array<i32>} : memref<64x128xf32, #tpu.memory_space<vmem>>, vector<1x64xf32>,
    %c8_i32_169 = arith.constant 8 : i32
    %235 = arith.muli %arg0, %c8_i32_169 : i32
    %c5_i32_170 = arith.constant 5 : i32
    %236 = arith.addi %235, %c5_i32_170 : i32
    %237 = arith.index_cast %236 : i32 to index
    %c3_171 = arith.constant 3 : index
    %238 = memref.load %arg1[%237, %c3_171] : memref<16x8xi32, #tpu.memory_space<smem>>
    %239 = arith.index_cast %238 : i32 to index
    %c0_172 = arith.constant 0 : index
    %c0_173 = arith.constant 0 : index
    %240 = vector.load %arg3[%239, %c0_172, %c0_173] : memref<50x1x64xf32, #tpu.memory_space<vmem>>, vector<1x1x64xf32>
    %241 = vector.shape_cast %240 : vector<1x1x64xf32> to vector<1x64xf32>
    %c29 = arith.constant 29 : index
    %c0_174 = arith.constant 0 : index
    %242 = vector.load %arg10[%c29, %c0_174] : memref<64x128xf32, #tpu.memory_space<vmem>>, vector<1x64xf32>
    tpu.vector_store %arg10[%c29, %c0_174], %241 {strides = array<i32>} : memref<64x128xf32, #tpu.memory_space<vmem>>, vector<1x64xf32>,
    %c8_i32_175 = arith.constant 8 : i32
    %243 = arith.muli %arg0, %c8_i32_175 : i32
    %c6_i32_176 = arith.constant 6 : i32
    %244 = arith.addi %243, %c6_i32_176 : i32
    %245 = arith.index_cast %244 : i32 to index
    %c3_177 = arith.constant 3 : index
    %246 = memref.load %arg1[%245, %c3_177] : memref<16x8xi32, #tpu.memory_space<smem>>
    %247 = arith.index_cast %246 : i32 to index
    %c0_178 = arith.constant 0 : index
    %c0_179 = arith.constant 0 : index
    %248 = vector.load %arg3[%247, %c0_178, %c0_179] : memref<50x1x64xf32, #tpu.memory_space<vmem>>, vector<1x1x64xf32>
    %249 = vector.shape_cast %248 : vector<1x1x64xf32> to vector<1x64xf32>
    %c30 = arith.constant 30 : index
    %c0_180 = arith.constant 0 : index
    %250 = vector.load %arg10[%c30, %c0_180] : memref<64x128xf32, #tpu.memory_space<vmem>>, vector<1x64xf32>
    tpu.vector_store %arg10[%c30, %c0_180], %249 {strides = array<i32>} : memref<64x128xf32, #tpu.memory_space<vmem>>, vector<1x64xf32>,
    %c8_i32_181 = arith.constant 8 : i32
    %251 = arith.muli %arg0, %c8_i32_181 : i32
    %c7_i32_182 = arith.constant 7 : i32
    %252 = arith.addi %251, %c7_i32_182 : i32
    %253 = arith.index_cast %252 : i32 to index
    %c3_183 = arith.constant 3 : index
    %254 = memref.load %arg1[%253, %c3_183] : memref<16x8xi32, #tpu.memory_space<smem>>
    %255 = arith.index_cast %254 : i32 to index
    %c0_184 = arith.constant 0 : index
    %c0_185 = arith.constant 0 : index
    %256 = vector.load %arg3[%255, %c0_184, %c0_185] : memref<50x1x64xf32, #tpu.memory_space<vmem>>, vector<1x1x64xf32>
    %257 = vector.shape_cast %256 : vector<1x1x64xf32> to vector<1x64xf32>
    %c31 = arith.constant 31 : index
    %c0_186 = arith.constant 0 : index
    %258 = vector.load %arg10[%c31, %c0_186] : memref<64x128xf32, #tpu.memory_space<vmem>>, vector<1x64xf32>
    tpu.vector_store %arg10[%c31, %c0_186], %257 {strides = array<i32>} : memref<64x128xf32, #tpu.memory_space<vmem>>, vector<1x64xf32>,
    %c8_i32_187 = arith.constant 8 : i32
    %259 = arith.muli %arg0, %c8_i32_187 : i32
    %c0_i32_188 = arith.constant 0 : i32
    %260 = arith.addi %259, %c0_i32_188 : i32
    %261 = arith.index_cast %260 : i32 to index
    %c4_189 = arith.constant 4 : index
    %262 = memref.load %arg1[%261, %c4_189] : memref<16x8xi32, #tpu.memory_space<smem>>
    %263 = arith.index_cast %262 : i32 to index
    %c0_190 = arith.constant 0 : index
    %c0_191 = arith.constant 0 : index
    %264 = vector.load %arg3[%263, %c0_190, %c0_191] : memref<50x1x64xf32, #tpu.memory_space<vmem>>, vector<1x1x64xf32>
    %265 = vector.shape_cast %264 : vector<1x1x64xf32> to vector<1x64xf32>
    %c32 = arith.constant 32 : index
    %c0_192 = arith.constant 0 : index
    %266 = vector.load %arg10[%c32, %c0_192] : memref<64x128xf32, #tpu.memory_space<vmem>>, vector<1x64xf32>
    tpu.vector_store %arg10[%c32, %c0_192], %265 {strides = array<i32>} : memref<64x128xf32, #tpu.memory_space<vmem>>, vector<1x64xf32>,
    %c8_i32_193 = arith.constant 8 : i32
    %267 = arith.muli %arg0, %c8_i32_193 : i32
    %c1_i32_194 = arith.constant 1 : i32
    %268 = arith.addi %267, %c1_i32_194 : i32
    %269 = arith.index_cast %268 : i32 to index
    %c4_195 = arith.constant 4 : index
    %270 = memref.load %arg1[%269, %c4_195] : memref<16x8xi32, #tpu.memory_space<smem>>
    %271 = arith.index_cast %270 : i32 to index
    %c0_196 = arith.constant 0 : index
    %c0_197 = arith.constant 0 : index
    %272 = vector.load %arg3[%271, %c0_196, %c0_197] : memref<50x1x64xf32, #tpu.memory_space<vmem>>, vector<1x1x64xf32>
    %273 = vector.shape_cast %272 : vector<1x1x64xf32> to vector<1x64xf32>
    %c33 = arith.constant 33 : index
    %c0_198 = arith.constant 0 : index
    %274 = vector.load %arg10[%c33, %c0_198] : memref<64x128xf32, #tpu.memory_space<vmem>>, vector<1x64xf32>
    tpu.vector_store %arg10[%c33, %c0_198], %273 {strides = array<i32>} : memref<64x128xf32, #tpu.memory_space<vmem>>, vector<1x64xf32>,
    %c8_i32_199 = arith.constant 8 : i32
    %275 = arith.muli %arg0, %c8_i32_199 : i32
    %c2_i32_200 = arith.constant 2 : i32
    %276 = arith.addi %275, %c2_i32_200 : i32
    %277 = arith.index_cast %276 : i32 to index
    %c4_201 = arith.constant 4 : index
    %278 = memref.load %arg1[%277, %c4_201] : memref<16x8xi32, #tpu.memory_space<smem>>
    %279 = arith.index_cast %278 : i32 to index
    %c0_202 = arith.constant 0 : index
    %c0_203 = arith.constant 0 : index
    %280 = vector.load %arg3[%279, %c0_202, %c0_203] : memref<50x1x64xf32, #tpu.memory_space<vmem>>, vector<1x1x64xf32>
    %281 = vector.shape_cast %280 : vector<1x1x64xf32> to vector<1x64xf32>
    %c34 = arith.constant 34 : index
    %c0_204 = arith.constant 0 : index
    %282 = vector.load %arg10[%c34, %c0_204] : memref<64x128xf32, #tpu.memory_space<vmem>>, vector<1x64xf32>
    tpu.vector_store %arg10[%c34, %c0_204], %281 {strides = array<i32>} : memref<64x128xf32, #tpu.memory_space<vmem>>, vector<1x64xf32>,
    %c8_i32_205 = arith.constant 8 : i32
    %283 = arith.muli %arg0, %c8_i32_205 : i32
    %c3_i32_206 = arith.constant 3 : i32
    %284 = arith.addi %283, %c3_i32_206 : i32
    %285 = arith.index_cast %284 : i32 to index
    %c4_207 = arith.constant 4 : index
    %286 = memref.load %arg1[%285, %c4_207] : memref<16x8xi32, #tpu.memory_space<smem>>
    %287 = arith.index_cast %286 : i32 to index
    %c0_208 = arith.constant 0 : index
    %c0_209 = arith.constant 0 : index
    %288 = vector.load %arg3[%287, %c0_208, %c0_209] : memref<50x1x64xf32, #tpu.memory_space<vmem>>, vector<1x1x64xf32>
    %289 = vector.shape_cast %288 : vector<1x1x64xf32> to vector<1x64xf32>
    %c35 = arith.constant 35 : index
    %c0_210 = arith.constant 0 : index
    %290 = vector.load %arg10[%c35, %c0_210] : memref<64x128xf32, #tpu.memory_space<vmem>>, vector<1x64xf32>
    tpu.vector_store %arg10[%c35, %c0_210], %289 {strides = array<i32>} : memref<64x128xf32, #tpu.memory_space<vmem>>, vector<1x64xf32>,
    %c8_i32_211 = arith.constant 8 : i32
    %291 = arith.muli %arg0, %c8_i32_211 : i32
    %c4_i32_212 = arith.constant 4 : i32
    %292 = arith.addi %291, %c4_i32_212 : i32
    %293 = arith.index_cast %292 : i32 to index
    %c4_213 = arith.constant 4 : index
    %294 = memref.load %arg1[%293, %c4_213] : memref<16x8xi32, #tpu.memory_space<smem>>
    %295 = arith.index_cast %294 : i32 to index
    %c0_214 = arith.constant 0 : index
    %c0_215 = arith.constant 0 : index
    %296 = vector.load %arg3[%295, %c0_214, %c0_215] : memref<50x1x64xf32, #tpu.memory_space<vmem>>, vector<1x1x64xf32>
    %297 = vector.shape_cast %296 : vector<1x1x64xf32> to vector<1x64xf32>
    %c36 = arith.constant 36 : index
    %c0_216 = arith.constant 0 : index
    %298 = vector.load %arg10[%c36, %c0_216] : memref<64x128xf32, #tpu.memory_space<vmem>>, vector<1x64xf32>
    tpu.vector_store %arg10[%c36, %c0_216], %297 {strides = array<i32>} : memref<64x128xf32, #tpu.memory_space<vmem>>, vector<1x64xf32>,
    %c8_i32_217 = arith.constant 8 : i32
    %299 = arith.muli %arg0, %c8_i32_217 : i32
    %c5_i32_218 = arith.constant 5 : i32
    %300 = arith.addi %299, %c5_i32_218 : i32
    %301 = arith.index_cast %300 : i32 to index
    %c4_219 = arith.constant 4 : index
    %302 = memref.load %arg1[%301, %c4_219] : memref<16x8xi32, #tpu.memory_space<smem>>
    %303 = arith.index_cast %302 : i32 to index
    %c0_220 = arith.constant 0 : index
    %c0_221 = arith.constant 0 : index
    %304 = vector.load %arg3[%303, %c0_220, %c0_221] : memref<50x1x64xf32, #tpu.memory_space<vmem>>, vector<1x1x64xf32>
    %305 = vector.shape_cast %304 : vector<1x1x64xf32> to vector<1x64xf32>
    %c37 = arith.constant 37 : index
    %c0_222 = arith.constant 0 : index
    %306 = vector.load %arg10[%c37, %c0_222] : memref<64x128xf32, #tpu.memory_space<vmem>>, vector<1x64xf32>
    tpu.vector_store %arg10[%c37, %c0_222], %305 {strides = array<i32>} : memref<64x128xf32, #tpu.memory_space<vmem>>, vector<1x64xf32>,
    %c8_i32_223 = arith.constant 8 : i32
    %307 = arith.muli %arg0, %c8_i32_223 : i32
    %c6_i32_224 = arith.constant 6 : i32
    %308 = arith.addi %307, %c6_i32_224 : i32
    %309 = arith.index_cast %308 : i32 to index
    %c4_225 = arith.constant 4 : index
    %310 = memref.load %arg1[%309, %c4_225] : memref<16x8xi32, #tpu.memory_space<smem>>
    %311 = arith.index_cast %310 : i32 to index
    %c0_226 = arith.constant 0 : index
    %c0_227 = arith.constant 0 : index
    %312 = vector.load %arg3[%311, %c0_226, %c0_227] : memref<50x1x64xf32, #tpu.memory_space<vmem>>, vector<1x1x64xf32>
    %313 = vector.shape_cast %312 : vector<1x1x64xf32> to vector<1x64xf32>
    %c38 = arith.constant 38 : index
    %c0_228 = arith.constant 0 : index
    %314 = vector.load %arg10[%c38, %c0_228] : memref<64x128xf32, #tpu.memory_space<vmem>>, vector<1x64xf32>
    tpu.vector_store %arg10[%c38, %c0_228], %313 {strides = array<i32>} : memref<64x128xf32, #tpu.memory_space<vmem>>, vector<1x64xf32>,
    %c8_i32_229 = arith.constant 8 : i32
    %315 = arith.muli %arg0, %c8_i32_229 : i32
    %c7_i32_230 = arith.constant 7 : i32
    %316 = arith.addi %315, %c7_i32_230 : i32
    %317 = arith.index_cast %316 : i32 to index
    %c4_231 = arith.constant 4 : index
    %318 = memref.load %arg1[%317, %c4_231] : memref<16x8xi32, #tpu.memory_space<smem>>
    %319 = arith.index_cast %318 : i32 to index
    %c0_232 = arith.constant 0 : index
    %c0_233 = arith.constant 0 : index
    %320 = vector.load %arg3[%319, %c0_232, %c0_233] : memref<50x1x64xf32, #tpu.memory_space<vmem>>, vector<1x1x64xf32>
    %321 = vector.shape_cast %320 : vector<1x1x64xf32> to vector<1x64xf32>
    %c39 = arith.constant 39 : index
    %c0_234 = arith.constant 0 : index
    %322 = vector.load %arg10[%c39, %c0_234] : memref<64x128xf32, #tpu.memory_space<vmem>>, vector<1x64xf32>
    tpu.vector_store %arg10[%c39, %c0_234], %321 {strides = array<i32>} : memref<64x128xf32, #tpu.memory_space<vmem>>, vector<1x64xf32>,
    %c8_i32_235 = arith.constant 8 : i32
    %323 = arith.muli %arg0, %c8_i32_235 : i32
    %c0_i32_236 = arith.constant 0 : i32
    %324 = arith.addi %323, %c0_i32_236 : i32
    %325 = arith.index_cast %324 : i32 to index
    %c5_237 = arith.constant 5 : index
    %326 = memref.load %arg1[%325, %c5_237] : memref<16x8xi32, #tpu.memory_space<smem>>
    %327 = arith.index_cast %326 : i32 to index
    %c0_238 = arith.constant 0 : index
    %c0_239 = arith.constant 0 : index
    %328 = vector.load %arg3[%327, %c0_238, %c0_239] : memref<50x1x64xf32, #tpu.memory_space<vmem>>, vector<1x1x64xf32>
    %329 = vector.shape_cast %328 : vector<1x1x64xf32> to vector<1x64xf32>
    %c40 = arith.constant 40 : index
    %c0_240 = arith.constant 0 : index
    %330 = vector.load %arg10[%c40, %c0_240] : memref<64x128xf32, #tpu.memory_space<vmem>>, vector<1x64xf32>
    tpu.vector_store %arg10[%c40, %c0_240], %329 {strides = array<i32>} : memref<64x128xf32, #tpu.memory_space<vmem>>, vector<1x64xf32>,
    %c8_i32_241 = arith.constant 8 : i32
    %331 = arith.muli %arg0, %c8_i32_241 : i32
    %c1_i32_242 = arith.constant 1 : i32
    %332 = arith.addi %331, %c1_i32_242 : i32
    %333 = arith.index_cast %332 : i32 to index
    %c5_243 = arith.constant 5 : index
    %334 = memref.load %arg1[%333, %c5_243] : memref<16x8xi32, #tpu.memory_space<smem>>
    %335 = arith.index_cast %334 : i32 to index
    %c0_244 = arith.constant 0 : index
    %c0_245 = arith.constant 0 : index
    %336 = vector.load %arg3[%335, %c0_244, %c0_245] : memref<50x1x64xf32, #tpu.memory_space<vmem>>, vector<1x1x64xf32>
    %337 = vector.shape_cast %336 : vector<1x1x64xf32> to vector<1x64xf32>
    %c41 = arith.constant 41 : index
    %c0_246 = arith.constant 0 : index
    %338 = vector.load %arg10[%c41, %c0_246] : memref<64x128xf32, #tpu.memory_space<vmem>>, vector<1x64xf32>
    tpu.vector_store %arg10[%c41, %c0_246], %337 {strides = array<i32>} : memref<64x128xf32, #tpu.memory_space<vmem>>, vector<1x64xf32>,
    %c8_i32_247 = arith.constant 8 : i32
    %339 = arith.muli %arg0, %c8_i32_247 : i32
    %c2_i32_248 = arith.constant 2 : i32
    %340 = arith.addi %339, %c2_i32_248 : i32
    %341 = arith.index_cast %340 : i32 to index
    %c5_249 = arith.constant 5 : index
    %342 = memref.load %arg1[%341, %c5_249] : memref<16x8xi32, #tpu.memory_space<smem>>
    %343 = arith.index_cast %342 : i32 to index
    %c0_250 = arith.constant 0 : index
    %c0_251 = arith.constant 0 : index
    %344 = vector.load %arg3[%343, %c0_250, %c0_251] : memref<50x1x64xf32, #tpu.memory_space<vmem>>, vector<1x1x64xf32>
    %345 = vector.shape_cast %344 : vector<1x1x64xf32> to vector<1x64xf32>
    %c42 = arith.constant 42 : index
    %c0_252 = arith.constant 0 : index
    %346 = vector.load %arg10[%c42, %c0_252] : memref<64x128xf32, #tpu.memory_space<vmem>>, vector<1x64xf32>
    tpu.vector_store %arg10[%c42, %c0_252], %345 {strides = array<i32>} : memref<64x128xf32, #tpu.memory_space<vmem>>, vector<1x64xf32>,
    %c8_i32_253 = arith.constant 8 : i32
    %347 = arith.muli %arg0, %c8_i32_253 : i32
    %c3_i32_254 = arith.constant 3 : i32
    %348 = arith.addi %347, %c3_i32_254 : i32
    %349 = arith.index_cast %348 : i32 to index
    %c5_255 = arith.constant 5 : index
    %350 = memref.load %arg1[%349, %c5_255] : memref<16x8xi32, #tpu.memory_space<smem>>
    %351 = arith.index_cast %350 : i32 to index
    %c0_256 = arith.constant 0 : index
    %c0_257 = arith.constant 0 : index
    %352 = vector.load %arg3[%351, %c0_256, %c0_257] : memref<50x1x64xf32, #tpu.memory_space<vmem>>, vector<1x1x64xf32>
    %353 = vector.shape_cast %352 : vector<1x1x64xf32> to vector<1x64xf32>
    %c43 = arith.constant 43 : index
    %c0_258 = arith.constant 0 : index
    %354 = vector.load %arg10[%c43, %c0_258] : memref<64x128xf32, #tpu.memory_space<vmem>>, vector<1x64xf32>
    tpu.vector_store %arg10[%c43, %c0_258], %353 {strides = array<i32>} : memref<64x128xf32, #tpu.memory_space<vmem>>, vector<1x64xf32>,
    %c8_i32_259 = arith.constant 8 : i32
    %355 = arith.muli %arg0, %c8_i32_259 : i32
    %c4_i32_260 = arith.constant 4 : i32
    %356 = arith.addi %355, %c4_i32_260 : i32
    %357 = arith.index_cast %356 : i32 to index
    %c5_261 = arith.constant 5 : index
    %358 = memref.load %arg1[%357, %c5_261] : memref<16x8xi32, #tpu.memory_space<smem>>
    %359 = arith.index_cast %358 : i32 to index
    %c0_262 = arith.constant 0 : index
    %c0_263 = arith.constant 0 : index
    %360 = vector.load %arg3[%359, %c0_262, %c0_263] : memref<50x1x64xf32, #tpu.memory_space<vmem>>, vector<1x1x64xf32>
    %361 = vector.shape_cast %360 : vector<1x1x64xf32> to vector<1x64xf32>
    %c44 = arith.constant 44 : index
    %c0_264 = arith.constant 0 : index
    %362 = vector.load %arg10[%c44, %c0_264] : memref<64x128xf32, #tpu.memory_space<vmem>>, vector<1x64xf32>
    tpu.vector_store %arg10[%c44, %c0_264], %361 {strides = array<i32>} : memref<64x128xf32, #tpu.memory_space<vmem>>, vector<1x64xf32>,
    %c8_i32_265 = arith.constant 8 : i32
    %363 = arith.muli %arg0, %c8_i32_265 : i32
    %c5_i32_266 = arith.constant 5 : i32
    %364 = arith.addi %363, %c5_i32_266 : i32
    %365 = arith.index_cast %364 : i32 to index
    %c5_267 = arith.constant 5 : index
    %366 = memref.load %arg1[%365, %c5_267] : memref<16x8xi32, #tpu.memory_space<smem>>
    %367 = arith.index_cast %366 : i32 to index
    %c0_268 = arith.constant 0 : index
    %c0_269 = arith.constant 0 : index
    %368 = vector.load %arg3[%367, %c0_268, %c0_269] : memref<50x1x64xf32, #tpu.memory_space<vmem>>, vector<1x1x64xf32>
    %369 = vector.shape_cast %368 : vector<1x1x64xf32> to vector<1x64xf32>
    %c45 = arith.constant 45 : index
    %c0_270 = arith.constant 0 : index
    %370 = vector.load %arg10[%c45, %c0_270] : memref<64x128xf32, #tpu.memory_space<vmem>>, vector<1x64xf32>
    tpu.vector_store %arg10[%c45, %c0_270], %369 {strides = array<i32>} : memref<64x128xf32, #tpu.memory_space<vmem>>, vector<1x64xf32>,
    %c8_i32_271 = arith.constant 8 : i32
    %371 = arith.muli %arg0, %c8_i32_271 : i32
    %c6_i32_272 = arith.constant 6 : i32
    %372 = arith.addi %371, %c6_i32_272 : i32
    %373 = arith.index_cast %372 : i32 to index
    %c5_273 = arith.constant 5 : index
    %374 = memref.load %arg1[%373, %c5_273] : memref<16x8xi32, #tpu.memory_space<smem>>
    %375 = arith.index_cast %374 : i32 to index
    %c0_274 = arith.constant 0 : index
    %c0_275 = arith.constant 0 : index
    %376 = vector.load %arg3[%375, %c0_274, %c0_275] : memref<50x1x64xf32, #tpu.memory_space<vmem>>, vector<1x1x64xf32>
    %377 = vector.shape_cast %376 : vector<1x1x64xf32> to vector<1x64xf32>
    %c46 = arith.constant 46 : index
    %c0_276 = arith.constant 0 : index
    %378 = vector.load %arg10[%c46, %c0_276] : memref<64x128xf32, #tpu.memory_space<vmem>>, vector<1x64xf32>
    tpu.vector_store %arg10[%c46, %c0_276], %377 {strides = array<i32>} : memref<64x128xf32, #tpu.memory_space<vmem>>, vector<1x64xf32>,
    %c8_i32_277 = arith.constant 8 : i32
    %379 = arith.muli %arg0, %c8_i32_277 : i32
    %c7_i32_278 = arith.constant 7 : i32
    %380 = arith.addi %379, %c7_i32_278 : i32
    %381 = arith.index_cast %380 : i32 to index
    %c5_279 = arith.constant 5 : index
    %382 = memref.load %arg1[%381, %c5_279] : memref<16x8xi32, #tpu.memory_space<smem>>
    %383 = arith.index_cast %382 : i32 to index
    %c0_280 = arith.constant 0 : index
    %c0_281 = arith.constant 0 : index
    %384 = vector.load %arg3[%383, %c0_280, %c0_281] : memref<50x1x64xf32, #tpu.memory_space<vmem>>, vector<1x1x64xf32>
    %385 = vector.shape_cast %384 : vector<1x1x64xf32> to vector<1x64xf32>
    %c47 = arith.constant 47 : index
    %c0_282 = arith.constant 0 : index
    %386 = vector.load %arg10[%c47, %c0_282] : memref<64x128xf32, #tpu.memory_space<vmem>>, vector<1x64xf32>
    tpu.vector_store %arg10[%c47, %c0_282], %385 {strides = array<i32>} : memref<64x128xf32, #tpu.memory_space<vmem>>, vector<1x64xf32>,
    %c8_i32_283 = arith.constant 8 : i32
    %387 = arith.muli %arg0, %c8_i32_283 : i32
    %c0_i32_284 = arith.constant 0 : i32
    %388 = arith.addi %387, %c0_i32_284 : i32
    %389 = arith.index_cast %388 : i32 to index
    %c6_285 = arith.constant 6 : index
    %390 = memref.load %arg1[%389, %c6_285] : memref<16x8xi32, #tpu.memory_space<smem>>
    %391 = arith.index_cast %390 : i32 to index
    %c0_286 = arith.constant 0 : index
    %c0_287 = arith.constant 0 : index
    %392 = vector.load %arg3[%391, %c0_286, %c0_287] : memref<50x1x64xf32, #tpu.memory_space<vmem>>, vector<1x1x64xf32>
    %393 = vector.shape_cast %392 : vector<1x1x64xf32> to vector<1x64xf32>
    %c48 = arith.constant 48 : index
    %c0_288 = arith.constant 0 : index
    %394 = vector.load %arg10[%c48, %c0_288] : memref<64x128xf32, #tpu.memory_space<vmem>>, vector<1x64xf32>
    tpu.vector_store %arg10[%c48, %c0_288], %393 {strides = array<i32>} : memref<64x128xf32, #tpu.memory_space<vmem>>, vector<1x64xf32>,
    %c8_i32_289 = arith.constant 8 : i32
    %395 = arith.muli %arg0, %c8_i32_289 : i32
    %c1_i32_290 = arith.constant 1 : i32
    %396 = arith.addi %395, %c1_i32_290 : i32
    %397 = arith.index_cast %396 : i32 to index
    %c6_291 = arith.constant 6 : index
    %398 = memref.load %arg1[%397, %c6_291] : memref<16x8xi32, #tpu.memory_space<smem>>
    %399 = arith.index_cast %398 : i32 to index
    %c0_292 = arith.constant 0 : index
    %c0_293 = arith.constant 0 : index
    %400 = vector.load %arg3[%399, %c0_292, %c0_293] : memref<50x1x64xf32, #tpu.memory_space<vmem>>, vector<1x1x64xf32>
    %401 = vector.shape_cast %400 : vector<1x1x64xf32> to vector<1x64xf32>
    %c49 = arith.constant 49 : index
    %c0_294 = arith.constant 0 : index
    %402 = vector.load %arg10[%c49, %c0_294] : memref<64x128xf32, #tpu.memory_space<vmem>>, vector<1x64xf32>
    tpu.vector_store %arg10[%c49, %c0_294], %401 {strides = array<i32>} : memref<64x128xf32, #tpu.memory_space<vmem>>, vector<1x64xf32>,
    %c8_i32_295 = arith.constant 8 : i32
    %403 = arith.muli %arg0, %c8_i32_295 : i32
    %c2_i32_296 = arith.constant 2 : i32
    %404 = arith.addi %403, %c2_i32_296 : i32
    %405 = arith.index_cast %404 : i32 to index
    %c6_297 = arith.constant 6 : index
    %406 = memref.load %arg1[%405, %c6_297] : memref<16x8xi32, #tpu.memory_space<smem>>
    %407 = arith.index_cast %406 : i32 to index
    %c0_298 = arith.constant 0 : index
    %c0_299 = arith.constant 0 : index
    %408 = vector.load %arg3[%407, %c0_298, %c0_299] : memref<50x1x64xf32, #tpu.memory_space<vmem>>, vector<1x1x64xf32>
    %409 = vector.shape_cast %408 : vector<1x1x64xf32> to vector<1x64xf32>
    %c50 = arith.constant 50 : index
    %c0_300 = arith.constant 0 : index
    %410 = vector.load %arg10[%c50, %c0_300] : memref<64x128xf32, #tpu.memory_space<vmem>>, vector<1x64xf32>
    tpu.vector_store %arg10[%c50, %c0_300], %409 {strides = array<i32>} : memref<64x128xf32, #tpu.memory_space<vmem>>, vector<1x64xf32>,
    %c8_i32_301 = arith.constant 8 : i32
    %411 = arith.muli %arg0, %c8_i32_301 : i32
    %c3_i32_302 = arith.constant 3 : i32
    %412 = arith.addi %411, %c3_i32_302 : i32
    %413 = arith.index_cast %412 : i32 to index
    %c6_303 = arith.constant 6 : index
    %414 = memref.load %arg1[%413, %c6_303] : memref<16x8xi32, #tpu.memory_space<smem>>
    %415 = arith.index_cast %414 : i32 to index
    %c0_304 = arith.constant 0 : index
    %c0_305 = arith.constant 0 : index
    %416 = vector.load %arg3[%415, %c0_304, %c0_305] : memref<50x1x64xf32, #tpu.memory_space<vmem>>, vector<1x1x64xf32>
    %417 = vector.shape_cast %416 : vector<1x1x64xf32> to vector<1x64xf32>
    %c51 = arith.constant 51 : index
    %c0_306 = arith.constant 0 : index
    %418 = vector.load %arg10[%c51, %c0_306] : memref<64x128xf32, #tpu.memory_space<vmem>>, vector<1x64xf32>
    tpu.vector_store %arg10[%c51, %c0_306], %417 {strides = array<i32>} : memref<64x128xf32, #tpu.memory_space<vmem>>, vector<1x64xf32>,
    %c8_i32_307 = arith.constant 8 : i32
    %419 = arith.muli %arg0, %c8_i32_307 : i32
    %c4_i32_308 = arith.constant 4 : i32
    %420 = arith.addi %419, %c4_i32_308 : i32
    %421 = arith.index_cast %420 : i32 to index
    %c6_309 = arith.constant 6 : index
    %422 = memref.load %arg1[%421, %c6_309] : memref<16x8xi32, #tpu.memory_space<smem>>
    %423 = arith.index_cast %422 : i32 to index
    %c0_310 = arith.constant 0 : index
    %c0_311 = arith.constant 0 : index
    %424 = vector.load %arg3[%423, %c0_310, %c0_311] : memref<50x1x64xf32, #tpu.memory_space<vmem>>, vector<1x1x64xf32>
    %425 = vector.shape_cast %424 : vector<1x1x64xf32> to vector<1x64xf32>
    %c52 = arith.constant 52 : index
    %c0_312 = arith.constant 0 : index
    %426 = vector.load %arg10[%c52, %c0_312] : memref<64x128xf32, #tpu.memory_space<vmem>>, vector<1x64xf32>
    tpu.vector_store %arg10[%c52, %c0_312], %425 {strides = array<i32>} : memref<64x128xf32, #tpu.memory_space<vmem>>, vector<1x64xf32>,
    %c8_i32_313 = arith.constant 8 : i32
    %427 = arith.muli %arg0, %c8_i32_313 : i32
    %c5_i32_314 = arith.constant 5 : i32
    %428 = arith.addi %427, %c5_i32_314 : i32
    %429 = arith.index_cast %428 : i32 to index
    %c6_315 = arith.constant 6 : index
    %430 = memref.load %arg1[%429, %c6_315] : memref<16x8xi32, #tpu.memory_space<smem>>
    %431 = arith.index_cast %430 : i32 to index
    %c0_316 = arith.constant 0 : index
    %c0_317 = arith.constant 0 : index
    %432 = vector.load %arg3[%431, %c0_316, %c0_317] : memref<50x1x64xf32, #tpu.memory_space<vmem>>, vector<1x1x64xf32>
    %433 = vector.shape_cast %432 : vector<1x1x64xf32> to vector<1x64xf32>
    %c53 = arith.constant 53 : index
    %c0_318 = arith.constant 0 : index
    %434 = vector.load %arg10[%c53, %c0_318] : memref<64x128xf32, #tpu.memory_space<vmem>>, vector<1x64xf32>
    tpu.vector_store %arg10[%c53, %c0_318], %433 {strides = array<i32>} : memref<64x128xf32, #tpu.memory_space<vmem>>, vector<1x64xf32>,
    %c8_i32_319 = arith.constant 8 : i32
    %435 = arith.muli %arg0, %c8_i32_319 : i32
    %c6_i32_320 = arith.constant 6 : i32
    %436 = arith.addi %435, %c6_i32_320 : i32
    %437 = arith.index_cast %436 : i32 to index
    %c6_321 = arith.constant 6 : index
    %438 = memref.load %arg1[%437, %c6_321] : memref<16x8xi32, #tpu.memory_space<smem>>
    %439 = arith.index_cast %438 : i32 to index
    %c0_322 = arith.constant 0 : index
    %c0_323 = arith.constant 0 : index
    %440 = vector.load %arg3[%439, %c0_322, %c0_323] : memref<50x1x64xf32, #tpu.memory_space<vmem>>, vector<1x1x64xf32>
    %441 = vector.shape_cast %440 : vector<1x1x64xf32> to vector<1x64xf32>
    %c54 = arith.constant 54 : index
    %c0_324 = arith.constant 0 : index
    %442 = vector.load %arg10[%c54, %c0_324] : memref<64x128xf32, #tpu.memory_space<vmem>>, vector<1x64xf32>
    tpu.vector_store %arg10[%c54, %c0_324], %441 {strides = array<i32>} : memref<64x128xf32, #tpu.memory_space<vmem>>, vector<1x64xf32>,
    %c8_i32_325 = arith.constant 8 : i32
    %443 = arith.muli %arg0, %c8_i32_325 : i32
    %c7_i32_326 = arith.constant 7 : i32
    %444 = arith.addi %443, %c7_i32_326 : i32
    %445 = arith.index_cast %444 : i32 to index
    %c6_327 = arith.constant 6 : index
    %446 = memref.load %arg1[%445, %c6_327] : memref<16x8xi32, #tpu.memory_space<smem>>
    %447 = arith.index_cast %446 : i32 to index
    %c0_328 = arith.constant 0 : index
    %c0_329 = arith.constant 0 : index
    %448 = vector.load %arg3[%447, %c0_328, %c0_329] : memref<50x1x64xf32, #tpu.memory_space<vmem>>, vector<1x1x64xf32>
    %449 = vector.shape_cast %448 : vector<1x1x64xf32> to vector<1x64xf32>
    %c55 = arith.constant 55 : index
    %c0_330 = arith.constant 0 : index
    %450 = vector.load %arg10[%c55, %c0_330] : memref<64x128xf32, #tpu.memory_space<vmem>>, vector<1x64xf32>
    tpu.vector_store %arg10[%c55, %c0_330], %449 {strides = array<i32>} : memref<64x128xf32, #tpu.memory_space<vmem>>, vector<1x64xf32>,
    %c8_i32_331 = arith.constant 8 : i32
    %451 = arith.muli %arg0, %c8_i32_331 : i32
    %c0_i32_332 = arith.constant 0 : i32
    %452 = arith.addi %451, %c0_i32_332 : i32
    %453 = arith.index_cast %452 : i32 to index
    %c7_333 = arith.constant 7 : index
    %454 = memref.load %arg1[%453, %c7_333] : memref<16x8xi32, #tpu.memory_space<smem>>
    %455 = arith.index_cast %454 : i32 to index
    %c0_334 = arith.constant 0 : index
    %c0_335 = arith.constant 0 : index
    %456 = vector.load %arg3[%455, %c0_334, %c0_335] : memref<50x1x64xf32, #tpu.memory_space<vmem>>, vector<1x1x64xf32>
    %457 = vector.shape_cast %456 : vector<1x1x64xf32> to vector<1x64xf32>
    %c56 = arith.constant 56 : index
    %c0_336 = arith.constant 0 : index
    %458 = vector.load %arg10[%c56, %c0_336] : memref<64x128xf32, #tpu.memory_space<vmem>>, vector<1x64xf32>
    tpu.vector_store %arg10[%c56, %c0_336], %457 {strides = array<i32>} : memref<64x128xf32, #tpu.memory_space<vmem>>, vector<1x64xf32>,
    %c8_i32_337 = arith.constant 8 : i32
    %459 = arith.muli %arg0, %c8_i32_337 : i32
    %c1_i32_338 = arith.constant 1 : i32
    %460 = arith.addi %459, %c1_i32_338 : i32
    %461 = arith.index_cast %460 : i32 to index
    %c7_339 = arith.constant 7 : index
    %462 = memref.load %arg1[%461, %c7_339] : memref<16x8xi32, #tpu.memory_space<smem>>
    %463 = arith.index_cast %462 : i32 to index
    %c0_340 = arith.constant 0 : index
    %c0_341 = arith.constant 0 : index
    %464 = vector.load %arg3[%463, %c0_340, %c0_341] : memref<50x1x64xf32, #tpu.memory_space<vmem>>, vector<1x1x64xf32>
    %465 = vector.shape_cast %464 : vector<1x1x64xf32> to vector<1x64xf32>
    %c57 = arith.constant 57 : index
    %c0_342 = arith.constant 0 : index
    %466 = vector.load %arg10[%c57, %c0_342] : memref<64x128xf32, #tpu.memory_space<vmem>>, vector<1x64xf32>
    tpu.vector_store %arg10[%c57, %c0_342], %465 {strides = array<i32>} : memref<64x128xf32, #tpu.memory_space<vmem>>, vector<1x64xf32>,
    %c8_i32_343 = arith.constant 8 : i32
    %467 = arith.muli %arg0, %c8_i32_343 : i32
    %c2_i32_344 = arith.constant 2 : i32
    %468 = arith.addi %467, %c2_i32_344 : i32
    %469 = arith.index_cast %468 : i32 to index
    %c7_345 = arith.constant 7 : index
    %470 = memref.load %arg1[%469, %c7_345] : memref<16x8xi32, #tpu.memory_space<smem>>
    %471 = arith.index_cast %470 : i32 to index
    %c0_346 = arith.constant 0 : index
    %c0_347 = arith.constant 0 : index
    %472 = vector.load %arg3[%471, %c0_346, %c0_347] : memref<50x1x64xf32, #tpu.memory_space<vmem>>, vector<1x1x64xf32>
    %473 = vector.shape_cast %472 : vector<1x1x64xf32> to vector<1x64xf32>
    %c58 = arith.constant 58 : index
    %c0_348 = arith.constant 0 : index
    %474 = vector.load %arg10[%c58, %c0_348] : memref<64x128xf32, #tpu.memory_space<vmem>>, vector<1x64xf32>
    tpu.vector_store %arg10[%c58, %c0_348], %473 {strides = array<i32>} : memref<64x128xf32, #tpu.memory_space<vmem>>, vector<1x64xf32>,
    %c8_i32_349 = arith.constant 8 : i32
    %475 = arith.muli %arg0, %c8_i32_349 : i32
    %c3_i32_350 = arith.constant 3 : i32
    %476 = arith.addi %475, %c3_i32_350 : i32
    %477 = arith.index_cast %476 : i32 to index
    %c7_351 = arith.constant 7 : index
    %478 = memref.load %arg1[%477, %c7_351] : memref<16x8xi32, #tpu.memory_space<smem>>
    %479 = arith.index_cast %478 : i32 to index
    %c0_352 = arith.constant 0 : index
    %c0_353 = arith.constant 0 : index
    %480 = vector.load %arg3[%479, %c0_352, %c0_353] : memref<50x1x64xf32, #tpu.memory_space<vmem>>, vector<1x1x64xf32>
    %481 = vector.shape_cast %480 : vector<1x1x64xf32> to vector<1x64xf32>
    %c59 = arith.constant 59 : index
    %c0_354 = arith.constant 0 : index
    %482 = vector.load %arg10[%c59, %c0_354] : memref<64x128xf32, #tpu.memory_space<vmem>>, vector<1x64xf32>
    tpu.vector_store %arg10[%c59, %c0_354], %481 {strides = array<i32>} : memref<64x128xf32, #tpu.memory_space<vmem>>, vector<1x64xf32>,
    %c8_i32_355 = arith.constant 8 : i32
    %483 = arith.muli %arg0, %c8_i32_355 : i32
    %c4_i32_356 = arith.constant 4 : i32
    %484 = arith.addi %483, %c4_i32_356 : i32
    %485 = arith.index_cast %484 : i32 to index
    %c7_357 = arith.constant 7 : index
    %486 = memref.load %arg1[%485, %c7_357] : memref<16x8xi32, #tpu.memory_space<smem>>
    %487 = arith.index_cast %486 : i32 to index
    %c0_358 = arith.constant 0 : index
    %c0_359 = arith.constant 0 : index
    %488 = vector.load %arg3[%487, %c0_358, %c0_359] : memref<50x1x64xf32, #tpu.memory_space<vmem>>, vector<1x1x64xf32>
    %489 = vector.shape_cast %488 : vector<1x1x64xf32> to vector<1x64xf32>
    %c60 = arith.constant 60 : index
    %c0_360 = arith.constant 0 : index
    %490 = vector.load %arg10[%c60, %c0_360] : memref<64x128xf32, #tpu.memory_space<vmem>>, vector<1x64xf32>
    tpu.vector_store %arg10[%c60, %c0_360], %489 {strides = array<i32>} : memref<64x128xf32, #tpu.memory_space<vmem>>, vector<1x64xf32>,
    %c8_i32_361 = arith.constant 8 : i32
    %491 = arith.muli %arg0, %c8_i32_361 : i32
    %c5_i32_362 = arith.constant 5 : i32
    %492 = arith.addi %491, %c5_i32_362 : i32
    %493 = arith.index_cast %492 : i32 to index
    %c7_363 = arith.constant 7 : index
    %494 = memref.load %arg1[%493, %c7_363] : memref<16x8xi32, #tpu.memory_space<smem>>
    %495 = arith.index_cast %494 : i32 to index
    %c0_364 = arith.constant 0 : index
    %c0_365 = arith.constant 0 : index
    %496 = vector.load %arg3[%495, %c0_364, %c0_365] : memref<50x1x64xf32, #tpu.memory_space<vmem>>, vector<1x1x64xf32>
    %497 = vector.shape_cast %496 : vector<1x1x64xf32> to vector<1x64xf32>
    %c61 = arith.constant 61 : index
    %c0_366 = arith.constant 0 : index
    %498 = vector.load %arg10[%c61, %c0_366] : memref<64x128xf32, #tpu.memory_space<vmem>>, vector<1x64xf32>
    tpu.vector_store %arg10[%c61, %c0_366], %497 {strides = array<i32>} : memref<64x128xf32, #tpu.memory_space<vmem>>, vector<1x64xf32>,
    %c8_i32_367 = arith.constant 8 : i32
    %499 = arith.muli %arg0, %c8_i32_367 : i32
    %c6_i32_368 = arith.constant 6 : i32
    %500 = arith.addi %499, %c6_i32_368 : i32
    %501 = arith.index_cast %500 : i32 to index
    %c7_369 = arith.constant 7 : index
    %502 = memref.load %arg1[%501, %c7_369] : memref<16x8xi32, #tpu.memory_space<smem>>
    %503 = arith.index_cast %502 : i32 to index
    %c0_370 = arith.constant 0 : index
    %c0_371 = arith.constant 0 : index
    %504 = vector.load %arg3[%503, %c0_370, %c0_371] : memref<50x1x64xf32, #tpu.memory_space<vmem>>, vector<1x1x64xf32>
    %505 = vector.shape_cast %504 : vector<1x1x64xf32> to vector<1x64xf32>
    %c62 = arith.constant 62 : index
    %c0_372 = arith.constant 0 : index
    %506 = vector.load %arg10[%c62, %c0_372] : memref<64x128xf32, #tpu.memory_space<vmem>>, vector<1x64xf32>
    tpu.vector_store %arg10[%c62, %c0_372], %505 {strides = array<i32>} : memref<64x128xf32, #tpu.memory_space<vmem>>, vector<1x64xf32>,
    %c8_i32_373 = arith.constant 8 : i32
    %507 = arith.muli %arg0, %c8_i32_373 : i32
    %c7_i32_374 = arith.constant 7 : i32
    %508 = arith.addi %507, %c7_i32_374 : i32
    %509 = arith.index_cast %508 : i32 to index
    %c7_375 = arith.constant 7 : index
    %510 = memref.load %arg1[%509, %c7_375] : memref<16x8xi32, #tpu.memory_space<smem>>
    %511 = arith.index_cast %510 : i32 to index
    %c0_376 = arith.constant 0 : index
    %c0_377 = arith.constant 0 : index
    %512 = vector.load %arg3[%511, %c0_376, %c0_377] : memref<50x1x64xf32, #tpu.memory_space<vmem>>, vector<1x1x64xf32>
    %513 = vector.shape_cast %512 : vector<1x1x64xf32> to vector<1x64xf32>
    %c63 = arith.constant 63 : index
    %c0_378 = arith.constant 0 : index
    %514 = vector.load %arg10[%c63, %c0_378] : memref<64x128xf32, #tpu.memory_space<vmem>>, vector<1x64xf32>
    tpu.vector_store %arg10[%c63, %c0_378], %513 {strides = array<i32>} : memref<64x128xf32, #tpu.memory_space<vmem>>, vector<1x64xf32>,
    %c0_379 = arith.constant 0 : index
    %c0_380 = arith.constant 0 : index
    %515 = vector.load %arg10[%c0_379, %c0_380] : memref<64x128xf32, #tpu.memory_space<vmem>>, vector<64x128xf32>
    %c0_381 = arith.constant 0 : index
    %c0_382 = arith.constant 0 : index
    %516 = vector.load %arg4[%c0_381, %c0_382] : memref<128x512xf32, #tpu.memory_space<vmem>>, vector<128x512xf32>
    %cst = arith.constant dense<0.000000e+00> : vector<64x512xf32>
    %517 = tpu.matmul %515, %516, %cst {dimension_numbers = #tpu.dot_dimension_numbers<[1], [0], [0], [1], [0, 0, 1, 1], [], []>} : vector<64x128xf32>, vector<128x512xf32>, vector<64x512xf32> -> vector<64x512xf32>
    %c0_383 = arith.constant 0 : index
    %c0_384 = arith.constant 0 : index
    %518 = vector.load %arg6[%c0_383, %c0_384] : memref<1x512xf32, #tpu.memory_space<vmem>>, vector<1x512xf32>
    %519 = vector.broadcast %518 : vector<1x512xf32> to vector<64x512xf32>
    %520 = arith.addf %517, %519 : vector<64x512xf32>
    %c0_385 = arith.constant 0 : index
    %c0_386 = arith.constant 0 : index
    %521 = vector.load %arg11[%c0_385, %c0_386] : memref<64x512xf32, #tpu.memory_space<vmem>>, vector<64x512xf32>
    tpu.vector_store %arg11[%c0_385, %c0_386], %520 {strides = array<i32>} : memref<64x512xf32, #tpu.memory_space<vmem>>, vector<64x512xf32>,
    %c0_387 = arith.constant 0 : index
    %c0_388 = arith.constant 0 : index
    %522 = vector.load %arg11[%c0_387, %c0_388] : memref<64x512xf32, #tpu.memory_space<vmem>>, vector<8x512xf32>
    %523 = vector.extract_strided_slice %522 {offsets = [0, 0], sizes = [8, 128], strides = [1, 1]} : vector<8x512xf32> to vector<8x128xf32>
    %524 = arith.negf %523 : vector<8x128xf32>
    %525 = math.exp %524 : vector<8x128xf32>
    %cst_389 = arith.constant 1.000000e+00 : f32
    %526 = vector.broadcast %cst_389 : f32 to vector<8x128xf32>
    %527 = arith.addf %526, %525 : vector<8x128xf32>
    %528 = arith.divf %526, %527 : vector<8x128xf32>
    %529 = vector.extract_strided_slice %522 {offsets = [0, 384], sizes = [8, 128], strides = [1, 1]} : vector<8x512xf32> to vector<8x128xf32>
    %530 = math.tanh %529 : vector<8x128xf32>
    %531 = arith.mulf %528, %530 : vector<8x128xf32>
    %532 = vector.extract_strided_slice %522 {offsets = [0, 256], sizes = [8, 128], strides = [1, 1]} : vector<8x512xf32> to vector<8x128xf32>
    %533 = arith.negf %532 : vector<8x128xf32>
    %534 = math.exp %533 : vector<8x128xf32>
    %cst_390 = arith.constant 1.000000e+00 : f32
    %535 = vector.broadcast %cst_390 : f32 to vector<8x128xf32>
    %536 = arith.addf %535, %534 : vector<8x128xf32>
    %537 = arith.divf %535, %536 : vector<8x128xf32>
    %538 = math.tanh %531 : vector<8x128xf32>
    %539 = arith.mulf %537, %538 : vector<8x128xf32>
    %540 = vector.extract_strided_slice %539 {offsets = [0, 0], sizes = [8, 32], strides = [1, 1]} : vector<8x128xf32> to vector<8x32xf32>
    %c0_391 = arith.constant 0 : index
    %c0_392 = arith.constant 0 : index
    %541 = vector.load %arg12[%c0_391, %c0_392] : memref<64x32xf32, #tpu.memory_space<vmem>>, vector<8x32xf32>
    tpu.vector_store %arg12[%c0_391, %c0_392], %540 {strides = array<i32>} : memref<64x32xf32, #tpu.memory_space<vmem>>, vector<8x32xf32>,
    %c8_393 = arith.constant 8 : index
    %c0_394 = arith.constant 0 : index
    %542 = vector.load %arg11[%c8_393, %c0_394] : memref<64x512xf32, #tpu.memory_space<vmem>>, vector<8x512xf32>
    %543 = vector.extract_strided_slice %539 {offsets = [0, 0], sizes = [8, 32], strides = [1, 1]} : vector<8x128xf32> to vector<8x32xf32>
    %c0_395 = arith.constant 0 : index
    %c0_396 = arith.constant 0 : index
    %544 = vector.load %arg5[%c0_395, %c0_396] : memref<32x512xf32, #tpu.memory_space<vmem>>, vector<32x512xf32>
    %cst_397 = arith.constant dense<0.000000e+00> : vector<8x512xf32>
    %545 = tpu.matmul %543, %544, %cst_397 {dimension_numbers = #tpu.dot_dimension_numbers<[1], [0], [0], [1], [0, 0, 1, 1], [], []>} : vector<8x32xf32>, vector<32x512xf32>, vector<8x512xf32> -> vector<8x512xf32>
    %546 = arith.addf %542, %545 : vector<8x512xf32>
    %547 = vector.extract_strided_slice %546 {offsets = [0, 0], sizes = [8, 384], strides = [1, 1]} : vector<8x512xf32> to vector<8x384xf32>
    %548 = arith.negf %547 : vector<8x384xf32>
    %549 = math.exp %548 : vector<8x384xf32>
    %cst_398 = arith.constant 1.000000e+00 : f32
    %550 = vector.broadcast %cst_398 : f32 to vector<8x384xf32>
    %551 = arith.addf %550, %549 : vector<8x384xf32>
    %552 = arith.divf %550, %551 : vector<8x384xf32>
    %553 = vector.extract_strided_slice %546 {offsets = [0, 384], sizes = [8, 128], strides = [1, 1]} : vector<8x512xf32> to vector<8x128xf32>
    %554 = math.tanh %553 : vector<8x128xf32>
    %555 = vector.extract_strided_slice %552 {offsets = [0, 0], sizes = [8, 128], strides = [1, 1]} : vector<8x384xf32> to vector<8x128xf32>
    %556 = vector.extract_strided_slice %552 {offsets = [0, 128], sizes = [8, 128], strides = [1, 1]} : vector<8x384xf32> to vector<8x128xf32>
    %557 = vector.extract_strided_slice %552 {offsets = [0, 256], sizes = [8, 128], strides = [1, 1]} : vector<8x384xf32> to vector<8x128xf32>
    %558 = arith.mulf %556, %531 : vector<8x128xf32>
    %559 = arith.mulf %555, %554 : vector<8x128xf32>
    %560 = arith.addf %558, %559 : vector<8x128xf32>
    %561 = math.tanh %560 : vector<8x128xf32>
    %562 = arith.mulf %557, %561 : vector<8x128xf32>
    %563 = vector.extract_strided_slice %562 {offsets = [0, 0], sizes = [8, 32], strides = [1, 1]} : vector<8x128xf32> to vector<8x32xf32>
    %c8_399 = arith.constant 8 : index
    %c0_400 = arith.constant 0 : index
    %564 = vector.load %arg12[%c8_399, %c0_400] : memref<64x32xf32, #tpu.memory_space<vmem>>, vector<8x32xf32>
    tpu.vector_store %arg12[%c8_399, %c0_400], %563 {strides = array<i32>} : memref<64x32xf32, #tpu.memory_space<vmem>>, vector<8x32xf32>,
    %c16_401 = arith.constant 16 : index
    %c0_402 = arith.constant 0 : index
    %565 = vector.load %arg11[%c16_401, %c0_402] : memref<64x512xf32, #tpu.memory_space<vmem>>, vector<8x512xf32>
    %566 = vector.extract_strided_slice %562 {offsets = [0, 0], sizes = [8, 32], strides = [1, 1]} : vector<8x128xf32> to vector<8x32xf32>
    %c0_403 = arith.constant 0 : index
    %c0_404 = arith.constant 0 : index
    %567 = vector.load %arg5[%c0_403, %c0_404] : memref<32x512xf32, #tpu.memory_space<vmem>>, vector<32x512xf32>
    %cst_405 = arith.constant dense<0.000000e+00> : vector<8x512xf32>
    %568 = tpu.matmul %566, %567, %cst_405 {dimension_numbers = #tpu.dot_dimension_numbers<[1], [0], [0], [1], [0, 0, 1, 1], [], []>} : vector<8x32xf32>, vector<32x512xf32>, vector<8x512xf32> -> vector<8x512xf32>
    %569 = arith.addf %565, %568 : vector<8x512xf32>
    %570 = vector.extract_strided_slice %569 {offsets = [0, 0], sizes = [8, 384], strides = [1, 1]} : vector<8x512xf32> to vector<8x384xf32>
    %571 = arith.negf %570 : vector<8x384xf32>
    %572 = math.exp %571 : vector<8x384xf32>
    %cst_406 = arith.constant 1.000000e+00 : f32
    %573 = vector.broadcast %cst_406 : f32 to vector<8x384xf32>
    %574 = arith.addf %573, %572 : vector<8x384xf32>
    %575 = arith.divf %573, %574 : vector<8x384xf32>
    %576 = vector.extract_strided_slice %569 {offsets = [0, 384], sizes = [8, 128], strides = [1, 1]} : vector<8x512xf32> to vector<8x128xf32>
    %577 = math.tanh %576 : vector<8x128xf32>
    %578 = vector.extract_strided_slice %575 {offsets = [0, 0], sizes = [8, 128], strides = [1, 1]} : vector<8x384xf32> to vector<8x128xf32>
    %579 = vector.extract_strided_slice %575 {offsets = [0, 128], sizes = [8, 128], strides = [1, 1]} : vector<8x384xf32> to vector<8x128xf32>
    %580 = vector.extract_strided_slice %575 {offsets = [0, 256], sizes = [8, 128], strides = [1, 1]} : vector<8x384xf32> to vector<8x128xf32>
    %581 = arith.mulf %579, %560 : vector<8x128xf32>
    %582 = arith.mulf %578, %577 : vector<8x128xf32>
    %583 = arith.addf %581, %582 : vector<8x128xf32>
    %584 = math.tanh %583 : vector<8x128xf32>
    %585 = arith.mulf %580, %584 : vector<8x128xf32>
    %586 = vector.extract_strided_slice %585 {offsets = [0, 0], sizes = [8, 32], strides = [1, 1]} : vector<8x128xf32> to vector<8x32xf32>
    %c16_407 = arith.constant 16 : index
    %c0_408 = arith.constant 0 : index
    %587 = vector.load %arg12[%c16_407, %c0_408] : memref<64x32xf32, #tpu.memory_space<vmem>>, vector<8x32xf32>
    tpu.vector_store %arg12[%c16_407, %c0_408], %586 {strides = array<i32>} : memref<64x32xf32, #tpu.memory_space<vmem>>, vector<8x32xf32>,
    %c24_409 = arith.constant 24 : index
    %c0_410 = arith.constant 0 : index
    %588 = vector.load %arg11[%c24_409, %c0_410] : memref<64x512xf32, #tpu.memory_space<vmem>>, vector<8x512xf32>
    %589 = vector.extract_strided_slice %585 {offsets = [0, 0], sizes = [8, 32], strides = [1, 1]} : vector<8x128xf32> to vector<8x32xf32>
    %c0_411 = arith.constant 0 : index
    %c0_412 = arith.constant 0 : index
    %590 = vector.load %arg5[%c0_411, %c0_412] : memref<32x512xf32, #tpu.memory_space<vmem>>, vector<32x512xf32>
    %cst_413 = arith.constant dense<0.000000e+00> : vector<8x512xf32>
    %591 = tpu.matmul %589, %590, %cst_413 {dimension_numbers = #tpu.dot_dimension_numbers<[1], [0], [0], [1], [0, 0, 1, 1], [], []>} : vector<8x32xf32>, vector<32x512xf32>, vector<8x512xf32> -> vector<8x512xf32>
    %592 = arith.addf %588, %591 : vector<8x512xf32>
    %593 = vector.extract_strided_slice %592 {offsets = [0, 0], sizes = [8, 384], strides = [1, 1]} : vector<8x512xf32> to vector<8x384xf32>
    %594 = arith.negf %593 : vector<8x384xf32>
    %595 = math.exp %594 : vector<8x384xf32>
    %cst_414 = arith.constant 1.000000e+00 : f32
    %596 = vector.broadcast %cst_414 : f32 to vector<8x384xf32>
    %597 = arith.addf %596, %595 : vector<8x384xf32>
    %598 = arith.divf %596, %597 : vector<8x384xf32>
    %599 = vector.extract_strided_slice %592 {offsets = [0, 384], sizes = [8, 128], strides = [1, 1]} : vector<8x512xf32> to vector<8x128xf32>
    %600 = math.tanh %599 : vector<8x128xf32>
    %601 = vector.extract_strided_slice %598 {offsets = [0, 0], sizes = [8, 128], strides = [1, 1]} : vector<8x384xf32> to vector<8x128xf32>
    %602 = vector.extract_strided_slice %598 {offsets = [0, 128], sizes = [8, 128], strides = [1, 1]} : vector<8x384xf32> to vector<8x128xf32>
    %603 = vector.extract_strided_slice %598 {offsets = [0, 256], sizes = [8, 128], strides = [1, 1]} : vector<8x384xf32> to vector<8x128xf32>
    %604 = arith.mulf %602, %583 : vector<8x128xf32>
    %605 = arith.mulf %601, %600 : vector<8x128xf32>
    %606 = arith.addf %604, %605 : vector<8x128xf32>
    %607 = math.tanh %606 : vector<8x128xf32>
    %608 = arith.mulf %603, %607 : vector<8x128xf32>
    %609 = vector.extract_strided_slice %608 {offsets = [0, 0], sizes = [8, 32], strides = [1, 1]} : vector<8x128xf32> to vector<8x32xf32>
    %c24_415 = arith.constant 24 : index
    %c0_416 = arith.constant 0 : index
    %610 = vector.load %arg12[%c24_415, %c0_416] : memref<64x32xf32, #tpu.memory_space<vmem>>, vector<8x32xf32>
    tpu.vector_store %arg12[%c24_415, %c0_416], %609 {strides = array<i32>} : memref<64x32xf32, #tpu.memory_space<vmem>>, vector<8x32xf32>,
    %c32_417 = arith.constant 32 : index
    %c0_418 = arith.constant 0 : index
    %611 = vector.load %arg11[%c32_417, %c0_418] : memref<64x512xf32, #tpu.memory_space<vmem>>, vector<8x512xf32>
    %612 = vector.extract_strided_slice %608 {offsets = [0, 0], sizes = [8, 32], strides = [1, 1]} : vector<8x128xf32> to vector<8x32xf32>
    %c0_419 = arith.constant 0 : index
    %c0_420 = arith.constant 0 : index
    %613 = vector.load %arg5[%c0_419, %c0_420] : memref<32x512xf32, #tpu.memory_space<vmem>>, vector<32x512xf32>
    %cst_421 = arith.constant dense<0.000000e+00> : vector<8x512xf32>
    %614 = tpu.matmul %612, %613, %cst_421 {dimension_numbers = #tpu.dot_dimension_numbers<[1], [0], [0], [1], [0, 0, 1, 1], [], []>} : vector<8x32xf32>, vector<32x512xf32>, vector<8x512xf32> -> vector<8x512xf32>
    %615 = arith.addf %611, %614 : vector<8x512xf32>
    %616 = vector.extract_strided_slice %615 {offsets = [0, 0], sizes = [8, 384], strides = [1, 1]} : vector<8x512xf32> to vector<8x384xf32>
    %617 = arith.negf %616 : vector<8x384xf32>
    %618 = math.exp %617 : vector<8x384xf32>
    %cst_422 = arith.constant 1.000000e+00 : f32
    %619 = vector.broadcast %cst_422 : f32 to vector<8x384xf32>
    %620 = arith.addf %619, %618 : vector<8x384xf32>
    %621 = arith.divf %619, %620 : vector<8x384xf32>
    %622 = vector.extract_strided_slice %615 {offsets = [0, 384], sizes = [8, 128], strides = [1, 1]} : vector<8x512xf32> to vector<8x128xf32>
    %623 = math.tanh %622 : vector<8x128xf32>
    %624 = vector.extract_strided_slice %621 {offsets = [0, 0], sizes = [8, 128], strides = [1, 1]} : vector<8x384xf32> to vector<8x128xf32>
    %625 = vector.extract_strided_slice %621 {offsets = [0, 128], sizes = [8, 128], strides = [1, 1]} : vector<8x384xf32> to vector<8x128xf32>
    %626 = vector.extract_strided_slice %621 {offsets = [0, 256], sizes = [8, 128], strides = [1, 1]} : vector<8x384xf32> to vector<8x128xf32>
    %627 = arith.mulf %625, %606 : vector<8x128xf32>
    %628 = arith.mulf %624, %623 : vector<8x128xf32>
    %629 = arith.addf %627, %628 : vector<8x128xf32>
    %630 = math.tanh %629 : vector<8x128xf32>
    %631 = arith.mulf %626, %630 : vector<8x128xf32>
    %632 = vector.extract_strided_slice %631 {offsets = [0, 0], sizes = [8, 32], strides = [1, 1]} : vector<8x128xf32> to vector<8x32xf32>
    %c32_423 = arith.constant 32 : index
    %c0_424 = arith.constant 0 : index
    %633 = vector.load %arg12[%c32_423, %c0_424] : memref<64x32xf32, #tpu.memory_space<vmem>>, vector<8x32xf32>
    tpu.vector_store %arg12[%c32_423, %c0_424], %632 {strides = array<i32>} : memref<64x32xf32, #tpu.memory_space<vmem>>, vector<8x32xf32>,
    %c40_425 = arith.constant 40 : index
    %c0_426 = arith.constant 0 : index
    %634 = vector.load %arg11[%c40_425, %c0_426] : memref<64x512xf32, #tpu.memory_space<vmem>>, vector<8x512xf32>
    %635 = vector.extract_strided_slice %631 {offsets = [0, 0], sizes = [8, 32], strides = [1, 1]} : vector<8x128xf32> to vector<8x32xf32>
    %c0_427 = arith.constant 0 : index
    %c0_428 = arith.constant 0 : index
    %636 = vector.load %arg5[%c0_427, %c0_428] : memref<32x512xf32, #tpu.memory_space<vmem>>, vector<32x512xf32>
    %cst_429 = arith.constant dense<0.000000e+00> : vector<8x512xf32>
    %637 = tpu.matmul %635, %636, %cst_429 {dimension_numbers = #tpu.dot_dimension_numbers<[1], [0], [0], [1], [0, 0, 1, 1], [], []>} : vector<8x32xf32>, vector<32x512xf32>, vector<8x512xf32> -> vector<8x512xf32>
    %638 = arith.addf %634, %637 : vector<8x512xf32>
    %639 = vector.extract_strided_slice %638 {offsets = [0, 0], sizes = [8, 384], strides = [1, 1]} : vector<8x512xf32> to vector<8x384xf32>
    %640 = arith.negf %639 : vector<8x384xf32>
    %641 = math.exp %640 : vector<8x384xf32>
    %cst_430 = arith.constant 1.000000e+00 : f32
    %642 = vector.broadcast %cst_430 : f32 to vector<8x384xf32>
    %643 = arith.addf %642, %641 : vector<8x384xf32>
    %644 = arith.divf %642, %643 : vector<8x384xf32>
    %645 = vector.extract_strided_slice %638 {offsets = [0, 384], sizes = [8, 128], strides = [1, 1]} : vector<8x512xf32> to vector<8x128xf32>
    %646 = math.tanh %645 : vector<8x128xf32>
    %647 = vector.extract_strided_slice %644 {offsets = [0, 0], sizes = [8, 128], strides = [1, 1]} : vector<8x384xf32> to vector<8x128xf32>
    %648 = vector.extract_strided_slice %644 {offsets = [0, 128], sizes = [8, 128], strides = [1, 1]} : vector<8x384xf32> to vector<8x128xf32>
    %649 = vector.extract_strided_slice %644 {offsets = [0, 256], sizes = [8, 128], strides = [1, 1]} : vector<8x384xf32> to vector<8x128xf32>
    %650 = arith.mulf %648, %629 : vector<8x128xf32>
    %651 = arith.mulf %647, %646 : vector<8x128xf32>
    %652 = arith.addf %650, %651 : vector<8x128xf32>
    %653 = math.tanh %652 : vector<8x128xf32>
    %654 = arith.mulf %649, %653 : vector<8x128xf32>
    %655 = vector.extract_strided_slice %654 {offsets = [0, 0], sizes = [8, 32], strides = [1, 1]} : vector<8x128xf32> to vector<8x32xf32>
    %c40_431 = arith.constant 40 : index
    %c0_432 = arith.constant 0 : index
    %656 = vector.load %arg12[%c40_431, %c0_432] : memref<64x32xf32, #tpu.memory_space<vmem>>, vector<8x32xf32>
    tpu.vector_store %arg12[%c40_431, %c0_432], %655 {strides = array<i32>} : memref<64x32xf32, #tpu.memory_space<vmem>>, vector<8x32xf32>,
    %c48_433 = arith.constant 48 : index
    %c0_434 = arith.constant 0 : index
    %657 = vector.load %arg11[%c48_433, %c0_434] : memref<64x512xf32, #tpu.memory_space<vmem>>, vector<8x512xf32>
    %658 = vector.extract_strided_slice %654 {offsets = [0, 0], sizes = [8, 32], strides = [1, 1]} : vector<8x128xf32> to vector<8x32xf32>
    %c0_435 = arith.constant 0 : index
    %c0_436 = arith.constant 0 : index
    %659 = vector.load %arg5[%c0_435, %c0_436] : memref<32x512xf32, #tpu.memory_space<vmem>>, vector<32x512xf32>
    %cst_437 = arith.constant dense<0.000000e+00> : vector<8x512xf32>
    %660 = tpu.matmul %658, %659, %cst_437 {dimension_numbers = #tpu.dot_dimension_numbers<[1], [0], [0], [1], [0, 0, 1, 1], [], []>} : vector<8x32xf32>, vector<32x512xf32>, vector<8x512xf32> -> vector<8x512xf32>
    %661 = arith.addf %657, %660 : vector<8x512xf32>
    %662 = vector.extract_strided_slice %661 {offsets = [0, 0], sizes = [8, 384], strides = [1, 1]} : vector<8x512xf32> to vector<8x384xf32>
    %663 = arith.negf %662 : vector<8x384xf32>
    %664 = math.exp %663 : vector<8x384xf32>
    %cst_438 = arith.constant 1.000000e+00 : f32
    %665 = vector.broadcast %cst_438 : f32 to vector<8x384xf32>
    %666 = arith.addf %665, %664 : vector<8x384xf32>
    %667 = arith.divf %665, %666 : vector<8x384xf32>
    %668 = vector.extract_strided_slice %661 {offsets = [0, 384], sizes = [8, 128], strides = [1, 1]} : vector<8x512xf32> to vector<8x128xf32>
    %669 = math.tanh %668 : vector<8x128xf32>
    %670 = vector.extract_strided_slice %667 {offsets = [0, 0], sizes = [8, 128], strides = [1, 1]} : vector<8x384xf32> to vector<8x128xf32>
    %671 = vector.extract_strided_slice %667 {offsets = [0, 128], sizes = [8, 128], strides = [1, 1]} : vector<8x384xf32> to vector<8x128xf32>
    %672 = vector.extract_strided_slice %667 {offsets = [0, 256], sizes = [8, 128], strides = [1, 1]} : vector<8x384xf32> to vector<8x128xf32>
    %673 = arith.mulf %671, %652 : vector<8x128xf32>
    %674 = arith.mulf %670, %669 : vector<8x128xf32>
    %675 = arith.addf %673, %674 : vector<8x128xf32>
    %676 = math.tanh %675 : vector<8x128xf32>
    %677 = arith.mulf %672, %676 : vector<8x128xf32>
    %678 = vector.extract_strided_slice %677 {offsets = [0, 0], sizes = [8, 32], strides = [1, 1]} : vector<8x128xf32> to vector<8x32xf32>
    %c48_439 = arith.constant 48 : index
    %c0_440 = arith.constant 0 : index
    %679 = vector.load %arg12[%c48_439, %c0_440] : memref<64x32xf32, #tpu.memory_space<vmem>>, vector<8x32xf32>
    tpu.vector_store %arg12[%c48_439, %c0_440], %678 {strides = array<i32>} : memref<64x32xf32, #tpu.memory_space<vmem>>, vector<8x32xf32>,
    %c56_441 = arith.constant 56 : index
    %c0_442 = arith.constant 0 : index
    %680 = vector.load %arg11[%c56_441, %c0_442] : memref<64x512xf32, #tpu.memory_space<vmem>>, vector<8x512xf32>
    %681 = vector.extract_strided_slice %677 {offsets = [0, 0], sizes = [8, 32], strides = [1, 1]} : vector<8x128xf32> to vector<8x32xf32>
    %c0_443 = arith.constant 0 : index
    %c0_444 = arith.constant 0 : index
    %682 = vector.load %arg5[%c0_443, %c0_444] : memref<32x512xf32, #tpu.memory_space<vmem>>, vector<32x512xf32>
    %cst_445 = arith.constant dense<0.000000e+00> : vector<8x512xf32>
    %683 = tpu.matmul %681, %682, %cst_445 {dimension_numbers = #tpu.dot_dimension_numbers<[1], [0], [0], [1], [0, 0, 1, 1], [], []>} : vector<8x32xf32>, vector<32x512xf32>, vector<8x512xf32> -> vector<8x512xf32>
    %684 = arith.addf %680, %683 : vector<8x512xf32>
    %685 = vector.extract_strided_slice %684 {offsets = [0, 0], sizes = [8, 384], strides = [1, 1]} : vector<8x512xf32> to vector<8x384xf32>
    %686 = arith.negf %685 : vector<8x384xf32>
    %687 = math.exp %686 : vector<8x384xf32>
    %cst_446 = arith.constant 1.000000e+00 : f32
    %688 = vector.broadcast %cst_446 : f32 to vector<8x384xf32>
    %689 = arith.addf %688, %687 : vector<8x384xf32>
    %690 = arith.divf %688, %689 : vector<8x384xf32>
    %691 = vector.extract_strided_slice %684 {offsets = [0, 384], sizes = [8, 128], strides = [1, 1]} : vector<8x512xf32> to vector<8x128xf32>
    %692 = math.tanh %691 : vector<8x128xf32>
    %693 = vector.extract_strided_slice %690 {offsets = [0, 0], sizes = [8, 128], strides = [1, 1]} : vector<8x384xf32> to vector<8x128xf32>
    %694 = vector.extract_strided_slice %690 {offsets = [0, 128], sizes = [8, 128], strides = [1, 1]} : vector<8x384xf32> to vector<8x128xf32>
    %695 = vector.extract_strided_slice %690 {offsets = [0, 256], sizes = [8, 128], strides = [1, 1]} : vector<8x384xf32> to vector<8x128xf32>
    %696 = arith.mulf %694, %675 : vector<8x128xf32>
    %697 = arith.mulf %693, %692 : vector<8x128xf32>
    %698 = arith.addf %696, %697 : vector<8x128xf32>
    %699 = math.tanh %698 : vector<8x128xf32>
    %700 = arith.mulf %695, %699 : vector<8x128xf32>
    %701 = vector.extract_strided_slice %700 {offsets = [0, 0], sizes = [8, 32], strides = [1, 1]} : vector<8x128xf32> to vector<8x32xf32>
    %c56_447 = arith.constant 56 : index
    %c0_448 = arith.constant 0 : index
    %702 = vector.load %arg12[%c56_447, %c0_448] : memref<64x32xf32, #tpu.memory_space<vmem>>, vector<8x32xf32>
    tpu.vector_store %arg12[%c56_447, %c0_448], %701 {strides = array<i32>} : memref<64x32xf32, #tpu.memory_space<vmem>>, vector<8x32xf32>,
    %c0_449 = arith.constant 0 : index
    %c0_450 = arith.constant 0 : index
    %703 = vector.load %arg12[%c0_449, %c0_450] : memref<64x32xf32, #tpu.memory_space<vmem>>, vector<64x32xf32>
    %c0_451 = arith.constant 0 : index
    %c0_452 = arith.constant 0 : index
    %704 = vector.load %arg7[%c0_451, %c0_452] : memref<32x128xf32, #tpu.memory_space<vmem>>, vector<32x128xf32>
    %cst_453 = arith.constant dense<0.000000e+00> : vector<64x128xf32>
    %705 = tpu.matmul %703, %704, %cst_453 {dimension_numbers = #tpu.dot_dimension_numbers<[1], [0], [0], [1], [0, 0, 1, 1], [], []>} : vector<64x32xf32>, vector<32x128xf32>, vector<64x128xf32> -> vector<64x128xf32>
    %c0_454 = arith.constant 0 : index
    %c0_455 = arith.constant 0 : index
    %706 = vector.load %arg8[%c0_454, %c0_455] : memref<1x128xf32, #tpu.memory_space<vmem>>, vector<1x128xf32>
    %707 = vector.broadcast %706 : vector<1x128xf32> to vector<64x128xf32>
    %708 = arith.addf %705, %707 : vector<64x128xf32>
    %cst_456 = arith.constant dense<0xFF800000> : vector<64xf32>
    %709 = vector.multi_reduction <maximumf>, %708, %cst_456 [1] : vector<64x128xf32> to vector<64xf32>
    %710 = vector.shape_cast %709 : vector<64xf32> to vector<64x1xf32>
    %711 = vector.broadcast %710 : vector<64x1xf32> to vector<64x128xf32>
    %712 = arith.subf %708, %711 : vector<64x128xf32>
    %713 = math.exp %712 : vector<64x128xf32>
    %cst_457 = arith.constant dense<0.000000e+00> : vector<64xf32>
    %714 = vector.multi_reduction <add>, %713, %cst_457 [1] : vector<64x128xf32> to vector<64xf32>
    %715 = vector.shape_cast %714 : vector<64xf32> to vector<64x1xf32>
    %716 = math.log %715 : vector<64x1xf32>
    %717 = vector.broadcast %716 : vector<64x1xf32> to vector<64x128xf32>
    %718 = arith.subf %712, %717 : vector<64x128xf32>
    %719 = vector.shape_cast %718 : vector<64x128xf32> to vector<8x8x128xf32>
    %c0_458 = arith.constant 0 : index
    %c0_459 = arith.constant 0 : index
    %c0_460 = arith.constant 0 : index
    %720 = vector.load %arg9[%c0_458, %c0_459, %c0_460] : memref<8x8x128xf32, #tpu.memory_space<vmem>>, vector<8x8x128xf32>
    tpu.vector_store %arg9[%c0_458, %c0_459, %c0_460], %719 {strides = array<i32>} : memref<8x8x128xf32, #tpu.memory_space<vmem>>, vector<8x8x128xf32>,
    return
  }
  func.func @transform_0(%arg0: i32, %arg1: memref<16x8xi32, #tpu.memory_space<smem>>) -> (i32, i32, i32) {
    %c0_i32 = arith.constant 0 : i32
    %c0_i32_0 = arith.constant 0 : i32
    %c0_i32_1 = arith.constant 0 : i32
    return %c0_i32, %arg0, %c0_i32_0 : i32, i32, i32
  }
  func.func @transform_1(%arg0: i32, %arg1: memref<16x8xi32, #tpu.memory_space<smem>>) -> (i32, i32, i32) {
    %c0_i32 = arith.constant 0 : i32
    %c0_i32_0 = arith.constant 0 : i32
    %c0_i32_1 = arith.constant 0 : i32
    %c0_i32_2 = arith.constant 0 : i32
    return %c0_i32, %c0_i32_0, %c0_i32_1 : i32, i32, i32
  }
  func.func @transform_2(%arg0: i32, %arg1: memref<16x8xi32, #tpu.memory_space<smem>>) -> (i32, i32) {
    %c0_i32 = arith.constant 0 : i32
    %c0_i32_0 = arith.constant 0 : i32
    %c0_i32_1 = arith.constant 0 : i32
    return %c0_i32, %c0_i32_0 : i32, i32
  }
  func.func @transform_3(%arg0: i32, %arg1: memref<16x8xi32, #tpu.memory_space<smem>>) -> (i32, i32) {
    %c0_i32 = arith.constant 0 : i32
    %c0_i32_0 = arith.constant 0 : i32
    %c0_i32_1 = arith.constant 0 : i32
    return %c0_i32, %c0_i32_0 : i32, i32
  }
  func.func @transform_4(%arg0: i32, %arg1: memref<16x8xi32, #tpu.memory_space<smem>>) -> (i32, i32) {
    %c0_i32 = arith.constant 0 : i32
    %c0_i32_0 = arith.constant 0 : i32
    %c0_i32_1 = arith.constant 0 : i32
    return %c0_i32, %c0_i32_0 : i32, i32
  }
  func.func @transform_5(%arg0: i32, %arg1: memref<16x8xi32, #tpu.memory_space<smem>>) -> (i32, i32) {
    %c0_i32 = arith.constant 0 : i32
    %c0_i32_0 = arith.constant 0 : i32
    %c0_i32_1 = arith.constant 0 : i32
    return %c0_i32, %c0_i32_0 : i32, i32
  }
  func.func @transform_6(%arg0: i32, %arg1: memref<16x8xi32, #tpu.memory_space<smem>>) -> (i32, i32) {
    %c0_i32 = arith.constant 0 : i32
    %c0_i32_0 = arith.constant 0 : i32
    %c0_i32_1 = arith.constant 0 : i32
    return %c0_i32, %c0_i32_0 : i32, i32
  }
  func.func @transform_7(%arg0: i32, %arg1: memref<16x8xi32, #tpu.memory_space<smem>>) -> (i32, i32, i32) {
    %c0_i32 = arith.constant 0 : i32
    %c0_i32_0 = arith.constant 0 : i32
    %c0_i32_1 = arith.constant 0 : i32
    return %c0_i32, %arg0, %c0_i32_0 : i32, i32, i32
  }
}

</mosaic_0001>

<bundles_post_ra>
// kernel: tpu_custom_call.1
= control target key start
LH: loop header
LB: loop body
LE: loop exit
PB: predicated region body
PF: predicated region fallthrough
CT: control target
= control target key end

     0   :  { %s4452_s0 = inlined_call_operand.vmem [shape: s32[16,8], index: 0, kind: input, shape index: {}]   ;;  %s4453_s1 = inlined_call_operand.hbm [shape: f32[8,16,64], index: 1, kind: input, shape index: {}]   ;;  %s4454_s2 = inlined_call_operand.hbm [shape: f32[50,1,64], index: 2, kind: input, shape index: {}]   ;;  %s4455_s3 = inlined_call_operand.hbm [shape: f32[128,512], index: 3, kind: input, shape index: {}]   ;;  %s4456_s4 = inlined_call_operand.hbm [shape: f32[32,512], index: 4, kind: input, shape index: {}]   ;;  %s4457_s5 = inlined_call_operand.vmem [shape: f32[1,512], index: 5, kind: input, shape index: {}]   ;;  %s4458_s6 = inlined_call_operand.vmem [shape: f32[32,128], index: 6, kind: input, shape index: {}]   ;;  %s4459_s7 = inlined_call_operand.vmem [shape: f32[1,128], index: 7, kind: input, shape index: {}]   ;;  %s4460_s8 = inlined_call_operand.hbm [shape: f32[8,16,128], index: 8, kind: output, shape index: {}]  }
   0x1   :  { %4475 = sst [smem:[#allocation28_spill]] %s4453_s1  ;;  %s13_s29 = sshll.u32 %s4452_s0, 4  ;;  %s14_s29 = int_to_ptr.vmem [resolvable:$true] %s13_s29 }
   0x2   :  { %4476 = sst [smem:[#allocation29_spill]] %s4454_s2  ;;  %s3484_s30 = scalar_lea.vmem %s14_s29, 256 }
   0x3   :  { %4477 = sst [smem:[#allocation30_spill]] %s4455_s3  ;;  %p3485_p0 = scmp.ne.s32.totalorder %s14_s29, %s3484_s30 }
   0x4   :  { %4478 = sst [smem:[#allocation31_spill]] %s4456_s4  ;;  %p3489_p1 = scmp.lt.s32.totalorder %s14_s29, %s14_s29 }
   0x5   :  { %4479 = sst [smem:[#allocation32_spill]] %s4460_s8  ;;  %p3490_p2 = scmp.lt.s32.totalorder %s3484_s30, %s3484_s30 }
   0x7   :  { %p3491_p3 = por %p3490_p2, %p3489_p1 }
   0x9   :  { %p3492_p4 = pnand %p3491_p3, %p3485_p0 }
   0xb   :  { %3495 = shalt.err (!%p3492_p4)  }
   0xc   :  { %s3688_s9 = smov [#allocation6]  }
   0xd   :  { %16 = dma.vmem_to_smem %s14_s29, 256, %s3688_s9, [#allocation5] }
   0xe   :  { %3654 = dma.done.wait [#allocation5], 256 }
   0xf   :  { %3655 = vsyncadd [#allocation5], 4294967040 }
  0x10   :  { %18 = sfence }
  0x11   :  { %19 = vsyncpa [#allocation8], 0 }
  0x12   :  { %21 = vsyncpa [#allocation8 + $0x1], 0 }
  0x13   :  { %22 = vsyncpa [#allocation11], 0 }
  0x14   :  { %23 = vsyncpa [#allocation14], 0 }
  0x15   :  { %24 = vsyncpa [#allocation9], 0 }
  0x16   :  { %26 = vsyncpa [#allocation9 + $0x1], 0  ;;  %s3754_s0 = smov 0   ;;  %s3756_s10 = smov 0  }
  0x17   :  { %s3758_s11 = smov 0   ;;  %s3760_s12 = smov 0  }
  0x18 LB: > { %4480 = sst [smem:[#allocation21_spill]] %s3674_s0  ;;  %s3775_s13 = sadd.s32 4294967295, %s3686_s12   ;;  %s3686_s12 = sphi %s3760_s12, %s4516_s12   ;;  %s3682_s11 = sphi %s3758_s11, %s4519_s11   ;;  %s3678_s10 = sphi %s3756_s10, %s4518_s10   ;;  %s3674_s0 = sphi %s3754_s0, %s4517_s0  }
  0x19   : > { %4481 = sst [smem:[#allocation22_spill]] %s3678_s10  ;;  %s2871_s14 = sadd.s32 4294967294, %s3686_s12  }
  0x1a   : > { %4482 = sst [smem:[#allocation23_spill]] %s3682_s11  ;;  %s3779_s15 = sadd.s32 1, %s3686_s12  }
  0x1b   : > { %4483 = sst [smem:[#allocation24_spill]] %s3686_s12  ;;  %s39_s16 = sadd.s32 1, %s3682_s11 }
  0x1c   : > { %4484 = sst [smem:[#allocation25_spill]] %s3779_s15  ;;  %s36_s17 = ssub.s32 %s3686_s12, %s3779_s15 }
  0x1d   : > { %p46_p5 = scmp.ne.s32.totalorder %s3682_s11, %s3678_s10  ;;  %p37_p6 = scmp.eq.s32.totalorder %s36_s17, 0 }
  0x1e   : > { %p47_p7 = scmp.eq.s32.totalorder %s3686_s12, 0  ;;  %p52_p8 = scmp.ne.s32.totalorder %s3678_s10, %s3674_s0 }
  0x1f   : > { %p4461_p9 = scmp.eq.s32.totalorder %s3775_s13, 0  ;;  %p202_p12 = scmp.eq.s32.totalorder %s3775_s13, 1 }
  0x20   : > { %s3791_s18 = scalar_select %p37_p6, %s3682_s11, %s39_s16  }
  0x21   : > { %p3793_p10 = por %p47_p7, %p46_p5  ;;  %p3799_p11 = por %p4461_p9, %p52_p8 }
  0x22   : > { %4485 = sst [smem:[#allocation26_spill]] %s3791_s18  ;;  %p208_p13 = scmp.eq.s32.totalorder %s2871_s14, 1 }
  0x23   : > { %s4486_s19 = scalar_select %p3793_p10, 1, 0 }
  0x24   : > { %s4487_s20 = scalar_select %p3799_p11, 1, 0 }
  0x25   : > { %p2872_p0 = scmp.ge.s32.totalorder %s3686_s12, 1  ;;  %p215_p1 = scmp.lt.s32.totalorder %s3686_s12, 3 }
  0x26   : > { %p3806_p2 = por %p202_p12, %p46_p5  ;;  %p3810_p3 = por %p208_p13, %p52_p8 }
  0x27   : > { %p3814_p4 = pnand %p2872_p0, %p215_p1  ;;  %s3689_s24 = smov [#allocation10]  }
  0x28   : > { %s4488_s21 = scalar_select %p3806_p2, 1, 0 }
  0x29   : > { %s4489_s22 = scalar_select %p3810_p3, 1, 0 }
  0x2a   : > { %s4491_s23 = scalar_select %p3814_p4, 1, 0 }
  0x2b   : > { %4490 = sst [smem:[#allocation27_spill]] %s4489_s22  ;;  %p3254_p6 = pneg %p3814_p4 }
  0x2c   : > { %s227_s25 = sshll.u32 %s3689_s24, 4  ;;  %s3690_s27 = smov [#allocation12]   ;;  %s228_s25 = int_to_ptr.vmem [resolvable:$true] %s227_s25 }
  0x2d   : > { %p3822_p7 = pnand %p3254_p6, %p4461_p9  ;;  %s240_s28 = sshll.u32 %s3690_s27, 4  ;;  %s241_s28 = int_to_ptr.vmem [resolvable:$true] %s240_s28 }
  0x2e   : > { %s4493_s2 = sld [smem:[#allocation29_spill]] }
  0x2f   : > { %p3836_p13 = pneg %p3822_p7 }
  0x34   : > { %s3496_s9 = scalar_lea.hbm %s4493_s2, 800 }
  0x35   : > { %p3497_p12 = scmp.ne.s32.totalorder %s4493_s2, %s3496_s9  ;;  %p3503_p6 = scmp.lt.u32.totalorder %s3496_s9, %s4493_s2 }
  0x37   : > { %p3499_p0 = pnand %p3836_p13, %p3497_p12 }
  0x39   : > { %p3500_p1 = pneg %p3499_p0 }
  0x3b   : > { %p3505_p5 = pnand %p3503_p6, %p3500_p1 }
  0x3d   : > { %3508 = shalt.err (!%p3505_p5)
}
  0x3e   : > { %s3509_s27 = scalar_lea.vmem %s228_s25, 800  ;;  %p3517_p2 = scmp.lt.s32.totalorder %s228_s25, %s228_s25 }
  0x3f   : > { %p3510_p9 = scmp.ne.s32.totalorder %s228_s25, %s3509_s27  ;;  %p3518_p11 = scmp.lt.s32.totalorder %s3509_s27, %s3509_s27 }
  0x41   : > { %p3512_p8 = pnand %p3510_p9, %p3836_p13  ;;  %p3519_p4 = por %p3518_p11, %p3517_p2 }
  0x43   : > { %p3513_p3 = pneg %p3512_p8 }
  0x45   : > { %p3520_p10 = pnand %p3519_p4, %p3513_p3 }
  0x47   : > { %3523 = shalt.err (!%p3520_p10)
}
  0x48   : > { %s3691_s29 = smov 16   ;;  %s3692_s18 = smov 1  }
  0x49   : > { %3257 = dma.hbm_to_vmem [thread:$0]  (!%p3822_p7), %s4493_s2, 800, %s228_s25, [#allocation11], %s3691_s29, %s3691_s29, %s3692_s18  }
  0x4a   : > { %p4495_p5 = scmp.ne.s32.totalorder %s4486_s19, 0  ;;  %p4496_p12 = scmp.lt.s32.totalorder %s3686_s12, 2 }
  0x4b   : > { %s4498_s3 = sld [smem:[#allocation30_spill]] }
  0x4c   : > { %p3856_p9 = pnand %p4496_p12, %p4495_p5 }
  0x4e   : > { %s4497_s14 = scalar_select %p3856_p9, 1, 0 }
  0x51   : > { %s3524_s27 = scalar_lea.hbm %s4498_s3, 8192 }
  0x52   : > { %p3525_p10 = scmp.ne.s32.totalorder %s4498_s3, %s3524_s27  ;;  %p3531_p3 = scmp.lt.u32.totalorder %s3524_s27, %s4498_s3 }
  0x54   : > { %p3527_p11 = pnand %p3525_p10, %p3836_p13 }
  0x56   : > { %p3528_p2 = pneg %p3527_p11 }
  0x58   : > { %p3533_p4 = pnand %p3531_p3, %p3528_p2 }
  0x5a   : > { %3536 = shalt.err (!%p3533_p4)
}
  0x5b   : > { %s3537_s19 = scalar_lea.vmem %s241_s28, 8192  ;;  %p3545_p6 = scmp.lt.s32.totalorder %s241_s28, %s241_s28 }
  0x5c   : > { %p3538_p8 = scmp.ne.s32.totalorder %s241_s28, %s3537_s19  ;;  %p3546_p5 = scmp.lt.s32.totalorder %s3537_s19, %s3537_s19 }
  0x5e   : > { %p3540_p0 = pnand %p3538_p8, %p3836_p13  ;;  %p3547_p12 = por %p3546_p5, %p3545_p6 }
  0x60   : > { %p3541_p1 = pneg %p3540_p0 }
  0x62   : > { %p3548_p9 = pnand %p3547_p12, %p3541_p1 }
  0x64   : > { %3551 = shalt.err (!%p3548_p9)
}
  0x65   : > { %s3693_s15 = smov 512   ;;  %s3694_s22 = smov 32  }
  0x66   : > { %3260 = dma.hbm_to_vmem [thread:$0]  (!%p3822_p7), %s4498_s3, 8192, %s241_s28, [#allocation11], %s3693_s15, %s3693_s15, %s3694_s22  }
  0x67   : > { %s3695_s9 = smov [#allocation13]   ;;  %s276_s24 = sand.u32 1, %s3682_s11  }
  0x68   : > { %s253_s16 = sshll.u32 %s3695_s9, 4  ;;  %s4499_s4 = sld [smem:[#allocation31_spill]]  ;;  %s254_s16 = int_to_ptr.vmem [resolvable:$true] %s253_s16 }
  0x6e   : > { %s3552_s25 = scalar_lea.hbm %s4499_s4, 2048 }
  0x6f   : > { %p3553_p9 = scmp.ne.s32.totalorder %s4499_s4, %s3552_s25  ;;  %p3559_p2 = scmp.lt.u32.totalorder %s3552_s25, %s4499_s4 }
  0x71   : > { %p3555_p10 = pnand %p3553_p9, %p3836_p13 }
  0x73   : > { %p3556_p11 = pneg %p3555_p10 }
  0x75   : > { %p3561_p3 = pnand %p3559_p2, %p3556_p11 }
  0x77   : > { %3564 = shalt.err (!%p3561_p3)
}
  0x78   : > { %s3565_s28 = scalar_lea.vmem %s254_s16, 2048  ;;  %p3573_p1 = scmp.lt.s32.totalorder %s254_s16, %s254_s16 }
  0x79   : > { %p3566_p4 = scmp.ne.s32.totalorder %s254_s16, %s3565_s28  ;;  %p3574_p6 = scmp.lt.s32.totalorder %s3565_s28, %s3565_s28 }
  0x7b   : > { %p3568_p8 = pnand %p3566_p4, %p3836_p13  ;;  %p3575_p5 = por %p3574_p6, %p3573_p1 }
  0x7d   : > { %p3569_p0 = pneg %p3568_p8 }
  0x7f   : > { %p3576_p12 = pnand %p3575_p5, %p3569_p0 }
  0x81   : > { %3579 = shalt.err (!%p3576_p12)
}
  0x82   : > { %3263 = dma.hbm_to_vmem [thread:$0]  (!%p3822_p7), %s4499_s4, 2048, %s254_s16, [#allocation14], %s3693_s15, %s3693_s15, %s3694_s22  }
  0x83   : > { %s2877_s8 = sshll.u32 %s276_s24, 6  ;;  %s2878_s0 = sshll.u32 %s3686_s12, 7 }
  0x84   : > { %s4500_s1 = sld [smem:[#allocation28_spill]]  ;;  %s280_s27 = scalar_lea.vmem [#allocation7], %s2877_s8 }
  0x85   : > { %s286_s26 = sshll.u32 %s280_s27, 4  ;;  %s3905_s30 = scalar_lea.sflag [#allocation8], %s276_s24  ;;  %s3903_s26 = int_to_ptr.vmem [resolvable:$true] %s286_s26 }
  0x86   : > { %p4501_p7 = scmp.ne.s32.totalorder %s4497_s14, 0 }
  0x88   : > { %p3582_p9 = pneg %p4501_p7 }
  0x8a   : > { %s3901_s9 = scalar_lea.hbm %s4500_s1, %s2878_s0  ;;  %s3585_s16 = scalar_lea.hbm %s4500_s1, 2048 }
  0x8b   : > { %s3580_s25 = scalar_lea.hbm %s3901_s9, 1024  ;;  %p3586_p2 = scmp.lt.u32.totalorder %s3901_s9, %s4500_s1 }
  0x8c   : > { %p3581_p13 = scmp.ne.s32.totalorder %s3901_s9, %s3580_s25  ;;  %p3587_p3 = scmp.lt.u32.totalorder %s3585_s16, %s3580_s25 }
  0x8d   : > { %p3589_p8 = scmp.lt.u32.totalorder %s3580_s25, %s3901_s9 }
  0x8e   : > { %p3583_p10 = pnand %p3582_p9, %p3581_p13  ;;  %p3588_p4 = por %p3587_p3, %p3586_p2 }
  0x90   : > { %p3584_p11 = pneg %p3583_p10  ;;  %p3590_p0 = por %p3589_p8, %p3588_p4 }
  0x92   : > { %p3591_p1 = pnand %p3590_p0, %p3584_p11 }
  0x94   : > { %3594 = shalt.err (!%p3591_p1)
}
  0x95   : > { %s3595_s24 = scalar_lea.vmem %s3903_s26, 1024  ;;  %s3696_s2 = smov [#allocation7]  }
  0x96   : > { %p3596_p6 = scmp.ne.s32.totalorder %s3903_s26, %s3595_s24  ;;  %s3600_s29 = sshll.u32 %s3696_s2, 4  ;;  %s3601_s29 = int_to_ptr.vmem [resolvable:$false] %s3600_s29 }
  0x97   : > { %s3602_s8 = scalar_lea.vmem %s3601_s29, 2048  ;;  %p3603_p13 = scmp.lt.s32.totalorder %s3903_s26, %s3601_s29 }
  0x98   : > { %p3598_p5 = pnand %p3596_p6, %p3582_p9  ;;  %p3604_p10 = scmp.lt.s32.totalorder %s3602_s8, %s3595_s24 }
  0x9a   : > { %p3599_p12 = pneg %p3598_p5  ;;  %p3605_p2 = por %p3604_p10, %p3603_p13 }
  0x9c   : > { %p3606_p3 = pnand %p3605_p2, %p3599_p12 }
  0x9e   : > { %3609 = shalt.err (!%p3606_p3)
}
  0x9f   : > { %s3697_s0 = smov 256   ;;  %s3698_s18 = smov 128  }
  0xa0   : > { %s3699_s17 = smov 8   ;;  %p4502_p9 = scmp.ne.s32.totalorder %s4491_s23, 0 }
  0xa1   : > { %3267 = dma.hbm_to_vmem [thread:$0]  (!%p4501_p7), %s3901_s9, 1024, %s3903_s26, %s3905_s30, %s3697_s0, %s3698_s18, %s3699_s17  }
  0xa2   : > { %298 = sbr.rel (%p4502_p9) target bundleno = 2920 (0xb68), region = 48  ;;  %s3936_s27 = sand.u32 (!%p4502_p9), 1, %s3678_s10  }
  0xa3   : > { %s4471_s25 = sshll.u32 (!%p4502_p9), %s3936_s27, 6  ;;  %s301_s15 = scalar_lea.sflag (!%p4502_p9), [#allocation8], %s3936_s27 }
  0xa4   : > { %s3942_s22 = scalar_lea.vmem (!%p4502_p9), [#allocation7], %s4471_s25  ;;  %p4503_p11 = scmp.ne.s32.totalorder (!%p4502_p9), %s4487_s20, 0 }
  0xa9   : > { %3657 = dma.done.wait (%p4503_p11), %s301_s15, 1024  }
  0xaa   : > { %3659 = vsyncadd (%p4503_p11), %s301_s15, 4294966272  ;;  %p4504_p7 = scmp.eq.s32.totalorder %s3775_s13, 0 }
  0xac   : > { %3661 = dma.done.wait (%p4504_p7), [#allocation11], 8992   ;;  %p4505_p4 = pmov %p4504_p7 }
  0xae   : > { %3663 = vsyncadd (%p4505_p4), [#allocation11], 4294958304  ;;  %p4506_p8 = pmov %p4505_p4 }
  0xaf   : > { %p4507_p0 = pmov %p4505_p4 }
  0xb0   : > { %3665 = dma.done.wait (%p4506_p8), [#allocation14], 2048  }
  0xb1   : > { %3667 = vsyncadd (%p4507_p0), [#allocation14], 4294965248  ;;  %v3700_v0 = vmov 0.0   ;;  %v347_v1 = vld [vmem:[%s3942_s22] sm:$0xff]  ;;  %s3701_s20 = smov 64   ;;  %v733_v5 = vld [vmem:[#allocation12] sm:$0xff] }
  0xb2   : > { %883 = vmatprep.mubr.f32.mxu0 %v3700_v0  ;;  %996 = vmatprep.mubr.f32.mxu1 %v3700_v0  ;;  %v734_v2 = vld [vmem:[#allocation12 + $0x8] sm:$0xff]  ;;  %v737_v6 = vld [vmem:[#allocation12 + $0x20] sm:$0xff]  ;;  %v736_v20 = vld [vmem:[#allocation12 + $0x18] sm:$0xff]  ;;  %s3975_s23 = sshll.u32 %s3775_s13, 10  ;;  %vm387_vm0 = vcmask 1048064   ;;  %vm401_vm1 = vcmask 516096  }
  0xb3   : > { %v738_v3 = vld [vmem:[#allocation12 + $0x28] sm:$0xff]  ;;  %363 = vrot.lane.b32.xlu0 %v347_v1, %s3701_s20  ;;  %v3000_v8 = vpack.c.bf16 %v737_v6, %v733_v5  ;;  %v741_v10 = vld [vmem:[#allocation12 + $0x40] sm:$0xff]  ;;  %v740_v21 = vld [vmem:[#allocation12 + $0x38] sm:$0xff]  ;;  %s3978_s14 = sadd.s32 128, %s3975_s23  ;;  %s398_s9 = sld [smem:[#allocation6 + %s3975_s23]]  ;;  %vm1096_vm2 = vcmask 261120  }
  0xb4   : > { %v2998_v4 = vpack.c.bf16 %v738_v3, %v734_v2  ;;  %v742_v7 = vld [vmem:[#allocation12 + $0x48] sm:$0xff]  ;;  %v745_v11 = vld [vmem:[#allocation12 + $0x60] sm:$0xff]  ;;  %v3030_v23 = vpack.c.bf16 %v740_v21, %v736_v20  ;;  %v735_v24 = vld [vmem:[#allocation12 + $0x10] sm:$0xff]  ;;  %s405_s26 = sld [smem:[#allocation6 + %s3978_s14]]  ;;  %s3983_s30 = sadd.s32 256, %s3975_s23 }
  0xb5   : > { %v746_v9 = vld [vmem:[#allocation12 + $0x68] sm:$0xff]  ;;  %v3004_v15 = vpack.c.bf16 %v745_v11, %v741_v10  ;;  %v749_v16 = vld [vmem:[#allocation12 + $0x80] sm:$0xff]  ;;  %v739_v25 = vld [vmem:[#allocation12 + $0x30] sm:$0xff]  ;;  %s3986_s16 = sadd.s32 384, %s3975_s23  ;;  %s3989_s19 = sadd.s32 512, %s3975_s23 }
  0xb6   : > { %2999 = vmatprep.subr.bf16.mxu0 %v2998_v4  ;;  %v3002_v12 = vpack.c.bf16 %v746_v9, %v742_v7  ;;  %v750_v13 = vld [vmem:[#allocation12 + $0x88] sm:$0xff]  ;;  %v753_v17 = vld [vmem:[#allocation12 + $0xa0] sm:$0xff]  ;;  %v3032_v26 = vpack.c.bf16 %v739_v25, %v735_v24  ;;  %v744_v27 = vld [vmem:[#allocation12 + $0x58] sm:$0xff]  ;;  %3031 = vmatprep.subr.bf16.mxu1 %v3030_v23  ;;  %s3992_s28 = sadd.s32 640, %s3975_s23  ;;  %s3995_s24 = sadd.s32 768, %s3975_s23 }
  0xb7   : > { %v754_v14 = vld [vmem:[#allocation12 + $0xa8] sm:$0xff]  ;;  %3001 = vmatpush1.bf16.msra.mxu0 %v3000_v8  ;;  %v3008_v28 = vpack.c.bf16 %v753_v17, %v749_v16  ;;  %v757_v29 = vld [vmem:[#allocation12 + $0xc0] sm:$0xff]  ;;  %v748_v31 = vld [vmem:[#allocation12 + $0x78] sm:$0xff]  ;;  %s3998_s2 = sadd.s32 896, %s3975_s23  ;;  %s411_s29 = sld [smem:[#allocation6 + %s3983_s30]] }
  0xb8   : > { %3003 = vmatprep.subr.bf16.mxu0 %v3002_v12  ;;  %v3006_v18 = vpack.c.bf16 %v754_v14, %v750_v13  ;;  %v758_v19 = vld [vmem:[#allocation12 + $0xc8] sm:$0xff]  ;;  %v761_v30 = vld [vmem:[#allocation12 + $0xe0] sm:$0xff]  ;;  %3033 = vmatpush1.bf16.msra.mxu1 %v3032_v26  ;;  %v3034_v34 = vpack.c.bf16 %v748_v31, %v744_v27  ;;  %v743_v35 = vld [vmem:[#allocation12 + $0x50] sm:$0xff]  ;;  %s417_s8 = sld [smem:[#allocation6 + %s3986_s16]]  ;;  %p4510_p6 = scmp.ne.s32.totalorder %s4488_s21, 0 }
  0xb9   : > { %v762_v22 = vld [vmem:[#allocation12 + $0xe8] sm:$0xff]  ;;  %v747_v36 = vld [vmem:[#allocation12 + $0x70] sm:$0xff]  ;;  %v752_v39 = vld [vmem:[#allocation12 + $0x98] sm:$0xff]  ;;  %v3012_v43 = vpack.c.bf16 %v761_v30, %v757_v29  ;;  %s423_s0 = sld [smem:[#allocation6 + %s3989_s19]] }
  0xba   : > { %v3010_v32 = vpack.c.bf16 %v762_v22, %v758_v19  ;;  %v766_v33 = vld [vmem:[#allocation12 + $0x108] sm:$0xff]  ;;  %v3036_v38 = vpack.c.bf16 %v747_v36, %v743_v35  ;;  %v756_v40 = vld [vmem:[#allocation12 + $0xb8] sm:$0xff]  ;;  %3035 = vmatprep.subr.bf16.mxu1 %v3034_v34  ;;  %v751_v42 = vld [vmem:[#allocation12 + $0x90] sm:$0xff]  ;;  %s429_s18 = sld [smem:[#allocation6 + %s3992_s28]] }
  0xbb   : > { %3005 = vmatpush1.bf16.msra.mxu0 %v3004_v15  ;;  %v770_v37 = vld [vmem:[#allocation12 + $0x128] sm:$0xff]  ;;  %v3038_v41 = vpack.c.bf16 %v756_v40, %v752_v39  ;;  %v755_v44 = vld [vmem:[#allocation12 + $0xb0] sm:$0xff]  ;;  %v765_v46 = vld [vmem:[#allocation12 + $0x100] sm:$0xff]  ;;  %s435_s17 = sld [smem:[#allocation6 + %s3995_s24]] }
  0xbc   : > { %3007 = vmatprep.subr.bf16.mxu0 %v3006_v18  ;;  %v3014_v45 = vpack.c.bf16 %v770_v37, %v766_v33  ;;  %v769_v47 = vld [vmem:[#allocation12 + $0x120] sm:$0xff]  ;;  %3037 = vmatpush1.bf16.msra.mxu1 %v3036_v38  ;;  %v3040_v48 = vpack.c.bf16 %v755_v44, %v751_v42  ;;  %v774_v49 = vld [vmem:[#allocation12 + $0x148] sm:$0xff]  ;;  %v760_v51 = vld [vmem:[#allocation12 + $0xd8] sm:$0xff]  ;;  %s441_s15 = sld [smem:[#allocation6 + %s3998_s2]] }
  0xbd   : > { %v778_v50 = vld [vmem:[#allocation12 + $0x168] sm:$0xff]  ;;  %3039 = vmatprep.subr.bf16.mxu1 %v3038_v41  ;;  %v3016_v52 = vpack.c.bf16 %v769_v47, %v765_v46  ;;  %v773_v53 = vld [vmem:[#allocation12 + $0x140] sm:$0xff]  ;;  %v764_v55 = vld [vmem:[#allocation12 + $0xf8] sm:$0xff]  ;;  %s412_s25 = scalar_lea.vmem [#allocation10], %s411_s29  ;;  %s465_s29 = sadd.s32 1, %s3989_s19 }
  0xbe   : > { %v777_v54 = vld [vmem:[#allocation12 + $0x160] sm:$0xff]  ;;  %v3018_v56 = vpack.c.bf16 %v778_v50, %v774_v49  ;;  %v782_v57 = vld [vmem:[#allocation12 + $0x188] sm:$0xff]  ;;  %v3042_v58 = vpack.c.bf16 %v764_v55, %v760_v51  ;;  %v759_v59 = vld [vmem:[#allocation12 + $0xd0] sm:$0xff]  ;;  %s418_s1 = scalar_lea.vmem [#allocation10], %s417_s8  ;;  %s470_s8 = sadd.s32 1, %s3992_s28 }
  0xbf   : > { %3009 = vmatpush1.bf16.msra.mxu0 %v3008_v28  ;;  %v763_v60 = vld [vmem:[#allocation12 + $0xf0] sm:$0xff]  ;;  %v786_v61 = vld [vmem:[#allocation12 + $0x1a8] sm:$0xff]  ;;  %v768_v63 = vld [vmem:[#allocation12 + $0x118] sm:$0xff]  ;;  %v3020_v4 = vpack.c.bf16 %v777_v54, %v773_v53  ;;  %s424_s3 = scalar_lea.vmem [#allocation10], %s423_s0  ;;  %s466_s0 = sld [smem:[#allocation6 + %s465_s29]] }
  0xc0   : > { %3011 = vmatprep.subr.bf16.mxu0 %v3010_v32  ;;  %3041 = vmatpush1.bf16.msra.mxu1 %v3040_v48  ;;  %v3044_v62 = vpack.c.bf16 %v763_v60, %v759_v59  ;;  %v772_v1 = vld [vmem:[#allocation12 + $0x138] sm:$0xff]  ;;  %v767_v3 = vld [vmem:[#allocation12 + $0x110] sm:$0xff]  ;;  %v3022_v8 = vpack.c.bf16 %v786_v61, %v782_v57  ;;  %v781_v9 = vld [vmem:[#allocation12 + $0x180] sm:$0xff]  ;;  %s430_s4 = scalar_lea.vmem [#allocation10], %s429_s18  ;;  %s471_s18 = sld [smem:[#allocation6 + %s470_s8]] }
  0xc1   : > { %3043 = vmatprep.subr.bf16.mxu1 %v3042_v58  ;;  %v3046_v2 = vpack.c.bf16 %v772_v1, %v768_v63  ;;  %v771_v5 = vld [vmem:[#allocation12 + $0x130] sm:$0xff]  ;;  %v776_v6 = vld [vmem:[#allocation12 + $0x158] sm:$0xff]  ;;  %v785_v10 = vld [vmem:[#allocation12 + $0x1a0] sm:$0xff]  ;;  %s436_s11 = scalar_lea.vmem [#allocation10], %s435_s17  ;;  %s475_s17 = sadd.s32 1, %s3995_s24 }
  0xc2   : > { %v780_v7 = vld [vmem:[#allocation12 + $0x178] sm:$0xff]  ;;  %v790_v11 = vld [vmem:[#allocation12 + $0x1c8] sm:$0xff]  ;;  %v3048_v12 = vpack.c.bf16 %v771_v5, %v767_v3  ;;  %v775_v15 = vld [vmem:[#allocation12 + $0x150] sm:$0xff]  ;;  %v3024_v19 = vpack.c.bf16 %v785_v10, %v781_v9  ;;  %s442_s10 = scalar_lea.vmem [#allocation10], %s441_s15  ;;  %s480_s15 = sadd.s32 1, %s3998_s2 }
  0xc3   : > { %3013 = vmatpush1.bf16.msra.mxu0 %v3012_v43  ;;  %v794_v13 = vld [vmem:[#allocation12 + $0x1e8] sm:$0xff]  ;;  %v3050_v14 = vpack.c.bf16 %v780_v7, %v776_v6  ;;  %v779_v16 = vld [vmem:[#allocation12 + $0x170] sm:$0xff]  ;;  %v784_v17 = vld [vmem:[#allocation12 + $0x198] sm:$0xff]  ;;  %s476_s12 = sld [smem:[#allocation6 + %s475_s17]]  ;;  %s490_s29 = sadd.s32 2, %s3978_s14 }
  0xc4   : > { %3015 = vmatprep.subr.bf16.mxu0 %v3014_v45  ;;  %3045 = vmatpush1.bf16.msra.mxu1 %v3044_v62  ;;  %v788_v18 = vld [vmem:[#allocation12 + $0x1b8] sm:$0xff]  ;;  %v3026_v22 = vpack.c.bf16 %v794_v13, %v790_v11  ;;  %v789_v23 = vld [vmem:[#allocation12 + $0x1c0] sm:$0xff]  ;;  %v3052_v25 = vpack.c.bf16 %v779_v16, %v775_v15  ;;  %v783_v27 = vld [vmem:[#allocation12 + $0x190] sm:$0xff]  ;;  %s491_s17 = sld [smem:[#allocation6 + %s490_s29]]  ;;  %s515_s29 = sadd.s32 2, %s3995_s24 }
  0xc5   : > { %3047 = vmatprep.subr.bf16.mxu1 %v3046_v2  ;;  %v348_v20 = vld [vmem:[%s3942_s22 + $0x8] sm:$0xff]  ;;  %v349_v21 = vld [vmem:[%s3942_s22 + $0x10] sm:$0xff]  ;;  %v3054_v26 = vpack.c.bf16 %v788_v18, %v784_v17  ;;  %v351_v31 = vld [vmem:[%s3942_s22 + $0x20] sm:$0xff] }
  0xc6   : > { %v793_v24 = vld [vmem:[#allocation12 + $0x1e0] sm:$0xff]  ;;  %v787_v28 = vld [vmem:[#allocation12 + $0x1b0] sm:$0xff]  ;;  %365 = vrot.lane.b32.xlu0 %v348_v20, %s3701_s20  ;;  %v792_v29 = vld [vmem:[#allocation12 + $0x1d8] sm:$0xff]  ;;  %367 = vrot.lane.b32.xlu1 %v349_v21, %s3701_s20 }
  0xc7   : > { %3017 = vmatpush1.bf16.msra.mxu0 %v3016_v52  ;;  %v796_v30 = vld [vmem:[#allocation12 + $0x1f8] sm:$0xff]  ;;  %v3028_v32 = vpack.c.bf16 %v793_v24, %v789_v23  ;;  %v350_v33 = vld [vmem:[%s3942_s22 + $0x18] sm:$0xff]  ;;  %v3056_v34 = vpack.c.bf16 %v787_v28, %v783_v27  ;;  %v791_v36 = vld [vmem:[#allocation12 + $0x1d0] sm:$0xff] }
  0xc8   : > { %3019 = vmatprep.subr.bf16.mxu0 %v3018_v56  ;;  %3049 = vmatpush1.bf16.msra.mxu1 %v3048_v12  ;;  %v3058_v35 = vpack.c.bf16 %v796_v30, %v792_v29  ;;  %v795_v37 = vld [vmem:[#allocation12 + $0x1f0] sm:$0xff]  ;;  %v353_v38 = vld [vmem:[%s3942_s22 + $0x30] sm:$0xff]  ;;  %v354_v41 = vld [vmem:[%s3942_s22 + $0x38] sm:$0xff] }
  0xc9   : > { %3051 = vmatprep.subr.bf16.mxu1 %v3050_v14  ;;  %v352_v39 = vld [vmem:[%s3942_s22 + $0x28] sm:$0xff]  ;;  %v3060_v40 = vpack.c.bf16 %v795_v37, %v791_v36  ;;  %s399_s22 = scalar_lea.vmem [#allocation10], %s398_s9  ;;  %v413_v44 = vld [vmem:[%s412_s25] sm:$0x1]  ;;  %s460_s25 = sadd.s32 1, %s3986_s16  ;;  %v1102_v5 = vld [vmem:[#allocation13] sm:$0xff] }
  0xca   : > { %371 = vrot.lane.b32.xlu0 %v351_v31, %s3701_s20  ;;  %369 = vrot.lane.b32.xlu1 %v350_v33, %s3701_s20  ;;  %v400_v42 = vld [vmem:[%s399_s22] sm:$0x1]  ;;  %v1106_v7 = vld [vmem:[#allocation13 + $0x20] sm:$0xff]  ;;  %v1109_v27 = vld [vmem:[#allocation13 + $0x38] sm:$0xff] }
  0xcb   : > { %3021 = vmatpush1.bf16.msra.mxu0 %v3020_v4  ;;  %v419_v45 = vld [vmem:[%s418_s1] sm:$0x1]  ;;  %s445_s1 = sadd.s32 1, %s3975_s23  ;;  %v4060_v10 = vpack.c.bf16 %v1106_v7, %v1102_v5  ;;  %v1110_v23 = vld [vmem:[#allocation13 + $0x40] sm:$0xff] }
  0xcc   : > { %3023 = vmatprep.subr.bf16.mxu0 %v3022_v8  ;;  %3053 = vmatpush1.bf16.msra.mxu1 %v3052_v25  ;;  %v425_v46 = vld [vmem:[%s424_s3] sm:$0x1]  ;;  %s450_s3 = sadd.s32 1, %s3978_s14  ;;  %v1114_v25 = vld [vmem:[#allocation13 + $0x60] sm:$0xff] }
  0xcd   : > { %3055 = vmatprep.subr.bf16.mxu1 %v3054_v26  ;;  %v431_v47 = vld [vmem:[%s430_s4] sm:$0x1]  ;;  %s446_s4 = sld [smem:[#allocation6 + %s445_s1]]  ;;  %v1105_v26 = vld [vmem:[#allocation13 + $0x18] sm:$0xff]  ;;  %v4109_v30 = vpack.c.bf16 %v1114_v25, %v1110_v23 }
  0xce   : > { %375 = vrot.lane.b32.xlu0 %v353_v38, %s3701_s20  ;;  %373 = vrot.lane.b32.xlu1 %v352_v39, %s3701_s20  ;;  %v437_v48 = vld [vmem:[%s436_s11] sm:$0x1]  ;;  %s455_s11 = sadd.s32 1, %s3983_s30  ;;  %s481_s1 = sld [smem:[#allocation6 + %s480_s15]]  ;;  %v4111_v31 = vpack.c.bf16 %v1109_v27, %v1105_v26 }
  0xcf   : > { %3025 = vmatpush1.bf16.msra.mxu0 %v3024_v19  ;;  %v443_v49 = vld [vmem:[%s442_s10] sm:$0x1]  ;;  %s451_s10 = sld [smem:[#allocation6 + %s450_s3]]  ;;  %s477_s15 = scalar_lea.vmem [#allocation10], %s476_s12 }
  0xd0   : > { %3027 = vmatprep.subr.bf16.mxu0 %v3026_v22  ;;  %3057 = vmatpush1.bf16.msra.mxu1 %v3056_v34  ;;  %s456_s9 = sld [smem:[#allocation6 + %s455_s11]]  ;;  %v478_v60 = vld [vmem:[%s477_s15] sm:$0x1]  ;;  %s530_s15 = sadd.s32 3, %s3978_s14 }
  0xd1   : > { %3059 = vmatprep.subr.bf16.mxu1 %v3058_v35  ;;  %v1103_v3 = vld [vmem:[#allocation13 + $0x8] sm:$0xff] }
  0xd2   : > { %377 = vrot.lane.b32.xlu1 %v354_v41, %s3701_s20  ;;  %s406_s20 = scalar_lea.vmem [#allocation10], %s405_s26  ;;  %s461_s26 = sld [smem:[#allocation6 + %s460_s25]]  ;;  %v1107_v4 = vld [vmem:[#allocation13 + $0x28] sm:$0xff] }
  0xd3   : > { %3029 = vmatpush1.bf16.msra.mxu0 %v3028_v32  ;;  %v407_v43 = vld [vmem:[%s406_s20] sm:$0x1]  ;;  %s447_s22 = scalar_lea.vmem [#allocation10], %s446_s4  ;;  %s485_s25 = sadd.s32 2, %s3975_s23  ;;  %v4057_v6 = vpack.c.bf16 %v1107_v4, %v1103_v3 }
  0xd4   : > { %3061 = vmatpush1.bf16.msra.mxu1 %v3060_v40  ;;  %v448_v53 = vld [vmem:[%s447_s22] sm:$0x1]  ;;  %s467_s4 = scalar_lea.vmem [#allocation10], %s466_s0  ;;  %s486_s8 = sld [smem:[#allocation6 + %s485_s25]] }
  0xd5   : > { %s452_s20 = scalar_lea.vmem [#allocation10], %s451_s10  ;;  %v468_v58 = vld [vmem:[%s467_s4] sm:$0x1]  ;;  %s472_s10 = scalar_lea.vmem [#allocation10], %s471_s18  ;;  %3063 = vmatprep.subr.bf16.mxu1 %v4057_v6  ;;  %3079 = vmatprep.subr.bf16.mxu0 %v4057_v6 }
  0xd6   : > { %v453_v54 = vld [vmem:[%s452_s20] sm:$0x1]  ;;  %s457_s3 = scalar_lea.vmem [#allocation10], %s456_s9  ;;  %s495_s9 = sadd.s32 2, %s3983_s30 }
  0xd7   : > { %v458_v55 = vld [vmem:[%s457_s3] sm:$0x1]  ;;  %s482_s22 = scalar_lea.vmem [#allocation10], %s481_s1  ;;  %s496_s0 = sld [smem:[#allocation6 + %s495_s9]] }
  0xd8   : > { %s462_s11 = scalar_lea.vmem [#allocation10], %s461_s26  ;;  %v473_v59 = vld [vmem:[%s472_s10] sm:$0x1]  ;;  %s500_s26 = sadd.s32 2, %s3986_s16 }
  0xd9   : > { %v463_v56 = vld [vmem:[%s462_s11] sm:$0x1]  ;;  %s4037_s18 = sld [smem:[#allocation6 + %s500_s26]]  ;;  %s505_s20 = sadd.s32 2, %s3989_s19 }
  0xda   : > { %v483_v61 = vld [vmem:[%s482_s22] sm:$0x1]  ;;  %s510_s3 = sadd.s32 2, %s3992_s28  ;;  %s4044_s11 = sld [smem:[#allocation6 + %s505_s20]] }
  0xdb   : > { %s4046_s12 = sld [smem:[#allocation6 + %s510_s3]]  ;;  %s487_s1 = scalar_lea.vmem [#allocation10], %s486_s8  ;;  %v1111_v21 = vld [vmem:[#allocation13 + $0x48] sm:$0xff] }
  0xdc   : > { %v488_v63 = vld [vmem:[%s487_s1] sm:$0x1]  ;;  %s492_s25 = scalar_lea.vmem [#allocation10], %s491_s17  ;;  %s520_s4 = sadd.s32 2, %s3998_s2 }
  0xdd   : > { %v493_v1 = vld [vmem:[%s492_s25] sm:$0x1]  ;;  %s4050_s10 = sld [smem:[#allocation6 + %s515_s29]]  ;;  %s497_s8 = scalar_lea.vmem [#allocation10], %s496_s0 }
  0xde   : > { %s4052_s9 = sld [smem:[#allocation6 + %s520_s4]]  ;;  %v498_v8 = vld [vmem:[%s497_s8] sm:$0x1]  ;;  %s525_s26 = sadd.s32 3, %s3975_s23 }
  0xdf   : > { %s502_s17 = scalar_lea.vmem [#allocation10], %s4037_s18  ;;  %s526_s18 = sld [smem:[#allocation6 + %s525_s26]]  ;;  %v1115_v22 = vld [vmem:[#allocation13 + $0x68] sm:$0xff] }
  0xe0   : > { %v503_v9 = vld [vmem:[%s502_s17] sm:$0x1]  ;;  %s507_s22 = scalar_lea.vmem [#allocation10], %s4044_s11  ;;  %s531_s20 = sld [smem:[#allocation6 + %s530_s15]]  ;;  %v4103_v24 = vpack.c.bf16 %v1115_v22, %v1111_v21 }
  0xe1   : > { %v508_v13 = vld [vmem:[%s507_s22] sm:$0x1]  ;;  %s512_s0 = scalar_lea.vmem [#allocation10], %s4046_s12  ;;  %s535_s3 = sadd.s32 3, %s3983_s30 }
  0xe2   : > { %v513_v14 = vld [vmem:[%s512_s0] sm:$0x1]  ;;  %s540_s11 = sadd.s32 3, %s3986_s16  ;;  %s4081_s25 = sld [smem:[#allocation6 + %s535_s3]] }
  0xe3   : > { %s517_s12 = scalar_lea.vmem [#allocation10], %s4050_s10  ;;  %s4083_s29 = sld [smem:[#allocation6 + %s540_s11]] }
  0xe4   : > { %v518_v15 = vld [vmem:[%s517_s12] sm:$0x1]  ;;  %s522_s1 = scalar_lea.vmem [#allocation10], %s4052_s9  ;;  %s545_s4 = sadd.s32 3, %s3989_s19 }
  0xe5   : > { %v523_v16 = vld [vmem:[%s522_s1] sm:$0x1]  ;;  %s550_s8 = sadd.s32 3, %s3992_s28  ;;  %s4090_s17 = sld [smem:[#allocation6 + %s545_s4]] }
  0xe6   : > { %s4092_s10 = sld [smem:[#allocation6 + %s550_s8]]  ;;  %s527_s9 = scalar_lea.vmem [#allocation10], %s526_s18 }
  0xe7   : > { %v528_v18 = vld [vmem:[%s527_s9] sm:$0x1]  ;;  %s532_s26 = scalar_lea.vmem [#allocation10], %s531_s20  ;;  %s555_s15 = sadd.s32 3, %s3995_s24 }
  0xe8   : > { %v533_v19 = vld [vmem:[%s532_s26] sm:$0x1]  ;;  %s560_s22 = sadd.s32 3, %s3998_s2  ;;  %s4096_s0 = sld [smem:[#allocation6 + %s555_s15]] }
  0xe9   : > { %s4098_s3 = sld [smem:[#allocation6 + %s560_s22]]  ;;  %s537_s18 = scalar_lea.vmem [#allocation10], %s4081_s25 }
  0xea   : > { %v538_v28 = vld [vmem:[%s537_s18] sm:$0x1]  ;;  %s542_s20 = scalar_lea.vmem [#allocation10], %s4083_s29  ;;  %s565_s11 = sadd.s32 4, %s3975_s23 }
  0xeb   : > { %v543_v29 = vld [vmem:[%s542_s20] sm:$0x1]  ;;  %s570_s12 = sadd.s32 4, %s3978_s14  ;;  %s547_s1 = scalar_lea.vmem [#allocation10], %s4090_s17 }
  0xec   : > { %v548_v33 = vld [vmem:[%s547_s1] sm:$0x1]  ;;  %s552_s25 = scalar_lea.vmem [#allocation10], %s4092_s10  ;;  %s566_s29 = sld [smem:[#allocation6 + %s565_s11]] }
  0xed   : > { %v553_v34 = vld [vmem:[%s552_s25] sm:$0x1]  ;;  %s571_s4 = sld [smem:[#allocation6 + %s570_s12]]  ;;  %s575_s8 = sadd.s32 4, %s3983_s30 }
  0xee   : > { %s580_s9 = sadd.s32 4, %s3986_s16  ;;  %s557_s17 = scalar_lea.vmem [#allocation10], %s4096_s0 }
  0xef   : > { %v558_v35 = vld [vmem:[%s557_s17] sm:$0x1]  ;;  %s562_s10 = scalar_lea.vmem [#allocation10], %s4098_s3  ;;  %s576_s26 = sld [smem:[#allocation6 + %s575_s8]] }
  0xf0   : > { %v563_v36 = vld [vmem:[%s562_s10] sm:$0x1]  ;;  %s581_s15 = sld [smem:[#allocation6 + %s580_s9]]  ;;  %s585_s22 = sadd.s32 4, %s3989_s19 }
  0xf1   : > { %s590_s18 = sadd.s32 4, %s3992_s28  ;;  %s586_s20 = sld [smem:[#allocation6 + %s585_s22]] }
  0xf2   : > { %s591_s0 = sld [smem:[#allocation6 + %s590_s18]]  ;;  %s567_s3 = scalar_lea.vmem [#allocation10], %s566_s29 }
  0xf3   : > { %v568_v37 = vld [vmem:[%s567_s3] sm:$0x1]  ;;  %s572_s11 = scalar_lea.vmem [#allocation10], %s571_s4  ;;  %s595_s12 = sadd.s32 4, %s3995_s24 }
  0xf4   : > { %v573_v38 = vld [vmem:[%s572_s11] sm:$0x1]  ;;  %s600_s1 = sadd.s32 4, %s3998_s2  ;;  %s596_s25 = sld [smem:[#allocation6 + %s595_s12]] }
  0xf5   : > { %s4137_s8 = sld [smem:[#allocation6 + %s600_s1]]  ;;  %s577_s9 = scalar_lea.vmem [#allocation10], %s576_s26 }
  0xf6   : > { %v578_v39 = vld [vmem:[%s577_s9] sm:$0x1]  ;;  %s582_s17 = scalar_lea.vmem [#allocation10], %s581_s15  ;;  %s605_s10 = sadd.s32 5, %s3975_s23 }
  0xf7   : > { %v583_v40 = vld [vmem:[%s582_s17] sm:$0x1]  ;;  %s610_s29 = sadd.s32 5, %s3978_s14  ;;  %s587_s4 = scalar_lea.vmem [#allocation10], %s586_s20 }
  0xf8   : > { %s592_s22 = scalar_lea.vmem [#allocation10], %s591_s0  ;;  %s606_s18 = sld [smem:[#allocation6 + %s605_s10]] }
  0xf9   : > { %s611_s3 = sld [smem:[#allocation6 + %s610_s29]]  ;;  %s615_s26 = sadd.s32 5, %s3983_s30 }
  0xfa   : > { %s620_s15 = sadd.s32 5, %s3986_s16  ;;  %s597_s20 = scalar_lea.vmem [#allocation10], %s596_s25 }
  0xfb   : > { %s602_s0 = scalar_lea.vmem [#allocation10], %s4137_s8  ;;  %s616_s11 = sld [smem:[#allocation6 + %s615_s26]] }
  0xfc   : > { %s621_s12 = sld [smem:[#allocation6 + %s620_s15]]  ;;  %s625_s1 = sadd.s32 5, %s3989_s19 }
  0xfd   : > { %s630_s9 = sadd.s32 5, %s3992_s28  ;;  %s626_s17 = sld [smem:[#allocation6 + %s625_s1]] }
  0xfe   : > { %s631_s10 = sld [smem:[#allocation6 + %s630_s9]]  ;;  %s607_s29 = scalar_lea.vmem [#allocation10], %s606_s18 }
  0xff   : > { %s612_s25 = scalar_lea.vmem [#allocation10], %s611_s3  ;;  %s650_s18 = sadd.s32 6, %s3978_s14 }
 0x101   : > { %s617_s26 = scalar_lea.vmem [#allocation10], %s616_s11  ;;  %s655_s11 = sadd.s32 6, %s3983_s30 }
 0x102   : > { %s622_s15 = scalar_lea.vmem [#allocation10], %s621_s12  ;;  %s660_s12 = sadd.s32 6, %s3986_s16 }
 0x103   : > { %s627_s3 = scalar_lea.vmem [#allocation10], %s626_s17 }
 0x104   : > { %s632_s1 = scalar_lea.vmem [#allocation10], %s631_s10 }
 0x125   : > { %v364_v50 = vpop.permute.xlu0 %363 }
 0x126   : > { %388 = vst.msk [vmem:[#allocation2] sm:$0xff] %vm387_vm0, %v364_v50 }
 0x127   : > { %402 = vst.msk [vmem:[#allocation2] sm:$0x1] %vm401_vm1, %v400_v42  ;;  %408 = vst.msk [vmem:[#allocation2 + $0x1] sm:$0x1] %vm401_vm1, %v407_v43  ;;  %v588_v42 = vld [vmem:[%s587_s4] sm:$0x1] }
 0x128   : > { %414 = vst.msk [vmem:[#allocation2 + $0x2] sm:$0x1] %vm401_vm1, %v413_v44  ;;  %420 = vst.msk [vmem:[#allocation2 + $0x3] sm:$0x1] %vm401_vm1, %v419_v45  ;;  %v593_v43 = vld [vmem:[%s592_s22] sm:$0x1] }
 0x129   : > { %426 = vst.msk [vmem:[#allocation2 + $0x4] sm:$0x1] %vm401_vm1, %v425_v46  ;;  %432 = vst.msk [vmem:[#allocation2 + $0x5] sm:$0x1] %vm401_vm1, %v431_v47  ;;  %v598_v44 = vld [vmem:[%s597_s20] sm:$0x1] }
 0x12a   : > { %438 = vst.msk [vmem:[#allocation2 + $0x6] sm:$0x1] %vm401_vm1, %v437_v48  ;;  %444 = vst.msk [vmem:[#allocation2 + $0x7] sm:$0x1] %vm401_vm1, %v443_v49  ;;  %v603_v45 = vld [vmem:[%s602_s0] sm:$0x1] }
 0x12b   : > { %v608_v46 = vld [vmem:[%s607_s29] sm:$0x1]  ;;  %s635_s4 = sadd.s32 5, %s3995_s24  ;;  %s640_s22 = sadd.s32 5, %s3998_s2 }
 0x12c   : > { %v613_v47 = vld [vmem:[%s612_s25] sm:$0x1]  ;;  %s636_s8 = sld [smem:[#allocation6 + %s635_s4]]  ;;  %s645_s0 = sadd.s32 6, %s3975_s23 }
 0x12d   : > { %s4158_s20 = sld [smem:[#allocation6 + %s640_s22]]  ;;  %v618_v48 = vld [vmem:[%s617_s26] sm:$0x1]  ;;  %s665_s22 = sadd.s32 6, %s3989_s19 }
 0x12e   : > { %v623_v49 = vld [vmem:[%s622_s15] sm:$0x1]  ;;  %s646_s9 = sld [smem:[#allocation6 + %s645_s0]]  ;;  %s670_s26 = sadd.s32 6, %s3992_s28 }
 0x12f   : > { %s651_s29 = sld [smem:[#allocation6 + %s650_s18]] }
 0x130   : > { %s656_s25 = sld [smem:[#allocation6 + %s655_s11]] }
 0x131   : > { %v725_v51 = vld [vmem:[#allocation2] sm:$0xff]  ;;  %s661_s4 = sld [smem:[#allocation6 + %s660_s12]] }
 0x132   : > { %884 = vmatmul.mubr.f32.vlgmr.msra.gmra.mrb[0].mxu0 %v725_v51  ;;  %997 = vmatmul.mubr.f32.vlgmr.msra.gmra.mrb[0].mxu1 %v725_v51  ;;  %v628_v51 = vld [vmem:[%s627_s3] sm:$0x1]  ;;  %s637_s17 = scalar_lea.vmem [#allocation10], %s636_s8  ;;  %s666_s15 = sld [smem:[#allocation6 + %s665_s22]] }
 0x133   : > { %1002 = vmatprep.mubr.f32.mxu1 %v3700_v0  ;;  %889 = vmatprep.mubr.f32.mxu0 %v3700_v0  ;;  %s642_s10 = scalar_lea.vmem [#allocation10], %s4158_s20  ;;  %s671_s0 = sld [smem:[#allocation6 + %s670_s26]] }
 0x134   : > { %3065 = vmatpush1.bf16.msra.mxu1 %v4060_v10  ;;  %3081 = vmatpush1.bf16.msra.mxu0 %v4060_v10  ;;  %s647_s18 = scalar_lea.vmem [#allocation10], %s646_s9  ;;  %s675_s3 = sadd.s32 6, %s3995_s24 }
 0x135   : > { %3067 = vmatprep.subr.bf16.mxu1 %v4103_v24  ;;  %3083 = vmatprep.subr.bf16.mxu0 %v4103_v24  ;;  %s652_s8 = scalar_lea.vmem [#allocation10], %s651_s29  ;;  %s676_s20 = sld [smem:[#allocation6 + %s675_s3]] }
 0x136   : > { %s657_s11 = scalar_lea.vmem [#allocation10], %s656_s25  ;;  %s690_s9 = sadd.s32 7, %s3978_s14 }
 0x137   : > { %s662_s12 = scalar_lea.vmem [#allocation10], %s661_s4  ;;  %s700_s14 = sadd.s32 7, %s3986_s16 }
 0x138   : > { %v366_v52 = vpop.permute.xlu0 %365  ;;  %v368_v57 = vpop.permute.xlu1 %367  ;;  %3069 = vmatpush1.bf16.msra.mxu1 %v4109_v30  ;;  %3085 = vmatpush1.bf16.msra.mxu0 %v4109_v30  ;;  %s667_s29 = scalar_lea.vmem [#allocation10], %s666_s15  ;;  %s710_s3 = sadd.s32 7, %s3992_s28 }
 0x139   : > { %389 = vst.msk [vmem:[#allocation2 + $0x8] sm:$0xff] %vm387_vm0, %v366_v52  ;;  %390 = vst.msk [vmem:[#allocation2 + $0x10] sm:$0xff] %vm387_vm0, %v368_v57  ;;  %3071 = vmatprep.subr.bf16.mxu1 %v4111_v31  ;;  %3095 = vmatprep.subr.bf16.mxu0 %v4057_v6  ;;  %v633_v52 = vld [vmem:[%s632_s1] sm:$0x1]  ;;  %s680_s1 = sadd.s32 6, %s3998_s2  ;;  %s672_s22 = scalar_lea.vmem [#allocation10], %s671_s0 }
 0x13a   : > { %449 = vst.msk [vmem:[#allocation2 + $0x8] sm:$0x1] %vm401_vm1, %v448_v53  ;;  %454 = vst.msk [vmem:[#allocation2 + $0x9] sm:$0x1] %vm401_vm1, %v453_v54  ;;  %v638_v53 = vld [vmem:[%s637_s17] sm:$0x1] }
 0x13b   : > { %459 = vst.msk [vmem:[#allocation2 + $0xa] sm:$0x1] %vm401_vm1, %v458_v55  ;;  %464 = vst.msk [vmem:[#allocation2 + $0xb] sm:$0x1] %vm401_vm1, %v463_v56  ;;  %v643_v54 = vld [vmem:[%s642_s10] sm:$0x1] }
 0x13c   : > { %469 = vst.msk [vmem:[#allocation2 + $0xc] sm:$0x1] %vm401_vm1, %v468_v58  ;;  %474 = vst.msk [vmem:[#allocation2 + $0xd] sm:$0x1] %vm401_vm1, %v473_v59  ;;  %v370_v62 = vpop.permute.xlu1 %369  ;;  %v372_v2 = vpop.permute.xlu0 %371  ;;  %v648_v55 = vld [vmem:[%s647_s18] sm:$0x1] }
 0x13d   : > { %479 = vst.msk [vmem:[#allocation2 + $0xe] sm:$0x1] %vm401_vm1, %v478_v60  ;;  %484 = vst.msk [vmem:[#allocation2 + $0xf] sm:$0x1] %vm401_vm1, %v483_v61  ;;  %v653_v56 = vld [vmem:[%s652_s8] sm:$0x1] }
 0x13e   : > { %391 = vst.msk [vmem:[#allocation2 + $0x18] sm:$0xff] %vm387_vm0, %v370_v62  ;;  %392 = vst.msk [vmem:[#allocation2 + $0x20] sm:$0xff] %vm387_vm0, %v372_v2  ;;  %s4179_s17 = sld [smem:[#allocation6 + %s680_s1]]  ;;  %v658_v57 = vld [vmem:[%s657_s11] sm:$0x1]  ;;  %s685_s10 = sadd.s32 7, %s3975_s23 }
 0x13f   : > { %489 = vst.msk [vmem:[#allocation2 + $0x10] sm:$0x1] %vm401_vm1, %v488_v63  ;;  %494 = vst.msk [vmem:[#allocation2 + $0x11] sm:$0x1] %vm401_vm1, %v493_v1  ;;  %v663_v58 = vld [vmem:[%s662_s12] sm:$0x1] }
 0x140   : > { %499 = vst.msk [vmem:[#allocation2 + $0x12] sm:$0x1] %vm401_vm1, %v498_v8  ;;  %504 = vst.msk [vmem:[#allocation2 + $0x13] sm:$0x1] %vm401_vm1, %v503_v9  ;;  %v374_v12 = vpop.permute.xlu1 %373  ;;  %v376_v17 = vpop.permute.xlu0 %375  ;;  %v668_v60 = vld [vmem:[%s667_s29] sm:$0x1] }
 0x141   : > { %393 = vst.msk [vmem:[#allocation2 + $0x28] sm:$0xff] %vm387_vm0, %v374_v12  ;;  %394 = vst.msk [vmem:[#allocation2 + $0x30] sm:$0xff] %vm387_vm0, %v376_v17  ;;  %v673_v61 = vld [vmem:[%s672_s22] sm:$0x1]  ;;  %s686_s26 = sld [smem:[#allocation6 + %s685_s10]]  ;;  %s695_s23 = sadd.s32 7, %s3983_s30 }
 0x142   : > { %509 = vst.msk [vmem:[#allocation2 + $0x14] sm:$0x1] %vm401_vm1, %v508_v13  ;;  %514 = vst.msk [vmem:[#allocation2 + $0x15] sm:$0x1] %vm401_vm1, %v513_v14  ;;  %s691_s18 = sld [smem:[#allocation6 + %s690_s9]]  ;;  %s677_s25 = scalar_lea.vmem [#allocation10], %s676_s20  ;;  %v799_v13 = vlaneseq }
 0x143   : > { %519 = vst.msk [vmem:[#allocation2 + $0x16] sm:$0x1] %vm401_vm1, %v518_v15  ;;  %524 = vst.msk [vmem:[#allocation2 + $0x17] sm:$0x1] %vm401_vm1, %v523_v16  ;;  %v678_v62 = vld [vmem:[%s677_s25] sm:$0x1] }
 0x144   : > { %v726_v11 = vld [vmem:[#allocation2 + $0x8] sm:$0xff]  ;;  %v378_v20 = vpop.permute.xlu1 %377  ;;  %529 = vst.msk [vmem:[#allocation2 + $0x18] sm:$0x1] %vm401_vm1, %v528_v18  ;;  %534 = vst.msk [vmem:[#allocation2 + $0x19] sm:$0x1] %vm401_vm1, %v533_v19  ;;  %s682_s4 = scalar_lea.vmem [#allocation10], %s4179_s17 }
 0x145   : > { %890 = vmatmul.mubr.f32.gmra.mrb[2].mxu0 %v726_v11  ;;  %1003 = vmatmul.mubr.f32.gmra.mrb[2].mxu1 %v726_v11  ;;  %395 = vst.msk [vmem:[#allocation2 + $0x38] sm:$0xff] %vm387_vm0, %v378_v20  ;;  %v683_v63 = vld [vmem:[%s682_s4] sm:$0x1]  ;;  %s696_s15 = sld [smem:[#allocation6 + %s695_s23]]  ;;  %s705_s8 = sadd.s32 7, %s3989_s19  ;;  %v800_v14 = vshrl.u32 %v799_v13, 7 }
 0x146   : > { %1008 = vmatprep.mubr.f32.mxu1 %v3700_v0  ;;  %895 = vmatprep.mubr.f32.mxu0 %v3700_v0  ;;  %539 = vst.msk [vmem:[#allocation2 + $0x1a] sm:$0x1] %vm401_vm1, %v538_v28  ;;  %544 = vst.msk [vmem:[#allocation2 + $0x1b] sm:$0x1] %vm401_vm1, %v543_v29  ;;  %s701_s0 = sld [smem:[#allocation6 + %s700_s14]]  ;;  %s715_s20 = sadd.s32 7, %s3995_s24 }
 0x147   : > { %549 = vst.msk [vmem:[#allocation2 + $0x1c] sm:$0x1] %vm401_vm1, %v548_v33  ;;  %554 = vst.msk [vmem:[#allocation2 + $0x1d] sm:$0x1] %vm401_vm1, %v553_v34  ;;  %s706_s30 = sld [smem:[#allocation6 + %s705_s8]]  ;;  %s687_s1 = scalar_lea.vmem [#allocation10], %s686_s26 }
 0x148   : > { %559 = vst.msk [vmem:[#allocation2 + $0x1e] sm:$0x1] %vm401_vm1, %v558_v35  ;;  %564 = vst.msk [vmem:[#allocation2 + $0x1f] sm:$0x1] %vm401_vm1, %v563_v36  ;;  %s711_s16 = sld [smem:[#allocation6 + %s710_s3]]  ;;  %s692_s11 = scalar_lea.vmem [#allocation10], %s691_s18 }
 0x149   : > { %569 = vst.msk [vmem:[#allocation2 + $0x20] sm:$0x1] %vm401_vm1, %v568_v37  ;;  %574 = vst.msk [vmem:[#allocation2 + $0x21] sm:$0x1] %vm401_vm1, %v573_v38  ;;  %v688_v1 = vld [vmem:[%s687_s1] sm:$0x1] }
 0x14a   : > { %v727_v32 = vld [vmem:[#allocation2 + $0x10] sm:$0xff]  ;;  %579 = vst.msk [vmem:[#allocation2 + $0x22] sm:$0x1] %vm401_vm1, %v578_v39  ;;  %584 = vst.msk [vmem:[#allocation2 + $0x23] sm:$0x1] %vm401_vm1, %v583_v40  ;;  %s720_s12 = sadd.s32 7, %s3998_s2 }
 0x14b   : > { %1009 = vmatmul.mubr.f32.gmra.mrb[4].mxu1 %v727_v32  ;;  %896 = vmatmul.mubr.f32.gmra.mrb[4].mxu0 %v727_v32  ;;  %589 = vst.msk [vmem:[#allocation2 + $0x24] sm:$0x1] %vm401_vm1, %v588_v42  ;;  %594 = vst.msk [vmem:[#allocation2 + $0x25] sm:$0x1] %vm401_vm1, %v593_v43  ;;  %v693_v2 = vld [vmem:[%s692_s11] sm:$0x1] }
 0x14c   : > { %1014 = vmatprep.mubr.f32.mxu1 %v3700_v0  ;;  %901 = vmatprep.mubr.f32.mxu0 %v3700_v0  ;;  %599 = vst.msk [vmem:[#allocation2 + $0x26] sm:$0x1] %vm401_vm1, %v598_v44  ;;  %604 = vst.msk [vmem:[#allocation2 + $0x27] sm:$0x1] %vm401_vm1, %v603_v45  ;;  %s716_s10 = sld [smem:[#allocation6 + %s715_s20]]  ;;  %s697_s17 = scalar_lea.vmem [#allocation10], %s696_s15 }
 0x14d   : > { %609 = vst.msk [vmem:[#allocation2 + $0x28] sm:$0x1] %vm401_vm1, %v608_v46  ;;  %614 = vst.msk [vmem:[#allocation2 + $0x29] sm:$0x1] %vm401_vm1, %v613_v47  ;;  %s721_s9 = sld [smem:[#allocation6 + %s720_s12]]  ;;  %s702_s29 = scalar_lea.vmem [#allocation10], %s701_s0 }
 0x14e   : > { %619 = vst.msk [vmem:[#allocation2 + $0x2a] sm:$0x1] %vm401_vm1, %v618_v48  ;;  %624 = vst.msk [vmem:[#allocation2 + $0x2b] sm:$0x1] %vm401_vm1, %v623_v49  ;;  %v698_v3 = vld [vmem:[%s697_s17] sm:$0x1] }
 0x14f   : > { %v728_v41 = vld [vmem:[#allocation2 + $0x18] sm:$0xff]  ;;  %629 = vst.msk [vmem:[#allocation2 + $0x2c] sm:$0x1] %vm401_vm1, %v628_v51  ;;  %634 = vst.msk [vmem:[#allocation2 + $0x2d] sm:$0x1] %vm401_vm1, %v633_v52  ;;  %s707_s19 = scalar_lea.vmem [#allocation10], %s706_s30 }
 0x150   : > { %1015 = vmatmul.mubr.f32.gmra.mrb[6].mxu1 %v728_v41  ;;  %902 = vmatmul.mubr.f32.gmra.mrb[6].mxu0 %v728_v41  ;;  %639 = vst.msk [vmem:[#allocation2 + $0x2e] sm:$0x1] %vm401_vm1, %v638_v53  ;;  %644 = vst.msk [vmem:[#allocation2 + $0x2f] sm:$0x1] %vm401_vm1, %v643_v54  ;;  %v703_v4 = vld [vmem:[%s702_s29] sm:$0x1] }
 0x151   : > { %1020 = vmatprep.mubr.f32.mxu1 %v3700_v0  ;;  %907 = vmatprep.mubr.f32.mxu0 %v3700_v0  ;;  %649 = vst.msk [vmem:[#allocation2 + $0x30] sm:$0x1] %vm401_vm1, %v648_v55  ;;  %654 = vst.msk [vmem:[#allocation2 + $0x31] sm:$0x1] %vm401_vm1, %v653_v56  ;;  %v708_v7 = vld [vmem:[%s707_s19] sm:$0x1] }
 0x152   : > { %659 = vst.msk [vmem:[#allocation2 + $0x32] sm:$0x1] %vm401_vm1, %v658_v57  ;;  %664 = vst.msk [vmem:[#allocation2 + $0x33] sm:$0x1] %vm401_vm1, %v663_v58  ;;  %s712_s28 = scalar_lea.vmem [#allocation10], %s711_s16  ;;  %s717_s24 = scalar_lea.vmem [#allocation10], %s716_s10 }
 0x153   : > { %v729_v50 = vld [vmem:[#allocation2 + $0x20] sm:$0xff]  ;;  %669 = vst.msk [vmem:[#allocation2 + $0x34] sm:$0x1] %vm401_vm1, %v668_v60  ;;  %674 = vst.msk [vmem:[#allocation2 + $0x35] sm:$0x1] %vm401_vm1, %v673_v61  ;;  %s722_s2 = scalar_lea.vmem [#allocation10], %s721_s9 }
 0x154   : > { %1021 = vmatmul.mubr.f32.gmra.mrb[8].mxu1 %v729_v50  ;;  %908 = vmatmul.mubr.f32.gmra.mrb[8].mxu0 %v729_v50  ;;  %679 = vst.msk [vmem:[#allocation2 + $0x36] sm:$0x1] %vm401_vm1, %v678_v62  ;;  %684 = vst.msk [vmem:[#allocation2 + $0x37] sm:$0x1] %vm401_vm1, %v683_v63  ;;  %v713_v8 = vld [vmem:[%s712_s28] sm:$0x1] }
 0x155   : > { %1026 = vmatprep.mubr.f32.mxu1 %v3700_v0  ;;  %913 = vmatprep.mubr.f32.mxu0 %v3700_v0  ;;  %689 = vst.msk [vmem:[#allocation2 + $0x38] sm:$0x1] %vm401_vm1, %v688_v1  ;;  %694 = vst.msk [vmem:[#allocation2 + $0x39] sm:$0x1] %vm401_vm1, %v693_v2  ;;  %v718_v9 = vld [vmem:[%s717_s24] sm:$0x1] }
 0x156   : > { %699 = vst.msk [vmem:[#allocation2 + $0x3a] sm:$0x1] %vm401_vm1, %v698_v3  ;;  %704 = vst.msk [vmem:[#allocation2 + $0x3b] sm:$0x1] %vm401_vm1, %v703_v4  ;;  %v723_v11 = vld [vmem:[%s722_s2] sm:$0x1] }
 0x157   : > { %v730_v59 = vld [vmem:[#allocation2 + $0x28] sm:$0xff]  ;;  %709 = vst.msk [vmem:[#allocation2 + $0x3c] sm:$0x1] %vm401_vm1, %v708_v7  ;;  %714 = vst.msk [vmem:[#allocation2 + $0x3d] sm:$0x1] %vm401_vm1, %v713_v8  ;;  %v801_v15 = vsub.s32 0, %v800_v14 }
 0x158   : > { %1027 = vmatmul.mubr.f32.gmra.mrb[10].mxu1 %v730_v59  ;;  %914 = vmatmul.mubr.f32.gmra.mrb[10].mxu0 %v730_v59  ;;  %719 = vst.msk [vmem:[#allocation2 + $0x3e] sm:$0x1] %vm401_vm1, %v718_v9  ;;  %724 = vst.msk [vmem:[#allocation2 + $0x3f] sm:$0x1] %vm401_vm1, %v723_v11  ;;  %v797_v16 = vld [vmem:[%s4457_s5] sm:$0xf] }
 0x159   : > { %1032 = vmatprep.mubr.f32.mxu1 %v3700_v0  ;;  %919 = vmatprep.mubr.f32.mxu0 %v3700_v0  ;;  %v809_v17 = vsub.s32 2, %v800_v14  ;;  %v4215_v18 = vrot.slane %v797_v16, %v801_v15  ;;  %v813_v28 = vsub.s32 3, %v800_v14  ;;  %v1104_v41 = vld [vmem:[#allocation13 + $0x10] sm:$0xff]  ;;  %v1113_v44 = vld [vmem:[#allocation13 + $0x58] sm:$0xff]  ;;  %v805_v55 = vsub.s32 1, %v800_v14  ;;  %s4508_s16 = sshll.u32 %s3936_s27, 6 }
 0x15a   : > { %v1108_v42 = vld [vmem:[#allocation13 + $0x30] sm:$0xff]  ;;  %v1117_v45 = vld [vmem:[#allocation13 + $0x78] sm:$0xff]  ;;  %s346_s1 = scalar_lea.vmem [#allocation15], %s4508_s16  ;;  %s2941_s20 = sshll.u32 %s3775_s13, 7 }
 0x15b   : > { %v731_v5 = vld [vmem:[#allocation2 + $0x30] sm:$0xff]  ;;  %v4217_v20 = vrot.slane %v797_v16, %v809_v17  ;;  %v4221_v32 = vrot.slane %v797_v16, %v813_v28  ;;  %v4224_v47 = vpack.c.bf16 %v1108_v42, %v1104_v41  ;;  %v4226_v49 = vpack.c.bf16 %v1117_v45, %v1113_v44  ;;  %v1112_v50 = vld [vmem:[#allocation13 + $0x50] sm:$0xff]  ;;  %s2705_s11 = sshll.u32 %s346_s1, 4  ;;  %s4509_s9 = sld [smem:[#allocation32_spill]]  ;;  %s4403_s11 = int_to_ptr.vmem [resolvable:$true] %s2705_s11 }
 0x15c   : > { %1033 = vmatmul.mubr.f32.gmra.mrb[12].mxu1 %v731_v5  ;;  %920 = vmatmul.mubr.f32.gmra.mrb[12].mxu0 %v731_v5  ;;  %v1116_v51 = vld [vmem:[#allocation13 + $0x70] sm:$0xff]  ;;  %v4243_v56 = vrot.slane %v797_v16, %v805_v55  ;;  %s2693_s29 = scalar_lea.sflag [#allocation9], %s3936_s27  ;;  %s3610_s19 = scalar_lea.vmem %s4403_s11, 1024 }
 0x15d   : > { %1038 = vmatprep.mubr.f32.mxu1 %v3700_v0  ;;  %925 = vmatprep.mubr.f32.mxu0 %v3700_v0  ;;  %v4231_v52 = vpack.c.bf16 %v1116_v51, %v1112_v50  ;;  %p3611_p1 = scmp.ne.s32.totalorder %s4403_s11, %s3610_s19  ;;  %s3702_s13 = smov [#allocation15]  }
 0x15e   : > { %s3614_s28 = sshll.u32 %s3702_s13, 4  ;;  %s3615_s28 = int_to_ptr.vmem [resolvable:$false] %s3614_s28 }
 0x15f   : > { %v732_v12 = vld [vmem:[#allocation2 + $0x38] sm:$0xff]  ;;  %p3612_p5 = pnand %p3611_p1, %p4510_p6  ;;  %s3616_s24 = scalar_lea.vmem %s3615_s28, 2048 }
 0x160   : > { %1039 = vmatmul.mubr.f32.gmra.mrb[14].mxu1 %v732_v12  ;;  %926 = vmatmul.mubr.f32.gmra.mrb[14].mxu0 %v732_v12  ;;  %p3617_p13 = scmp.lt.s32.totalorder %s4403_s11, %s3615_s28  ;;  %p3618_p10 = scmp.lt.s32.totalorder %s3616_s24, %s3610_s19 }
 0x161   : > { %1185 = vmatprep.mubr.f32.mxu1 %v3700_v0  ;;  %1379 = vmatprep.mubr.f32.mxu0 %v3700_v0  ;;  %s4408_s17 = scalar_lea.hbm %s4509_s9, %s2941_s20  ;;  %p3613_p12 = pneg %p3612_p5 }
 0x162   : > { %p3619_p2 = por %p3618_p10, %p3617_p13 }
 0x164   : > { %p3620_p3 = pnand %p3619_p2, %p3613_p12 }
 0x205   : > { %v885_v19 = vpop.f32.mrb[0].mxu0  ;;  %v998_v21 = vpop.f32.mrb[0].mxu1 }
 0x206   : > { %v886_v22 = vadd.f32 %v885_v19, %v4215_v18  ;;  %v887_v23 = vpop.f32.mrb[1].mxu0  ;;  %v1000_v25 = vpop.f32.mrb[1].mxu1  ;;  %v999_v27 = vadd.f32 %v998_v21, %v4217_v20 }
 0x207   : > { %v1001_v33 = vadd.f32 %v1000_v25, %v4221_v32 }
 0x208   : > { %v2894_v26 = vmul.f32 -1.442695, %v886_v22  ;;  %v2895_v29 = vmul.f32 -1.442695, %v999_v27 }
 0x20a   : > { %3328 = vpow2.f32 %v2894_v26 }
 0x20b   : > { %3330 = vpow2.f32 %v2895_v29 }
 0x20c   : > { %3332 = vtanh.f32 %v1001_v33 }
 0x214   : > { %v3329_v34 = vpop.eup %3328 }
 0x215   : > { %v1083_v35 = vadd.f32 1.0, %v3329_v34  ;;  %v3331_v36 = vpop.eup %3330 }
 0x216   : > { %v1091_v37 = vadd.f32 1.0, %v3331_v36  ;;  %v3333_v38 = vpop.eup %3332 }
 0x217   : > { %3334 = vrcp.f32 %v1083_v35 }
 0x218   : > { %3336 = vrcp.f32 %v1091_v37  ;;  %v891_v53 = vpop.f32.mrb[2].mxu0 }
 0x219   : > { %v893_v54 = vpop.f32.mrb[3].mxu0  ;;  %v892_v57 = vadd.f32 %v891_v53, %v4215_v18 }
 0x21a   : > { %v894_v58 = vadd.f32 %v893_v54, %v4243_v56 }
 0x221   : > { %v3335_v39 = vpop.eup %3334 }
 0x222   : > { %v1087_v40 = vmul.f32 %v3335_v39, %v3333_v38  ;;  %v3337_v43 = vpop.eup %3336 }
 0x224   : > { %3338 = vtanh.f32 %v1087_v40 }
 0x22e   : > { %v3339_v46 = vpop.eup %3338 }
 0x22f   : > { %v1095_v48 = vmul.f32 %v3339_v46, %v3337_v43 }
 0x231   : > { %1097 = vst.msk [vmem:[#allocation4] sm:$0xff] %vm1096_vm2, %v1095_v48  ;;  %2896 = vmatmul.mubr.msk.f32.vlgmr.msra.gmra.mrb[16].mxu1 %vm1096_vm2, %v1095_v48 }
 0x232   : > { %3073 = vmatpush1.bf16.msra.mxu1 %v4224_v47  ;;  %1256 = vmatprep.mubr.f32.mxu1 %v3700_v0 }
 0x233   : > { %3075 = vmatprep.subr.bf16.mxu1 %v4226_v49 }
 0x236   : > { %3077 = vmatpush1.bf16.msra.mxu1 %v4231_v52 }
 0x237   : > { %3087 = vmatprep.subr.bf16.mxu1 %v4111_v31 }
 0x239   : > { %2897 = vmatmul.mubr.msk.f32.vlgmr.msra.gmra.mrb[2].mxu1 %vm1096_vm2, %v1095_v48 }
 0x23a   : > { %3089 = vmatpush1.bf16.msra.mxu1 %v4224_v47  ;;  %1450 = vmatprep.mubr.f32.mxu1 %v3700_v0 }
 0x23b   : > { %3091 = vmatprep.subr.bf16.mxu1 %v4226_v49 }
 0x23e   : > { %3093 = vmatpush1.bf16.msra.mxu1 %v4231_v52 }
 0x23f   : > { %3103 = vmatprep.subr.bf16.mxu1 %v4111_v31 }
 0x304   : > { %v1187_v59 = vpop.f32.mrb[16].mxu1 }
 0x305   : > { %v1263_v60 = vadd.f32 %v1187_v59, %v892_v57  ;;  %v1189_v61 = vpop.f32.mrb[17].mxu1 }
 0x306   : > { %v1264_v62 = vadd.f32 %v1189_v61, %v894_v58 }
 0x307   : > { %v2898_v63 = vmul.f32 -1.442695, %v1263_v60 }
 0x308   : > { %v2899_v1 = vmul.f32 -1.442695, %v1264_v62 }
 0x309   : > { %3340 = vpow2.f32 %v2898_v63 }
 0x30a   : > { %3342 = vpow2.f32 %v2899_v1 }
 0x30c   : > { %v1258_v2 = vpop.f32.mrb[2].mxu1 }
 0x30d   : > { %v3198_v3 = vadd.f32 %v1258_v2, %v4217_v20  ;;  %v1260_v4 = vpop.f32.mrb[3].mxu1 }
 0x30e   : > { %v3199_v7 = vadd.f32 %v1260_v4, %v4221_v32 }
 0x30f   : > { %v2900_v5 = vmul.f32 -1.442695, %v3198_v3 }
 0x311   : > { %3344 = vpow2.f32 %v2900_v5 }
 0x312   : > { %3346 = vtanh.f32 %v3199_v7 }
 0x313   : > { %v3341_v8 = vpop.eup %3340 }
 0x314   : > { %v3343_v9 = vpop.eup %3342  ;;  %v1276_v11 = vadd.f32 1.0, %v3341_v8 }
 0x315   : > { %v1277_v12 = vadd.f32 1.0, %v3343_v9 }
 0x316   : > { %3348 = vrcp.f32 %v1276_v11 }
 0x317   : > { %3350 = vrcp.f32 %v1277_v12 }
 0x31b   : > { %v3345_v13 = vpop.eup %3344 }
 0x31c   : > { %v3347_v14 = vpop.eup %3346  ;;  %v1278_v17 = vadd.f32 1.0, %v3345_v13 }
 0x31e   : > { %3352 = vrcp.f32 %v1278_v17 }
 0x320   : > { %v3349_v15 = vpop.eup %3348 }
 0x321   : > { %v3351_v16 = vpop.eup %3350  ;;  %v1287_v19 = vmul.f32 %v3349_v15, %v3347_v14 }
 0x322   : > { %v1286_v21 = vmul.f32 %v3351_v16, %v1087_v40 }
 0x324   : > { %v1288_v22 = vadd.f32 %v1287_v19, %v1286_v21 }
 0x326   : > { %3354 = vtanh.f32 %v1288_v22 }
 0x328   : > { %v3353_v23 = vpop.eup %3352 }
 0x330   : > { %v3355_v25 = vpop.eup %3354 }
 0x331   : > { %v1290_v26 = vmul.f32 %v3355_v25, %v3353_v23 }
 0x333   : > { %1291 = vst.msk [vmem:[#allocation4 + $0x8] sm:$0xff] %vm1096_vm2, %v1290_v26  ;;  %2901 = vmatmul.mubr.msk.f32.vlgmr.msra.gmra.mrb[4].mxu0 %vm1096_vm2, %v1290_v26  ;;  %2902 = vmatmul.mubr.msk.f32.vlgmr.msra.gmra.mrb[4].mxu1 %vm1096_vm2, %v1290_v26  ;;  %v1879_v26 = vld [vmem:[#allocation13 + $0x8] sm:$0xff] }
 0x334   : > { %3097 = vmatpush1.bf16.msra.mxu0 %v4060_v10  ;;  %3105 = vmatpush1.bf16.msra.mxu1 %v4224_v47 }
 0x335   : > { %3099 = vmatprep.subr.bf16.mxu0 %v4103_v24  ;;  %3107 = vmatprep.subr.bf16.mxu1 %v4226_v49 }
 0x336   : > { %1573 = vmatprep.mubr.f32.mxu0 %v3700_v0  ;;  %1644 = vmatprep.mubr.f32.mxu1 %v3700_v0 }
 0x338   : > { %3101 = vmatpush1.bf16.msra.mxu0 %v4109_v30  ;;  %3109 = vmatpush1.bf16.msra.mxu1 %v4231_v52 }
 0x339   : > { %3111 = vmatprep.subr.bf16.mxu0 %v4057_v6  ;;  %3119 = vmatprep.subr.bf16.mxu1 %v4111_v31 }
 0x406   : > { %v1381_v27 = vpop.f32.mrb[4].mxu0  ;;  %v1452_v28 = vpop.f32.mrb[4].mxu1 }
 0x407   : > { %v3186_v29 = vadd.f32 %v1381_v27, %v4215_v18  ;;  %v1383_v33 = vpop.f32.mrb[5].mxu0  ;;  %v1454_v34 = vpop.f32.mrb[5].mxu1  ;;  %v3200_v38 = vadd.f32 %v1452_v28, %v4217_v20  ;;  %v1883_v27 = vld [vmem:[#allocation13 + $0x28] sm:$0xff]  ;;  %v1878_v28 = vld [vmem:[#allocation13] sm:$0xff] }
 0x408   : > { %v3187_v35 = vadd.f32 %v1383_v33, %v4243_v56  ;;  %v3201_v39 = vadd.f32 %v1454_v34, %v4221_v32  ;;  %v1882_v33 = vld [vmem:[#allocation13 + $0x20] sm:$0xff] }
 0x409   : > { %v2903_v36 = vmul.f32 -1.442695, %v3186_v29  ;;  %v2905_v40 = vmul.f32 -1.442695, %v3200_v38  ;;  %v3126_v29 = vpack.c.bf16 %v1883_v27, %v1879_v26  ;;  %v4291_v34 = vpack.c.bf16 %v1882_v33, %v1878_v28  ;;  %v2464_v33 = vld [vmem:[%s4458_s6] sm:$0xff] }
 0x40a   : > { %v2904_v37 = vmul.f32 -1.442695, %v3187_v35 }
 0x40b   : > { %3356 = vpow2.f32 %v2903_v36 }
 0x40c   : > { %3358 = vpow2.f32 %v2904_v37 }
 0x40d   : > { %3360 = vtanh.f32 %v3201_v39 }
 0x40e   : > { %3362 = vpow2.f32 %v2905_v40 }
 0x415   : > { %v3357_v6 = vpop.eup %3356 }
 0x416   : > { %v1470_v41 = vadd.f32 1.0, %v3357_v6  ;;  %v3359_v42 = vpop.eup %3358 }
 0x417   : > { %v1471_v43 = vadd.f32 1.0, %v3359_v42  ;;  %v3361_v44 = vpop.eup %3360 }
 0x418   : > { %3364 = vrcp.f32 %v1470_v41  ;;  %v3363_v45 = vpop.eup %3362 }
 0x419   : > { %3366 = vrcp.f32 %v1471_v43  ;;  %v1472_v51 = vadd.f32 1.0, %v3363_v45 }
 0x41b   : > { %3368 = vrcp.f32 %v1472_v51 }
 0x422   : > { %v3365_v46 = vpop.eup %3364 }
 0x423   : > { %v1481_v48 = vmul.f32 %v3365_v46, %v3361_v44  ;;  %v3367_v50 = vpop.eup %3366 }
 0x424   : > { %v1480_v53 = vmul.f32 %v3367_v50, %v1288_v22 }
 0x425   : > { %v3369_v55 = vpop.eup %3368 }
 0x426   : > { %v1482_v54 = vadd.f32 %v1481_v48, %v1480_v53 }
 0x428   : > { %3370 = vtanh.f32 %v1482_v54 }
 0x432   : > { %v3371_v57 = vpop.eup %3370 }
 0x433   : > { %v1484_v58 = vmul.f32 %v3371_v57, %v3369_v55 }
 0x435   : > { %1485 = vst.msk [vmem:[#allocation4 + $0x10] sm:$0xff] %vm1096_vm2, %v1484_v58  ;;  %2906 = vmatmul.mubr.msk.f32.vlgmr.msra.gmra.mrb[6].mxu0 %vm1096_vm2, %v1484_v58  ;;  %2907 = vmatmul.mubr.msk.f32.vlgmr.msra.gmra.mrb[6].mxu1 %vm1096_vm2, %v1484_v58 }
 0x436   : > { %3113 = vmatpush1.bf16.msra.mxu0 %v4060_v10  ;;  %3121 = vmatpush1.bf16.msra.mxu1 %v4224_v47 }
 0x437   : > { %3115 = vmatprep.subr.bf16.mxu0 %v4103_v24  ;;  %3123 = vmatprep.subr.bf16.mxu1 %v4226_v49 }
 0x438   : > { %1767 = vmatprep.mubr.f32.mxu0 %v3700_v0  ;;  %1838 = vmatprep.mubr.f32.mxu1 %v3700_v0 }
 0x43a   : > { %3117 = vmatpush1.bf16.msra.mxu0 %v4109_v30  ;;  %3125 = vmatpush1.bf16.msra.mxu1 %v4231_v52 }
 0x43b   : > { %3135 = vmatprep.subr.bf16.mxu1 %v4111_v31  ;;  %3127 = vmatprep.subr.bf16.mxu0 %v3126_v29 }
 0x508   : > { %v1575_v59 = vpop.f32.mrb[6].mxu0  ;;  %v1646_v60 = vpop.f32.mrb[6].mxu1 }
 0x509   : > { %v3188_v10 = vadd.f32 %v1575_v59, %v4215_v18  ;;  %v1577_v61 = vpop.f32.mrb[7].mxu0  ;;  %v1648_v62 = vpop.f32.mrb[7].mxu1  ;;  %v3202_v3 = vadd.f32 %v1646_v60, %v4217_v20 }
 0x50a   : > { %v3189_v63 = vadd.f32 %v1577_v61, %v4243_v56  ;;  %v3203_v4 = vadd.f32 %v1648_v62, %v4221_v32 }
 0x50b   : > { %v2908_v1 = vmul.f32 -1.442695, %v3188_v10  ;;  %v2910_v5 = vmul.f32 -1.442695, %v3202_v3 }
 0x50c   : > { %v2909_v2 = vmul.f32 -1.442695, %v3189_v63 }
 0x50d   : > { %3372 = vpow2.f32 %v2908_v1 }
 0x50e   : > { %3374 = vpow2.f32 %v2909_v2 }
 0x50f   : > { %3376 = vtanh.f32 %v3203_v4 }
 0x510   : > { %3378 = vpow2.f32 %v2910_v5 }
 0x517   : > { %v3373_v7 = vpop.eup %3372 }
 0x518   : > { %v1664_v8 = vadd.f32 1.0, %v3373_v7  ;;  %v3375_v9 = vpop.eup %3374 }
 0x519   : > { %v1665_v11 = vadd.f32 1.0, %v3375_v9  ;;  %v3377_v12 = vpop.eup %3376 }
 0x51a   : > { %3380 = vrcp.f32 %v1664_v8  ;;  %v3379_v13 = vpop.eup %3378 }
 0x51b   : > { %3382 = vrcp.f32 %v1665_v11  ;;  %v1666_v17 = vadd.f32 1.0, %v3379_v13 }
 0x51d   : > { %3384 = vrcp.f32 %v1666_v17 }
 0x524   : > { %v3381_v14 = vpop.eup %3380 }
 0x525   : > { %v1675_v15 = vmul.f32 %v3381_v14, %v3377_v12  ;;  %v3383_v16 = vpop.eup %3382 }
 0x526   : > { %v1674_v19 = vmul.f32 %v3383_v16, %v1482_v54 }
 0x527   : > { %v3385_v22 = vpop.eup %3384 }
 0x528   : > { %v1676_v21 = vadd.f32 %v1675_v15, %v1674_v19 }
 0x52a   : > { %3386 = vtanh.f32 %v1676_v21 }
 0x534   : > { %v3387_v23 = vpop.eup %3386 }
 0x535   : > { %v1678_v25 = vmul.f32 %v3387_v23, %v3385_v22 }
 0x537   : > { %1679 = vst.msk [vmem:[#allocation4 + $0x18] sm:$0xff] %vm1096_vm2, %v1678_v25  ;;  %2911 = vmatmul.mubr.msk.f32.vlgmr.msra.gmra.mrb[8].mxu0 %vm1096_vm2, %v1678_v25  ;;  %2912 = vmatmul.mubr.msk.f32.vlgmr.msra.gmra.mrb[8].mxu1 %vm1096_vm2, %v1678_v25 }
 0x538   : > { %3137 = vmatpush1.bf16.msra.mxu1 %v4224_v47  ;;  %1961 = vmatprep.mubr.f32.mxu0 %v3700_v0 }
 0x539   : > { %3139 = vmatprep.subr.bf16.mxu1 %v4226_v49  ;;  %2032 = vmatprep.mubr.f32.mxu1 %v3700_v0 }
 0x53a   : > { %3129 = vmatpush1.bf16.msra.mxu0 %v4291_v34 }
 0x53b   : > { %3131 = vmatprep.subr.bf16.mxu0 %v4103_v24 }
 0x53c   : > { %3141 = vmatpush1.bf16.msra.mxu1 %v4231_v52 }
 0x53d   : > { %3151 = vmatprep.subr.bf16.mxu1 %v4111_v31 }
 0x53e   : > { %3133 = vmatpush1.bf16.msra.mxu0 %v4109_v30 }
 0x53f   : > { %3143 = vmatprep.subr.bf16.mxu0 %v3126_v29 }
 0x60a   : > { %v1769_v35 = vpop.f32.mrb[8].mxu0  ;;  %v1840_v36 = vpop.f32.mrb[8].mxu1 }
 0x60b   : > { %v3190_v37 = vadd.f32 %v1769_v35, %v4215_v18  ;;  %v1771_v38 = vpop.f32.mrb[9].mxu0  ;;  %v1842_v39 = vpop.f32.mrb[9].mxu1  ;;  %v3204_v42 = vadd.f32 %v1840_v36, %v4217_v20 }
 0x60c   : > { %v3191_v40 = vadd.f32 %v1771_v38, %v4243_v56  ;;  %v3205_v43 = vadd.f32 %v1842_v39, %v4221_v32 }
 0x60d   : > { %v2913_v6 = vmul.f32 -1.442695, %v3190_v37  ;;  %v2915_v44 = vmul.f32 -1.442695, %v3204_v42 }
 0x60e   : > { %v2914_v41 = vmul.f32 -1.442695, %v3191_v40 }
 0x60f   : > { %3388 = vpow2.f32 %v2913_v6 }
 0x610   : > { %3390 = vpow2.f32 %v2914_v41 }
 0x611   : > { %3392 = vtanh.f32 %v3205_v43 }
 0x612   : > { %3394 = vpow2.f32 %v2915_v44 }
 0x619   : > { %v3389_v45 = vpop.eup %3388 }
 0x61a   : > { %v1858_v46 = vadd.f32 1.0, %v3389_v45  ;;  %v3391_v48 = vpop.eup %3390 }
 0x61b   : > { %v1859_v50 = vadd.f32 1.0, %v3391_v48  ;;  %v3393_v51 = vpop.eup %3392 }
 0x61c   : > { %3396 = vrcp.f32 %v1858_v46  ;;  %v3395_v53 = vpop.eup %3394 }
 0x61d   : > { %3398 = vrcp.f32 %v1859_v50  ;;  %v1860_v58 = vadd.f32 1.0, %v3395_v53 }
 0x61f   : > { %3400 = vrcp.f32 %v1860_v58 }
 0x626   : > { %v3397_v54 = vpop.eup %3396 }
 0x627   : > { %v1869_v55 = vmul.f32 %v3397_v54, %v3393_v51  ;;  %v3399_v57 = vpop.eup %3398 }
 0x628   : > { %v1868_v59 = vmul.f32 %v3399_v57, %v1676_v21  ;;  %v2467_v57 = vld [vmem:[%s4458_s6 + $0x18] sm:$0xff] }
 0x629   : > { %v3401_v10 = vpop.eup %3400 }
 0x62a   : > { %v1870_v60 = vadd.f32 %v1869_v55, %v1868_v59  ;;  %v2466_v55 = vld [vmem:[%s4458_s6 + $0x10] sm:$0xff] }
 0x62c   : > { %3402 = vtanh.f32 %v1870_v60 }
 0x636   : > { %v3403_v61 = vpop.eup %3402 }
 0x637   : > { %v1872_v62 = vmul.f32 %v3403_v61, %v3401_v10  ;;  %v3178_v10 = vpack.c.bf16 %v2467_v57, %v2466_v55  ;;  %v2456_v61 = vld [vmem:[#allocation4] sm:$0xff] }
 0x639   : > { %1873 = vst.msk [vmem:[#allocation4 + $0x20] sm:$0xff] %vm1096_vm2, %v1872_v62  ;;  %2916 = vmatmul.mubr.msk.f32.vlgmr.msra.gmra.mrb[10].mxu0 %vm1096_vm2, %v1872_v62  ;;  %2917 = vmatmul.mubr.msk.f32.vlgmr.msra.gmra.mrb[10].mxu1 %vm1096_vm2, %v1872_v62  ;;  %v2457_v62 = vld [vmem:[#allocation4 + $0x8] sm:$0xff] }
 0x63a   : > { %3145 = vmatpush1.bf16.msra.mxu0 %v4291_v34  ;;  %3153 = vmatpush1.bf16.msra.mxu1 %v4224_v47 }
 0x63b   : > { %3147 = vmatprep.subr.bf16.mxu0 %v4103_v24  ;;  %3155 = vmatprep.subr.bf16.mxu1 %v4226_v49 }
 0x63c   : > { %2155 = vmatprep.mubr.f32.mxu0 %v3700_v0  ;;  %2226 = vmatprep.mubr.f32.mxu1 %v3700_v0 }
 0x63e   : > { %3149 = vmatpush1.bf16.msra.mxu0 %v4109_v30  ;;  %3157 = vmatpush1.bf16.msra.mxu1 %v4231_v52 }
 0x63f   : > { %3159 = vmatprep.subr.bf16.mxu0 %v3126_v29  ;;  %3167 = vmatprep.subr.bf16.mxu1 %v4111_v31 }
 0x70c   : > { %v1963_v63 = vpop.f32.mrb[10].mxu0  ;;  %v2034_v1 = vpop.f32.mrb[10].mxu1 }
 0x70d   : > { %v3192_v2 = vadd.f32 %v1963_v63, %v4215_v18  ;;  %v1965_v3 = vpop.f32.mrb[11].mxu0  ;;  %v2036_v4 = vpop.f32.mrb[11].mxu1  ;;  %v3206_v9 = vadd.f32 %v2034_v1, %v4217_v20  ;;  %v2458_v63 = vld [vmem:[#allocation4 + $0x10] sm:$0xff]  ;;  %v2459_v1 = vld [vmem:[#allocation4 + $0x18] sm:$0xff] }
 0x70e   : > { %v3193_v5 = vadd.f32 %v1965_v3, %v4243_v56  ;;  %v3207_v11 = vadd.f32 %v2036_v4, %v4221_v32 }
 0x70f   : > { %v2918_v7 = vmul.f32 -1.442695, %v3192_v2  ;;  %v2920_v12 = vmul.f32 -1.442695, %v3206_v9  ;;  %v2460_v2 = vld [vmem:[#allocation4 + $0x20] sm:$0xff] }
 0x710   : > { %v2919_v8 = vmul.f32 -1.442695, %v3193_v5 }
 0x711   : > { %3404 = vpow2.f32 %v2918_v7 }
 0x712   : > { %3406 = vpow2.f32 %v2919_v8 }
 0x713   : > { %3408 = vtanh.f32 %v3207_v11 }
 0x714   : > { %3410 = vpow2.f32 %v2920_v12 }
 0x71b   : > { %v3405_v13 = vpop.eup %3404 }
 0x71c   : > { %v2052_v14 = vadd.f32 1.0, %v3405_v13  ;;  %v3407_v31 = vpop.eup %3406 }
 0x71d   : > { %v2053_v15 = vadd.f32 1.0, %v3407_v31  ;;  %v3409_v16 = vpop.eup %3408  ;;  %v4361_v31 = vld [vmem:[%s4459_s7] ss:$0 sm:$0xff] }
 0x71e   : > { %3412 = vrcp.f32 %v2052_v14  ;;  %v3411_v17 = vpop.eup %3410 }
 0x71f   : > { %3414 = vrcp.f32 %v2053_v15  ;;  %v2054_v23 = vadd.f32 1.0, %v3411_v17 }
 0x721   : > { %3416 = vrcp.f32 %v2054_v23 }
 0x728   : > { %v3413_v19 = vpop.eup %3412 }
 0x729   : > { %v2063_v21 = vmul.f32 %v3413_v19, %v3409_v16  ;;  %v3415_v22 = vpop.eup %3414 }
 0x72a   : > { %v2062_v25 = vmul.f32 %v3415_v22, %v1870_v60 }
 0x72b   : > { %v3417_v27 = vpop.eup %3416 }
 0x72c   : > { %v2064_v26 = vadd.f32 %v2063_v21, %v2062_v25 }
 0x72e   : > { %3418 = vtanh.f32 %v2064_v26 }
 0x738   : > { %v3419_v28 = vpop.eup %3418 }
 0x739   : > { %v2066_v29 = vmul.f32 %v3419_v28, %v3417_v27 }
 0x73b   : > { %2067 = vst.msk [vmem:[#allocation4 + $0x28] sm:$0xff] %vm1096_vm2, %v2066_v29  ;;  %2921 = vmatmul.mubr.msk.f32.vlgmr.msra.gmra.mrb[12].mxu0 %vm1096_vm2, %v2066_v29  ;;  %2922 = vmatmul.mubr.msk.f32.vlgmr.msra.gmra.mrb[12].mxu1 %vm1096_vm2, %v2066_v29 }
 0x73c   : > { %3161 = vmatpush1.bf16.msra.mxu0 %v4291_v34  ;;  %3169 = vmatpush1.bf16.msra.mxu1 %v4224_v47  ;;  %v2465_v47 = vld [vmem:[%s4458_s6 + $0x8] sm:$0xff] }
 0x73d   : > { %3163 = vmatprep.subr.bf16.mxu0 %v4103_v24  ;;  %3171 = vmatprep.subr.bf16.mxu1 %v4226_v49  ;;  %v3174_v34 = vpack.c.bf16 %v2465_v47, %v2464_v33 }
 0x73e   : > { %2349 = vmatprep.mubr.f32.mxu0 %v3700_v0  ;;  %2420 = vmatprep.mubr.f32.mxu1 %v3700_v0 }
 0x740   : > { %3165 = vmatpush1.bf16.msra.mxu0 %v4109_v30  ;;  %3173 = vmatpush1.bf16.msra.mxu1 %v4231_v52 }
 0x741   : > { %3175 = vmatprep.subr.bf16.mxu0 %v3174_v34 }
 0x742   : > { %v2461_v3 = vld [vmem:[#allocation4 + $0x28] sm:$0xff] }
 0x80e   : > { %v2157_v24 = vpop.f32.mrb[12].mxu0  ;;  %v2228_v49 = vpop.f32.mrb[12].mxu1 }
 0x80f   : > { %v3194_v35 = vadd.f32 %v2157_v24, %v4215_v18  ;;  %v2159_v36 = vpop.f32.mrb[13].mxu0  ;;  %v2230_v0 = vpop.f32.mrb[13].mxu1  ;;  %v3208_v38 = vadd.f32 %v2228_v49, %v4217_v20 }
 0x810   : > { %v3195_v30 = vadd.f32 %v2159_v36, %v4243_v56  ;;  %v3209_v39 = vadd.f32 %v2230_v0, %v4221_v32 }
 0x811   : > { %v2923_v37 = vmul.f32 -1.442695, %v3194_v35  ;;  %v2925_v40 = vmul.f32 -1.442695, %v3208_v38 }
 0x812   : > { %v2924_v52 = vmul.f32 -1.442695, %v3195_v30 }
 0x813   : > { %3420 = vpow2.f32 %v2923_v37 }
 0x814   : > { %3422 = vpow2.f32 %v2924_v52 }
 0x815   : > { %3424 = vtanh.f32 %v3209_v39 }
 0x816   : > { %3426 = vpow2.f32 %v2925_v40 }
 0x81d   : > { %v3421_v6 = vpop.eup %3420 }
 0x81e   : > { %v2246_v41 = vadd.f32 1.0, %v3421_v6  ;;  %v3423_v42 = vpop.eup %3422 }
 0x81f   : > { %v2247_v43 = vadd.f32 1.0, %v3423_v42  ;;  %v3425_v44 = vpop.eup %3424 }
 0x820   : > { %3428 = vrcp.f32 %v2246_v41  ;;  %v3427_v45 = vpop.eup %3426 }
 0x821   : > { %3430 = vrcp.f32 %v2247_v43  ;;  %v2248_v51 = vadd.f32 1.0, %v3427_v45 }
 0x823   : > { %3432 = vrcp.f32 %v2248_v51 }
 0x82a   : > { %v3429_v46 = vpop.eup %3428 }
 0x82b   : > { %v2257_v48 = vmul.f32 %v3429_v46, %v3425_v44  ;;  %v3431_v50 = vpop.eup %3430 }
 0x82c   : > { %v2256_v53 = vmul.f32 %v3431_v50, %v2064_v26 }
 0x82d   : > { %v3433_v58 = vpop.eup %3432 }
 0x82e   : > { %v4337_v54 = vadd.f32 %v2257_v48, %v2256_v53 }
 0x830   : > { %3434 = vtanh.f32 %v4337_v54 }
 0x83a   : > { %v3435_v59 = vpop.eup %3434 }
 0x83b   : > { %v2260_v60 = vmul.f32 %v3435_v59, %v3433_v58 }
 0x83d   : > { %2261 = vst.msk [vmem:[#allocation4 + $0x30] sm:$0xff] %vm1096_vm2, %v2260_v60  ;;  %2926 = vmatmul.mubr.msk.f32.vlgmr.msra.gmra.mrb[14].mxu0 %vm1096_vm2, %v2260_v60  ;;  %2927 = vmatmul.mubr.msk.f32.vlgmr.msra.gmra.mrb[14].mxu1 %vm1096_vm2, %v2260_v60 }
 0x83e   : > { %3177 = vmatpush3.bf16.msra.mxu0 %v3174_v34  ;;  %2986 = vmatprep.mubr.msk.f32.mxu0 %vm1096_vm2, %v2456_v61 }
 0x83f   : > { %3179 = vmatprep.subr.bf16.mxu0 %v3178_v10 }
 0x842   : > { %3181 = vmatpush3.bf16.msra.mxu0 %v3178_v10 }
 0x844   : > { %v2462_v4 = vld [vmem:[#allocation4 + $0x30] sm:$0xff] }
 0x845   : > { %2987 = vmatmul.mubr.msk.f32.vlgmr.msra.gmra.mrb[16].mxu0 %vm1096_vm2, %v2457_v62 }
 0x846   : > { %2989 = vmatprep.mubr.msk.f32.mxu0 %vm1096_vm2, %v2458_v63 }
 0x849   : > { %2990 = vmatmul.mubr.msk.f32.gmra.mrb[18].mxu0 %vm1096_vm2, %v2459_v1 }
 0x84a   : > { %2992 = vmatprep.mubr.msk.f32.mxu0 %vm1096_vm2, %v2460_v2 }
 0x84d   : > { %2993 = vmatmul.mubr.msk.f32.gmra.mrb[20].mxu0 %vm1096_vm2, %v2461_v3 }
 0x84e   : > { %2995 = vmatprep.mubr.msk.f32.mxu0 %vm1096_vm2, %v2462_v4 }
 0x910   : > { %v2351_v5 = vpop.f32.mrb[14].mxu0  ;;  %v2422_v7 = vpop.f32.mrb[14].mxu1 }
 0x911   : > { %v3196_v8 = vadd.f32 %v2351_v5, %v4215_v18  ;;  %v2353_v9 = vpop.f32.mrb[15].mxu0  ;;  %v2424_v11 = vpop.f32.mrb[15].mxu1  ;;  %v3210_v16 = vadd.f32 %v2422_v7, %v4217_v20 }
 0x912   : > { %v3197_v12 = vadd.f32 %v2353_v9, %v4243_v56  ;;  %v3211_v56 = vadd.f32 %v2424_v11, %v4221_v32 }
 0x913   : > { %v2928_v13 = vmul.f32 -1.442695, %v3196_v8  ;;  %v2930_v22 = vmul.f32 -1.442695, %v3210_v16 }
 0x914   : > { %v2929_v14 = vmul.f32 -1.442695, %v3197_v12 }
 0x915   : > { %3436 = vpow2.f32 %v2928_v13 }
 0x916   : > { %3438 = vpow2.f32 %v2929_v14 }
 0x917   : > { %3440 = vtanh.f32 %v3211_v56 }
 0x918   : > { %v2988_v15 = vpop.f32.mrb[16].mxu0  ;;  %3442 = vpow2.f32 %v2930_v22 }
 0x919   : > { %v2571_v17 = vadd.f32 %v2988_v15, %v4361_v31  ;;  %v2565_v19 = vpop.f32.mrb[17].mxu0 }
 0x91a   : > { %v2566_v18 = vadd.f32 %v4361_v31, %v2565_v19 }
 0x91b   : > { %2606 = vmax.xlane.f32.xlu1 %v2571_v17 }
 0x91c   : > { %2604 = vmax.xlane.f32.xlu0 %v2566_v18  ;;  %v2991_v21 = vpop.f32.mrb[18].mxu0 }
 0x91d   : > { %v2581_v23 = vadd.f32 %v2991_v21, %v4361_v31  ;;  %v2575_v25 = vpop.f32.mrb[19].mxu0 }
 0x91e   : > { %v2576_v47 = vadd.f32 %v4361_v31, %v2575_v25 }
 0x91f   : > { %v3437_v26 = vpop.eup %3436 }
 0x920   : > { %v2440_v27 = vadd.f32 1.0, %v3437_v26  ;;  %2610 = vmax.xlane.f32.xlu0 %v2581_v23  ;;  %v2994_v28 = vpop.f32.mrb[20].mxu0  ;;  %v3439_v20 = vpop.eup %3438 }
 0x921   : > { %v2585_v29 = vpop.f32.mrb[21].mxu0  ;;  %v2441_v33 = vadd.f32 1.0, %v3439_v20  ;;  %v2591_v34 = vadd.f32 %v2994_v28, %v4361_v31  ;;  %v3441_v24 = vpop.eup %3440 }
 0x922   : > { %3444 = vrcp.f32 %v2440_v27  ;;  %v2586_v32 = vadd.f32 %v4361_v31, %v2585_v29  ;;  %v3443_v49 = vpop.eup %3442 }
 0x923   : > { %3446 = vrcp.f32 %v2441_v33  ;;  %v2442_v30 = vadd.f32 1.0, %v3443_v49 }
 0x924   : > { %2612 = vmax.xlane.f32.xlu1 %v2586_v32  ;;  %2608 = vmax.xlane.f32.xlu0 %v2576_v47 }
 0x925   : > { %3448 = vrcp.f32 %v2442_v30 }
 0x928   : > { %2614 = vmax.xlane.f32.xlu0 %v2591_v34 }
 0x92c   : > { %v3445_v35 = vpop.eup %3444 }
 0x92d   : > { %v2451_v36 = vmul.f32 %v3445_v35, %v3441_v24  ;;  %v3447_v0 = vpop.eup %3446 }
 0x92e   : > { %v2450_v37 = vmul.f32 %v3447_v0, %v4337_v54 }
 0x92f   : > { %v3449_v38 = vpop.eup %3448 }
 0x930   : > { %v2452_v52 = vadd.f32 %v2451_v36, %v2450_v37 }
 0x932   : > { %3450 = vtanh.f32 %v2452_v52 }
 0x93c   : > { %v3451_v39 = vpop.eup %3450 }
 0x93d   : > { %v2454_v40 = vmul.f32 %v3451_v39, %v3449_v38 }
 0x93f   : > { %2455 = vst.msk [vmem:[#allocation4 + $0x38] sm:$0xff] %vm1096_vm2, %v2454_v40 }
 0x946   : > { %v2463_v6 = vld [vmem:[#allocation4 + $0x38] sm:$0xff] }
 0x947   : > { %2996 = vmatmul.mubr.msk.f32.gmra.mrb[22].mxu0 %vm1096_vm2, %v2463_v6 }
 0x9a8   : > { %v2607_v43 = vpop.xlane.xlu1 %2606 }
 0x9a9   : > { %v2605_v41 = vpop.xlane.xlu0 %2604  ;;  %v4374_v45 = vsub.f32 %v2571_v17, %v2607_v43 }
 0x9aa   : > { %v4376_v46 = vsub.f32 %v2566_v18, %v2605_v41 }
 0x9ab   : > { %v2630_v48 = vmul.f32 1.442695, %v4374_v45 }
 0x9ac   : > { %v2628_v51 = vmul.f32 1.442695, %v4376_v46 }
 0x9ad   : > { %v2611_v42 = vpop.xlane.xlu0 %2610  ;;  %3452 = vpow2.f32 %v2630_v48 }
 0x9ae   : > { %v4379_v50 = vsub.f32 %v2581_v23, %v2611_v42  ;;  %3454 = vpow2.f32 %v2628_v51 }
 0x9b0   : > { %v2634_v57 = vmul.f32 1.442695, %v4379_v50 }
 0x9b1   : > { %v2609_v44 = vpop.xlane.xlu0 %2608  ;;  %v2613_v55 = vpop.xlane.xlu1 %2612 }
 0x9b2   : > { %v4382_v53 = vsub.f32 %v2576_v47, %v2609_v44  ;;  %v4387_v59 = vsub.f32 %v2586_v32, %v2613_v55  ;;  %3456 = vpow2.f32 %v2634_v57 }
 0x9b4   : > { %v2632_v60 = vmul.f32 1.442695, %v4382_v53  ;;  %v2636_v62 = vmul.f32 1.442695, %v4387_v59 }
 0x9b5   : > { %v2615_v54 = vpop.xlane.xlu0 %2614 }
 0x9b6   : > { %v4385_v58 = vsub.f32 %v2591_v34, %v2615_v54  ;;  %3458 = vpow2.f32 %v2632_v60 }
 0x9b7   : > { %v3453_v3 = vpop.eup %3452 }
 0x9b8   : > { %v2638_v10 = vmul.f32 1.442695, %v4385_v58  ;;  %v3455_v4 = vpop.eup %3454 }
 0x9ba   : > { %3460 = vpow2.f32 %v2638_v10 }
 0x9bb   : > { %3462 = vpow2.f32 %v2636_v62 }
 0x9bc   : > { %v3457_v5 = vpop.eup %3456 }
 0x9c0   : > { %v3459_v7 = vpop.eup %3458 }
 0x9c4   : > { %v3461_v8 = vpop.eup %3460 }
 0x9c5   : > { %v3463_v9 = vpop.eup %3462 }
 0xa1a   : > { %v2997_v61 = vpop.f32.mrb[22].mxu0 }
 0xa1b   : > { %v2601_v63 = vadd.f32 %v2997_v61, %v4361_v31  ;;  %v2595_v1 = vpop.f32.mrb[23].mxu0 }
 0xa1c   : > { %v2596_v2 = vadd.f32 %v4361_v31, %v2595_v1 }
 0xa1d   : > { %2618 = vmax.xlane.f32.xlu0 %v2601_v63 }
 0xa1e   : > { %2616 = vmax.xlane.f32.xlu1 %v2596_v2 }
 0xa21   : > { %2646 = vadd.xlane.f32.xlu0 %v3453_v3 }
 0xa22   : > { %2644 = vadd.xlane.f32.xlu1 %v3455_v4 }
 0xa25   : > { %2650 = vadd.xlane.f32.xlu0 %v3457_v5 }
 0xa26   : > { %2648 = vadd.xlane.f32.xlu1 %v3459_v7 }
 0xa29   : > { %2654 = vadd.xlane.f32.xlu0 %v3461_v8 }
 0xa2a   : > { %2652 = vadd.xlane.f32.xlu1 %v3463_v9 }
 0xaaa   : > { %v2619_v11 = vpop.xlane.xlu0 %2618 }
 0xaab   : > { %v2627_v12 = vsub.f32 %v2601_v63, %v2619_v11  ;;  %v2617_v13 = vpop.xlane.xlu1 %2616 }
 0xaac   : > { %v2626_v14 = vsub.f32 %v2596_v2, %v2617_v13 }
 0xaad   : > { %v2642_v31 = vmul.f32 1.442695, %v2627_v12 }
 0xaae   : > { %v2640_v15 = vmul.f32 1.442695, %v2626_v14  ;;  %v2647_v16 = vpop.xlane.xlu0 %2646 }
 0xaaf   : > { %3464 = vpow2.f32 %v2642_v31  ;;  %v2645_v17 = vpop.xlane.xlu1 %2644 }
 0xab0   : > { %3466 = vpow2.f32 %v2640_v15 }
 0xab1   : > { %3468 = vlog2.f32 %v2647_v16 }
 0xab2   : > { %3470 = vlog2.f32 %v2645_v17  ;;  %v2651_v19 = vpop.xlane.xlu0 %2650 }
 0xab3   : > { %3472 = vlog2.f32 %v2651_v19  ;;  %v2649_v18 = vpop.xlane.xlu1 %2648 }
 0xab4   : > { %3474 = vlog2.f32 %v2649_v18 }
 0xab6   : > { %v2655_v56 = vpop.xlane.xlu0 %2654 }
 0xab7   : > { %3476 = vlog2.f32 %v2655_v56  ;;  %v2653_v21 = vpop.xlane.xlu1 %2652 }
 0xab8   : > { %3478 = vlog2.f32 %v2653_v21 }
 0xab9   : > { %v3465_v22 = vpop.eup %3464 }
 0xaba   : > { %v3467_v23 = vpop.eup %3466  ;;  %2658 = vadd.xlane.f32.xlu0 %v3465_v22 }
 0xabb   : > { %v3469_v25 = vpop.eup %3468  ;;  %2656 = vadd.xlane.f32.xlu1 %v3467_v23 }
 0xabc   : > { %v3471_v26 = vpop.eup %3470  ;;  %v2663_v27 = vmul.f32 0.6931472, %v3469_v25 }
 0xabd   : > { %v3473_v28 = vpop.eup %3472  ;;  %v2661_v20 = vmul.f32 0.6931472, %v3471_v26 }
 0xabe   : > { %v3475_v29 = vpop.eup %3474  ;;  %v2677_v33 = vsub.f32 %v4374_v45, %v2663_v27  ;;  %v2667_v47 = vmul.f32 0.6931472, %v3473_v28 }
 0xabf   : > { %v2676_v32 = vsub.f32 %v4376_v46, %v2661_v20  ;;  %v2665_v34 = vmul.f32 0.6931472, %v3475_v29 }
 0xac0   : > { %2685 = vst [vmem:[%s346_s1 + $0x8] sm:$0xff] %v2677_v33  ;;  %v2679_v24 = vsub.f32 %v4379_v50, %v2667_v47 }
 0xac1   : > { %v3477_v49 = vpop.eup %3476  ;;  %2684 = vst [vmem:[%s346_s1] sm:$0xff] %v2676_v32  ;;  %v2678_v35 = vsub.f32 %v4382_v53, %v2665_v34 }
 0xac2   : > { %v3479_v36 = vpop.eup %3478  ;;  %2687 = vst [vmem:[%s346_s1 + $0x18] sm:$0xff] %v2679_v24  ;;  %v2671_v0 = vmul.f32 0.6931472, %v3477_v49 }
 0xac3   : > { %2686 = vst [vmem:[%s346_s1 + $0x10] sm:$0xff] %v2678_v35  ;;  %v2669_v30 = vmul.f32 0.6931472, %v3479_v36 }
 0xac4   : > { %v2681_v37 = vsub.f32 %v4385_v58, %v2671_v0 }
 0xac5   : > { %v2680_v52 = vsub.f32 %v4387_v59, %v2669_v30 }
 0xac6   : > { %2689 = vst [vmem:[%s346_s1 + $0x28] sm:$0xff] %v2681_v37 }
 0xac7   : > { %2688 = vst [vmem:[%s346_s1 + $0x20] sm:$0xff] %v2680_v52 }
 0xb47   : > { %v2659_v38 = vpop.xlane.xlu0 %2658 }
 0xb48   : > { %3480 = vlog2.f32 %v2659_v38  ;;  %v2657_v39 = vpop.xlane.xlu1 %2656 }
 0xb49   : > { %3482 = vlog2.f32 %v2657_v39 }
 0xb52   : > { %v3481_v40 = vpop.eup %3480 }
 0xb53   : > { %v3483_v6 = vpop.eup %3482  ;;  %v2675_v41 = vmul.f32 0.6931472, %v3481_v40 }
 0xb54   : > { %v2673_v42 = vmul.f32 0.6931472, %v3483_v6 }
 0xb55   : > { %v2683_v43 = vsub.f32 %v2627_v12, %v2675_v41 }
 0xb56   : > { %v2682_v44 = vsub.f32 %v2626_v14, %v2673_v42 }
 0xb57   : > { %2691 = vst [vmem:[%s346_s1 + $0x38] sm:$0xff] %v2683_v43 }
 0xb58   : > { %2690 = vst [vmem:[%s346_s1 + $0x30] sm:$0xff] %v2682_v44 }
 0xb59   : > { %3623 = shalt.err (!%p3620_p3)
}
 0xb5a   : > { %s3624_s2 = scalar_lea.hbm %s4408_s17, 1024  ;;  %s3628_s18 = scalar_lea.hbm %s4509_s9, 2048 }
 0xb5b   : > { %p3625_p9 = scmp.ne.s32.totalorder %s4408_s17, %s3624_s2  ;;  %p3629_p4 = scmp.lt.u32.totalorder %s4408_s17, %s4509_s9 }
 0xb5c   : > { %p3630_p8 = scmp.lt.u32.totalorder %s3628_s18, %s3624_s2  ;;  %p3632_p1 = scmp.lt.u32.totalorder %s3624_s2, %s4408_s17 }
 0xb5d   : > { %p3626_p11 = pnand %p3625_p9, %p4510_p6 }
 0xb5e   : > { %p3631_p0 = por %p3630_p8, %p3629_p4 }
 0xb5f   : > { %p3627_p7 = pneg %p3626_p11 }
 0xb60   : > { %p3633_p5 = por %p3632_p1, %p3631_p0 }
 0xb62   : > { %p3634_p12 = pnand %p3633_p5, %p3627_p7 }
 0xb64   : > { %3637 = shalt.err (!%p3634_p12)
}
 0xb65   : > { %s3703_s25 = smov 128   ;;  %s3704_s4 = smov 256  }
 0xb66   : > { %s3705_s15 = smov 8  }
 0xb67   : > { %3252 = dma.vmem_to_hbm [thread:$0]  (%p4510_p6), %s4403_s11, 1024, %s4408_s17, %s2693_s29, %s3703_s25, %s3704_s4, %s3705_s15  }
 0xb68 PF: > { %s4511_s0 = sld [smem:[#allocation21_spill]]  ;;  %s4512_s8 = sld [smem:[#allocation27_spill]] }
 0xb69   : > { %s4513_s3 = sld [smem:[#allocation24_spill]] }
 0xb6e   : > { %s2720_s30 = sand.u32 1, %s4511_s0   ;;  %p4514_p13 = scmp.ne.s32.totalorder %s4512_s8, 0 }
 0xb6f   : > { %p4515_p10 = scmp.ge.s32.totalorder %s4513_s3, 2  ;;  %s2721_s16 = scalar_lea.sflag [#allocation9], %s2720_s30 }
 0xb71   : > { %p3269_p2 = pnand %p4515_p10, %p4514_p13 }
 0xb73   : > { %3669 = dma.done.wait (!%p3269_p2), %s2721_s16, 1024  }
 0xb74   : > { %3671 = vsyncadd (!%p3269_p2), %s2721_s16, 4294966272  ;;  %s4516_s12 = sld [smem:[#allocation25_spill]]  ;;  %s4517_s0 = sld [smem:[#allocation22_spill]] }
 0xb75   : > { %s4518_s10 = sld [smem:[#allocation23_spill]]  ;;  %s4519_s11 = sld [smem:[#allocation26_spill]] }
 0xb7a   : > { %p29_p3 = scmp.ge.s32.totalorder %s4516_s12, 4  }
 0xb7c   :  { %31 = sbr.rel (!%p29_p3) target bundleno = 24 (0x18), region = 169 }
 0xb83   :  { %2726 = vsyncpa [#allocation8], 1 }
 0xb84   :  { %2728 = vsyncpa [#allocation8 + $0x1], 1 }
 0xb85   :  { %2729 = vsyncpa [#allocation11], 1 }
 0xb86   :  { %2730 = vsyncpa [#allocation14], 1 }
 0xb87   :  { %2731 = vsyncpa [#allocation9], 1 }
 0xb88   :  { %2733 = vsyncpa [#allocation9 + $0x1], 1 }

</bundles_post_ra>
